<compile_context>
chip_gen: v7x
topology: tpu7x:2x2x1
jax: 0.10.0
libtpu: 0.0.40
codegen_flags: <defaults>
</compile_context>

<pallas_src>
import functools

import jax
import jax.numpy as jnp
import numpy as np
from jax.experimental import pallas as pl
from jax.experimental.pallas import tpu as pltpu


# ------------------------------ Pallas kernel ------------------------------ #

def mbconv_kernel(x_ref, wexp_ref, bexp_ref, wdw_ref, b2_ref, mask_ref,
                  wse1_ref, bse1_ref, wse2_ref, bse2_ref,
                  wproj_ref, wsc_ref, bout_ref, out_ref, *, H, W):
    """One image per grid step; activations are (H*W, C) with channels on the lane axis."""
    HW = H * W
    mm = wexp_ref.dtype                       # matmul operand dtype (bf16 perf / f32 check)

    # --- 1x1 expansion conv (+bias) + BN1 (scale folded into wexp) + ReLU6 ---
    net1 = jnp.dot(x_ref[...].astype(mm), wexp_ref[...],
                   preferred_element_type=jnp.float32)
    net1 = jnp.clip(net1 + bexp_ref[...], 0.0, 6.0)           # (HW, Cexp) f32

    # --- 3x3 depthwise conv (stride 1, zero pad) + BN2 (scale folded into wdw) ---
    # Neighbour (h+kh-1, w+kw-1) of row r = h*W+w lives at row r + (kh-1)*W + (kw-1): fetch
    # it with an XLU sublane roll; the per-row mask zeroes exactly the rows whose neighbour
    # is outside the image (zero padding; also kills the circular wrap-around).
    wdw = wdw_ref[...]                                         # (9, Cexp), s2 pre-folded
    masks = mask_ref[...]                                      # (HW, 9) of 0/1
    acc = net1 * wdw[4:5, :]                                   # centre tap: always in-bounds
    for kh in range(3):
        for kw in range(3):
            if kh == 1 and kw == 1:
                continue
            k = kh * 3 + kw
            shift = (-((kh - 1) * W + (kw - 1))) % HW          # tap[r] = net1[r + d]
            tap = net1 if shift == 0 else pltpu.roll(net1, shift, axis=0)
            acc = acc + (tap * masks[:, k:k + 1]) * wdw[k:k + 1, :]
    net2 = acc + b2_ref[...]                                   # (HW, Cexp) f32

    # --- squeeze & excite: global avg pool (1/(H*W) folded into wse1) -> 1x1 -> ReLU6
    #     -> 1x1 -> sigmoid -> per-channel gate ---
    sq = jnp.sum(net2, axis=0, keepdims=True)                  # (1, Cexp) spatial sum
    se = jnp.dot(sq.astype(mm), wse1_ref[...], preferred_element_type=jnp.float32)
    se = jnp.clip(se + bse1_ref[...], 0.0, 6.0)
    z = jnp.dot(se.astype(mm), wse2_ref[...], preferred_element_type=jnp.float32)
    z = z + bse2_ref[...]
    gate = 1.0 / (1.0 + jnp.exp(-z))                           # (1, Cexp)
    net3 = net2 * gate                                         # broadcast over rows

    # --- 1x1 projection (+bias) + BN3 (scale folded into wproj) ---
    net4 = jnp.dot(net3.astype(mm), wproj_ref[...], preferred_element_type=jnp.float32)

    # --- 1x1 shortcut conv + residual; computed right before its only use so it is not
    #     live across the depthwise/SE body (shortcut bias folded into bout) ---
    sc = jnp.dot(x_ref[...].astype(mm), wsc_ref[...], preferred_element_type=jnp.float32)
    out_ref[...] = (net4 + bout_ref[...] + sc).astype(out_ref.dtype)


# ------------------------- operand preparation (hoisted) -------------------- #

def prepare_mbconv_operands(params, H, W, matmul_dtype=jnp.bfloat16):
    """Fold conv biases + inference-mode BN into weights/shifts, build depthwise masks.

    Called once per set of parameters (hoisted out of the per-step path)."""
    f32 = jnp.float32
    HW = H * W

    s1, b1 = params["s1"], params["b1"]
    s2, b2 = params["s2"], params["b2"]
    s3, b3 = params["s3"], params["b3"]

    wexp = (params["wpw"].astype(f32) * s1).astype(matmul_dtype)          # (Cin, Cexp)
    bexp = (params["bpw"] * s1 + b1).astype(f32)                           # (1, Cexp)
    wdw = (params["wdw"].astype(f32) * s2).astype(f32)                     # (9, Cexp)
    b2v = b2.astype(f32)                                                   # (1, Cexp)
    wse1 = (params["wse1"].astype(f32) / float(HW)).astype(matmul_dtype)   # (Cexp, rd)
    bse1 = params["bse1"].astype(f32)                                      # (1, rd)
    wse2 = params["wse2"].astype(matmul_dtype)                             # (rd, Cexp)
    bse2 = params["bse2"].astype(f32)                                      # (1, Cexp)
    wproj = (params["wpw1"].astype(f32) * s3).astype(matmul_dtype)         # (Cexp, Cout)
    wsc = params["wsc"].astype(matmul_dtype)                               # (Cin, Cout)
    bout = (params["bpw1"] * s3 + b3 + params["bsc"]).astype(f32)          # (1, Cout)

    # Per-row tap validity masks for the 3x3 depthwise: mask[r, kh*3+kw] = 1 iff the
    # neighbour (h+kh-1, w+kw-1) of row r is inside the image.
    r = jnp.arange(HW)
    h, w = r // W, r % W
    cols = []
    for kh in range(3):
        okh = jnp.logical_and(h + kh - 1 >= 0, h + kh - 1 <= H - 1)
        for kw in range(3):
            okw = jnp.logical_and(w + kw - 1 >= 0, w + kw - 1 <= W - 1)
            cols.append(jnp.logical_and(okh, okw).astype(f32))
    masks = jnp.stack(cols, axis=1)                                        # (HW, 9)

    return (wexp, bexp, wdw, b2v, masks, wse1, bse1, wse2, bse2, wproj, wsc, bout)


# --------------------------------- wrapper ---------------------------------- #

@jax.jit
def mbconv_pallas(x_nchw, ops):
    N, Cin, H, W = x_nchw.shape
    (wexp, bexp, wdw, b2v, masks, wse1, bse1, wse2, bse2, wproj, wsc, bout) = ops
    Cexp = wexp.shape[1]
    Cout = wproj.shape[1]
    rd = wse1.shape[1]
    HW = H * W
    f32 = jnp.float32

    # NCHW -> channels-last rows (N*H*W, Cin); channels sit on the lane axis so the 1x1
    # convs are dense matmuls (real channel counts >= 128 store unmasked).  The cast to the
    # matmul dtype halves the activation DMA in the bf16 configuration.
    x2 = jnp.transpose(x_nchw, (0, 2, 3, 1)).reshape(N * HW, Cin).astype(wexp.dtype)

    args = (x2, wexp, bexp, wdw, b2v, masks, wse1, bse1, wse2, bse2, wproj, wsc, bout)

    x_spec = pl.BlockSpec((HW, Cin), lambda n: (n, 0))
    # Weight/bias/mask operands: constant block index -> fetched once, VMEM-resident.
    const_specs = [pl.BlockSpec(a.shape, lambda n: (0, 0)) for a in args[1:]]

    weight_bytes = sum(int(np.prod(a.shape)) * a.dtype.itemsize for a in args[1:])
    cost = pl.CostEstimate(
        flops=int(2 * N * HW * (Cin * Cexp + Cexp * Cout + Cin * Cout)   # 1x1 convs on MXU
                  + 27 * N * HW * Cexp                                   # depthwise taps
                  + 4 * N * Cexp * rd                                    # SE matmuls
                  + 6 * N * HW * Cexp),                                  # shifts/ReLU6/gate
        transcendentals=int(N * Cexp),
        bytes_accessed=int(x2.size * x2.dtype.itemsize + N * HW * Cout * 4 + weight_bytes),
    )

    out2d = pl.pallas_call(
        functools.partial(mbconv_kernel, H=H, W=W),
        out_shape=jax.ShapeDtypeStruct((N * HW, Cout), f32),
        grid=(N,),                                   # one image per step; images independent
        in_specs=[x_spec] + const_specs,
        out_specs=pl.BlockSpec((HW, Cout), lambda n: (n, 0)),
        compiler_params=pltpu.CompilerParams(
            dimension_semantics=("parallel",),       # v7x: both TensorCores take images
            vmem_limit_bytes=48 * 1024 * 1024,
        ),
        cost_estimate=cost,
    )(*args)

    # channels-last rows -> NCHW
    return jnp.transpose(out2d.reshape(N, H, W, Cout), (0, 3, 1, 2))


# ----------------------------- pure-JAX reference --------------------------- #

def mbconv_ref(x_nchw, p):
    """Reference forward of the MBConv block (inference-mode BN as scale/shift)."""
    hp = jax.lax.Precision.HIGHEST
    x = jnp.transpose(x_nchw, (0, 2, 3, 1)).astype(jnp.float32)
    N, H, W, Cin = x.shape
    Cexp = p["wpw"].shape[1]
    # shortcut: 1x1 conv with bias (in_ch != out_ch)
    sc = jnp.einsum("nhwc,cd->nhwd", x, p["wsc"], precision=hp) + p["bsc"]
    # pw -> bn1 -> ReLU6
    net = jnp.einsum("nhwc,cd->nhwd", x, p["wpw"], precision=hp) + p["bpw"]
    net = net * p["s1"] + p["b1"]
    net = jnp.clip(net, 0.0, 6.0)
    # dw 3x3 (stride 1, pad 1, groups=Cexp) -> bn2
    wdw = p["wdw"].reshape(3, 3, Cexp)
    pad = jnp.pad(net, ((0, 0), (1, 1), (1, 1), (0, 0)))
    acc = jnp.zeros_like(net)
    for kh in range(3):
        for kw in range(3):
            acc = acc + pad[:, kh:kh + H, kw:kw + W, :] * wdw[kh, kw]
    net = acc * p["s2"] + p["b2"]
    # SE: avgpool -> 1x1 -> ReLU6 -> 1x1 -> sigmoid -> scale
    se = jnp.mean(net, axis=(1, 2), keepdims=True)
    se = jnp.einsum("nijc,cd->nijd", se, p["wse1"], precision=hp) + p["bse1"]
    se = jnp.clip(se, 0.0, 6.0)
    se = jnp.einsum("nijc,cd->nijd", se, p["wse2"], precision=hp) + p["bse2"]
    net = net * jax.nn.sigmoid(se)
    # pw1 -> bn3 -> + shortcut
    net = jnp.einsum("nhwc,cd->nhwd", net, p["wpw1"], precision=hp) + p["bpw1"]
    net = net * p["s3"] + p["b3"]
    return jnp.transpose(net + sc, (0, 3, 1, 2))


# ----------------------------- parameter init ------------------------------- #

def init_params(key, in_ch, out_ch, exp_ratio=4.0, reduction=0.25, eps=1e-5):
    exp_ch = round(in_ch * exp_ratio)
    rd_ch = max(1, int(exp_ch * reduction))
    ks = jax.random.split(key, 24)

    def nrm(k, shape, scale=0.2):
        return (scale * jax.random.normal(k, shape)).astype(jnp.float32)

    def bn(kg, kb, km, kv, c):
        gamma = 1.0 + 0.1 * jax.random.normal(kg, (1, c))
        beta = 0.1 * jax.random.normal(kb, (1, c))
        mean = 0.1 * jax.random.normal(km, (1, c))
        var = jax.random.uniform(kv, (1, c), minval=0.5, maxval=1.5)
        scale = gamma * jax.lax.rsqrt(var + eps)
        shift = beta - mean * scale
        return scale.astype(jnp.float32), shift.astype(jnp.float32)

    p = {}
    p["wpw"] = nrm(ks[0], (in_ch, exp_ch))          # 1x1 expand conv weight
    p["bpw"] = nrm(ks[1], (1, exp_ch), 0.05)
    p["s1"], p["b1"] = bn(ks[2], ks[3], ks[4], ks[5], exp_ch)
    p["wdw"] = nrm(ks[6], (9, exp_ch))              # depthwise 3x3 (kh*3+kw, channel)
    p["s2"], p["b2"] = bn(ks[7], ks[8], ks[9], ks[10], exp_ch)
    p["wse1"] = nrm(ks[11], (exp_ch, rd_ch))        # SE reduce
    p["bse1"] = nrm(ks[12], (1, rd_ch), 0.05)
    p["wse2"] = nrm(ks[13], (rd_ch, exp_ch))        # SE expand
    p["bse2"] = nrm(ks[14], (1, exp_ch), 0.05)
    p["wpw1"] = nrm(ks[15], (exp_ch, out_ch))       # 1x1 project conv weight
    p["bpw1"] = nrm(ks[16], (1, out_ch), 0.05)
    p["s3"], p["b3"] = bn(ks[17], ks[18], ks[19], ks[20], out_ch)
    p["wsc"] = nrm(ks[21], (in_ch, out_ch))         # shortcut 1x1 conv (bias=True)
    p["bsc"] = nrm(ks[22], (1, out_ch), 0.05)
    return p


# ---------------------------------- main ------------------------------------ #

if __name__ == "__main__":
    key = jax.random.PRNGKey(0)
    kx, kp = jax.random.split(key)
    N, Cin, H, W = 2, 4, 16, 16
    Cout = 8

    x = jax.random.normal(kx, (N, Cin, H, W), jnp.float32)
    params = init_params(kp, Cin, Cout)
    ref = np.asarray(mbconv_ref(x, params))

    # Operand prep (BN/bias folding, masks) is hoisted: computed once, reused every call.

    # 1) All-f32 matmul operands: tight structural check of taps / masks / BN folds.
    #    (Tolerance is 5e-3 rather than 1e-5 only to stay robust to MXU f32 matmul-pass
    #     differences vs. the XLA reference.)
    ops_f32 = prepare_mbconv_operands(params, H, W, matmul_dtype=jnp.float32)
    out_f32 = jax.block_until_ready(mbconv_pallas(x, ops_f32))
    assert out_f32.shape == (N, Cout, H, W)
    np.testing.assert_allclose(np.asarray(out_f32), ref, atol=5e-3, rtol=5e-3)

    # 2) Performance configuration: bf16 MXU operands, f32 accumulation.
    ops_bf16 = prepare_mbconv_operands(params, H, W, matmul_dtype=jnp.bfloat16)
    out_bf16 = jax.block_until_ready(mbconv_pallas(x, ops_bf16))
    assert out_bf16.shape == (N, Cout, H, W)
    np.testing.assert_allclose(np.asarray(out_bf16), ref, atol=2e-2, rtol=2e-2)

    print("KERNEL_OK")
</pallas_src>

<mosaic_0001>
module attributes {stable_mosaic.version = 11 : i64} {
  func.func @mbconv_kernel(%arg0: i32, %arg1: memref<256x4xf32, #tpu.memory_space<vmem>>, %arg2: memref<4x16xf32, #tpu.memory_space<vmem>>, %arg3: memref<1x16xf32, #tpu.memory_space<vmem>>, %arg4: memref<9x16xf32, #tpu.memory_space<vmem>>, %arg5: memref<1x16xf32, #tpu.memory_space<vmem>>, %arg6: memref<256x9xf32, #tpu.memory_space<vmem>>, %arg7: memref<16x4xf32, #tpu.memory_space<vmem>>, %arg8: memref<1x4xf32, #tpu.memory_space<vmem>>, %arg9: memref<4x16xf32, #tpu.memory_space<vmem>>, %arg10: memref<1x16xf32, #tpu.memory_space<vmem>>, %arg11: memref<16x8xf32, #tpu.memory_space<vmem>>, %arg12: memref<4x8xf32, #tpu.memory_space<vmem>>, %arg13: memref<1x8xf32, #tpu.memory_space<vmem>>, %arg14: memref<256x8xf32, #tpu.memory_space<vmem>>) attributes {dimension_semantics = [#tpu.dimension_semantics<parallel>], iteration_bounds = array<i64: 2>, scalar_prefetch = 0 : i64, scratch_operands = 0 : i64, tpu.core_type = #tpu.core_type<tc>, window_params = [{transform_indices = @transform_0, window_bounds = array<i64: 256, 4>}, {pipeline_mode = #tpu.pipeline_mode<synchronous>, transform_indices = @transform_1, window_bounds = array<i64: 4, 16>}, {pipeline_mode = #tpu.pipeline_mode<synchronous>, transform_indices = @transform_2, window_bounds = array<i64: 1, 16>}, {pipeline_mode = #tpu.pipeline_mode<synchronous>, transform_indices = @transform_3, window_bounds = array<i64: 9, 16>}, {pipeline_mode = #tpu.pipeline_mode<synchronous>, transform_indices = @transform_4, window_bounds = array<i64: 1, 16>}, {pipeline_mode = #tpu.pipeline_mode<synchronous>, transform_indices = @transform_5, window_bounds = array<i64: 256, 9>}, {pipeline_mode = #tpu.pipeline_mode<synchronous>, transform_indices = @transform_6, window_bounds = array<i64: 16, 4>}, {pipeline_mode = #tpu.pipeline_mode<synchronous>, transform_indices = @transform_7, window_bounds = array<i64: 1, 4>}, {pipeline_mode = #tpu.pipeline_mode<synchronous>, transform_indices = @transform_8, window_bounds = array<i64: 4, 16>}, {pipeline_mode = #tpu.pipeline_mode<synchronous>, transform_indices = @transform_9, window_bounds = array<i64: 1, 16>}, {pipeline_mode = #tpu.pipeline_mode<synchronous>, transform_indices = @transform_10, window_bounds = array<i64: 16, 8>}, {pipeline_mode = #tpu.pipeline_mode<synchronous>, transform_indices = @transform_11, window_bounds = array<i64: 4, 8>}, {pipeline_mode = #tpu.pipeline_mode<synchronous>, transform_indices = @transform_12, window_bounds = array<i64: 1, 8>}, {transform_indices = @transform_13, window_bounds = array<i64: 256, 8>}]} {
    %c0 = arith.constant 0 : index
    %c0_0 = arith.constant 0 : index
    %0 = vector.load %arg1[%c0, %c0_0] : memref<256x4xf32, #tpu.memory_space<vmem>>, vector<256x4xf32>
    %c0_1 = arith.constant 0 : index
    %c0_2 = arith.constant 0 : index
    %1 = vector.load %arg2[%c0_1, %c0_2] : memref<4x16xf32, #tpu.memory_space<vmem>>, vector<4x16xf32>
    %cst = arith.constant dense<0.000000e+00> : vector<256x16xf32>
    %2 = tpu.matmul %0, %1, %cst {dimension_numbers = #tpu.dot_dimension_numbers<[1], [0], [0], [1], [0, 0, 1, 1], [], []>} : vector<256x4xf32>, vector<4x16xf32>, vector<256x16xf32> -> vector<256x16xf32>
    %c0_3 = arith.constant 0 : index
    %c0_4 = arith.constant 0 : index
    %3 = vector.load %arg3[%c0_3, %c0_4] : memref<1x16xf32, #tpu.memory_space<vmem>>, vector<1x16xf32>
    %4 = vector.broadcast %3 : vector<1x16xf32> to vector<256x16xf32>
    %5 = arith.addf %2, %4 : vector<256x16xf32>
    %cst_5 = arith.constant 0.000000e+00 : f32
    %cst_6 = arith.constant 6.000000e+00 : f32
    %6 = vector.broadcast %cst_5 : f32 to vector<256x16xf32>
    %7 = arith.maximumf %6, %5 : vector<256x16xf32>
    %8 = vector.broadcast %cst_6 : f32 to vector<256x16xf32>
    %9 = arith.minimumf %8, %7 : vector<256x16xf32>
    %c0_7 = arith.constant 0 : index
    %c0_8 = arith.constant 0 : index
    %10 = vector.load %arg4[%c0_7, %c0_8] : memref<9x16xf32, #tpu.memory_space<vmem>>, vector<9x16xf32>
    %c0_9 = arith.constant 0 : index
    %c0_10 = arith.constant 0 : index
    %11 = vector.load %arg6[%c0_9, %c0_10] : memref<256x9xf32, #tpu.memory_space<vmem>>, vector<256x9xf32>
    %12 = vector.extract_strided_slice %10 {offsets = [4, 0], sizes = [1, 16], strides = [1, 1]} : vector<9x16xf32> to vector<1x16xf32>
    %13 = vector.broadcast %12 : vector<1x16xf32> to vector<256x16xf32>
    %14 = arith.mulf %9, %13 : vector<256x16xf32>
    %c17_i32 = arith.constant 17 : i32
    %15 = tpu.dynamic_rotate %9 by %c17_i32 dim 0 : vector<256x16xf32>, i32 -> vector<256x16xf32>
    %16 = vector.extract_strided_slice %11 {offsets = [0, 0], sizes = [256, 1], strides = [1, 1]} : vector<256x9xf32> to vector<256x1xf32>
    %17 = vector.broadcast %16 : vector<256x1xf32> to vector<256x16xf32>
    %18 = arith.mulf %15, %17 : vector<256x16xf32>
    %19 = vector.extract_strided_slice %10 {offsets = [0, 0], sizes = [1, 16], strides = [1, 1]} : vector<9x16xf32> to vector<1x16xf32>
    %20 = vector.broadcast %19 : vector<1x16xf32> to vector<256x16xf32>
    %21 = arith.mulf %18, %20 : vector<256x16xf32>
    %22 = arith.addf %14, %21 : vector<256x16xf32>
    %c16_i32 = arith.constant 16 : i32
    %23 = tpu.dynamic_rotate %9 by %c16_i32 dim 0 : vector<256x16xf32>, i32 -> vector<256x16xf32>
    %24 = vector.extract_strided_slice %11 {offsets = [0, 1], sizes = [256, 1], strides = [1, 1]} : vector<256x9xf32> to vector<256x1xf32>
    %25 = vector.broadcast %24 : vector<256x1xf32> to vector<256x16xf32>
    %26 = arith.mulf %23, %25 : vector<256x16xf32>
    %27 = vector.extract_strided_slice %10 {offsets = [1, 0], sizes = [1, 16], strides = [1, 1]} : vector<9x16xf32> to vector<1x16xf32>
    %28 = vector.broadcast %27 : vector<1x16xf32> to vector<256x16xf32>
    %29 = arith.mulf %26, %28 : vector<256x16xf32>
    %30 = arith.addf %22, %29 : vector<256x16xf32>
    %c15_i32 = arith.constant 15 : i32
    %31 = tpu.dynamic_rotate %9 by %c15_i32 dim 0 : vector<256x16xf32>, i32 -> vector<256x16xf32>
    %32 = vector.extract_strided_slice %11 {offsets = [0, 2], sizes = [256, 1], strides = [1, 1]} : vector<256x9xf32> to vector<256x1xf32>
    %33 = vector.broadcast %32 : vector<256x1xf32> to vector<256x16xf32>
    %34 = arith.mulf %31, %33 : vector<256x16xf32>
    %35 = vector.extract_strided_slice %10 {offsets = [2, 0], sizes = [1, 16], strides = [1, 1]} : vector<9x16xf32> to vector<1x16xf32>
    %36 = vector.broadcast %35 : vector<1x16xf32> to vector<256x16xf32>
    %37 = arith.mulf %34, %36 : vector<256x16xf32>
    %38 = arith.addf %30, %37 : vector<256x16xf32>
    %c1_i32 = arith.constant 1 : i32
    %39 = tpu.dynamic_rotate %9 by %c1_i32 dim 0 : vector<256x16xf32>, i32 -> vector<256x16xf32>
    %40 = vector.extract_strided_slice %11 {offsets = [0, 3], sizes = [256, 1], strides = [1, 1]} : vector<256x9xf32> to vector<256x1xf32>
    %41 = vector.broadcast %40 : vector<256x1xf32> to vector<256x16xf32>
    %42 = arith.mulf %39, %41 : vector<256x16xf32>
    %43 = vector.extract_strided_slice %10 {offsets = [3, 0], sizes = [1, 16], strides = [1, 1]} : vector<9x16xf32> to vector<1x16xf32>
    %44 = vector.broadcast %43 : vector<1x16xf32> to vector<256x16xf32>
    %45 = arith.mulf %42, %44 : vector<256x16xf32>
    %46 = arith.addf %38, %45 : vector<256x16xf32>
    %c255_i32 = arith.constant 255 : i32
    %47 = tpu.dynamic_rotate %9 by %c255_i32 dim 0 : vector<256x16xf32>, i32 -> vector<256x16xf32>
    %48 = vector.extract_strided_slice %11 {offsets = [0, 5], sizes = [256, 1], strides = [1, 1]} : vector<256x9xf32> to vector<256x1xf32>
    %49 = vector.broadcast %48 : vector<256x1xf32> to vector<256x16xf32>
    %50 = arith.mulf %47, %49 : vector<256x16xf32>
    %51 = vector.extract_strided_slice %10 {offsets = [5, 0], sizes = [1, 16], strides = [1, 1]} : vector<9x16xf32> to vector<1x16xf32>
    %52 = vector.broadcast %51 : vector<1x16xf32> to vector<256x16xf32>
    %53 = arith.mulf %50, %52 : vector<256x16xf32>
    %54 = arith.addf %46, %53 : vector<256x16xf32>
    %c241_i32 = arith.constant 241 : i32
    %55 = tpu.dynamic_rotate %9 by %c241_i32 dim 0 : vector<256x16xf32>, i32 -> vector<256x16xf32>
    %56 = vector.extract_strided_slice %11 {offsets = [0, 6], sizes = [256, 1], strides = [1, 1]} : vector<256x9xf32> to vector<256x1xf32>
    %57 = vector.broadcast %56 : vector<256x1xf32> to vector<256x16xf32>
    %58 = arith.mulf %55, %57 : vector<256x16xf32>
    %59 = vector.extract_strided_slice %10 {offsets = [6, 0], sizes = [1, 16], strides = [1, 1]} : vector<9x16xf32> to vector<1x16xf32>
    %60 = vector.broadcast %59 : vector<1x16xf32> to vector<256x16xf32>
    %61 = arith.mulf %58, %60 : vector<256x16xf32>
    %62 = arith.addf %54, %61 : vector<256x16xf32>
    %c240_i32 = arith.constant 240 : i32
    %63 = tpu.dynamic_rotate %9 by %c240_i32 dim 0 : vector<256x16xf32>, i32 -> vector<256x16xf32>
    %64 = vector.extract_strided_slice %11 {offsets = [0, 7], sizes = [256, 1], strides = [1, 1]} : vector<256x9xf32> to vector<256x1xf32>
    %65 = vector.broadcast %64 : vector<256x1xf32> to vector<256x16xf32>
    %66 = arith.mulf %63, %65 : vector<256x16xf32>
    %67 = vector.extract_strided_slice %10 {offsets = [7, 0], sizes = [1, 16], strides = [1, 1]} : vector<9x16xf32> to vector<1x16xf32>
    %68 = vector.broadcast %67 : vector<1x16xf32> to vector<256x16xf32>
    %69 = arith.mulf %66, %68 : vector<256x16xf32>
    %70 = arith.addf %62, %69 : vector<256x16xf32>
    %c239_i32 = arith.constant 239 : i32
    %71 = tpu.dynamic_rotate %9 by %c239_i32 dim 0 : vector<256x16xf32>, i32 -> vector<256x16xf32>
    %72 = vector.extract_strided_slice %11 {offsets = [0, 8], sizes = [256, 1], strides = [1, 1]} : vector<256x9xf32> to vector<256x1xf32>
    %73 = vector.broadcast %72 : vector<256x1xf32> to vector<256x16xf32>
    %74 = arith.mulf %71, %73 : vector<256x16xf32>
    %75 = vector.extract_strided_slice %10 {offsets = [8, 0], sizes = [1, 16], strides = [1, 1]} : vector<9x16xf32> to vector<1x16xf32>
    %76 = vector.broadcast %75 : vector<1x16xf32> to vector<256x16xf32>
    %77 = arith.mulf %74, %76 : vector<256x16xf32>
    %78 = arith.addf %70, %77 : vector<256x16xf32>
    %c0_11 = arith.constant 0 : index
    %c0_12 = arith.constant 0 : index
    %79 = vector.load %arg5[%c0_11, %c0_12] : memref<1x16xf32, #tpu.memory_space<vmem>>, vector<1x16xf32>
    %80 = vector.broadcast %79 : vector<1x16xf32> to vector<256x16xf32>
    %81 = arith.addf %78, %80 : vector<256x16xf32>
    %cst_13 = arith.constant dense<0.000000e+00> : vector<16xf32>
    %82 = vector.multi_reduction <add>, %81, %cst_13 [0] : vector<256x16xf32> to vector<16xf32>
    %83 = vector.shape_cast %82 : vector<16xf32> to vector<1x16xf32>
    %c0_14 = arith.constant 0 : index
    %c0_15 = arith.constant 0 : index
    %84 = vector.load %arg7[%c0_14, %c0_15] : memref<16x4xf32, #tpu.memory_space<vmem>>, vector<16x4xf32>
    %cst_16 = arith.constant dense<0.000000e+00> : vector<1x4xf32>
    %85 = tpu.matmul %83, %84, %cst_16 {dimension_numbers = #tpu.dot_dimension_numbers<[1], [0], [0], [1], [0, 0, 1, 1], [], []>} : vector<1x16xf32>, vector<16x4xf32>, vector<1x4xf32> -> vector<1x4xf32>
    %c0_17 = arith.constant 0 : index
    %c0_18 = arith.constant 0 : index
    %86 = vector.load %arg8[%c0_17, %c0_18] : memref<1x4xf32, #tpu.memory_space<vmem>>, vector<1x4xf32>
    %87 = arith.addf %85, %86 : vector<1x4xf32>
    %cst_19 = arith.constant 0.000000e+00 : f32
    %cst_20 = arith.constant 6.000000e+00 : f32
    %88 = vector.broadcast %cst_19 : f32 to vector<1x4xf32>
    %89 = arith.maximumf %88, %87 : vector<1x4xf32>
    %90 = vector.broadcast %cst_20 : f32 to vector<1x4xf32>
    %91 = arith.minimumf %90, %89 : vector<1x4xf32>
    %c0_21 = arith.constant 0 : index
    %c0_22 = arith.constant 0 : index
    %92 = vector.load %arg9[%c0_21, %c0_22] : memref<4x16xf32, #tpu.memory_space<vmem>>, vector<4x16xf32>
    %cst_23 = arith.constant dense<0.000000e+00> : vector<1x16xf32>
    %93 = tpu.matmul %91, %92, %cst_23 {dimension_numbers = #tpu.dot_dimension_numbers<[1], [0], [0], [1], [0, 0, 1, 1], [], []>} : vector<1x4xf32>, vector<4x16xf32>, vector<1x16xf32> -> vector<1x16xf32>
    %c0_24 = arith.constant 0 : index
    %c0_25 = arith.constant 0 : index
    %94 = vector.load %arg10[%c0_24, %c0_25] : memref<1x16xf32, #tpu.memory_space<vmem>>, vector<1x16xf32>
    %95 = arith.addf %93, %94 : vector<1x16xf32>
    %cst_26 = arith.constant 0.000000e+00 : f32
    %96 = vector.broadcast %cst_26 : f32 to vector<1x16xf32>
    %97 = arith.subf %96, %95 : vector<1x16xf32>
    %98 = math.exp %97 : vector<1x16xf32>
    %cst_27 = arith.constant 1.000000e+00 : f32
    %99 = vector.broadcast %cst_27 : f32 to vector<1x16xf32>
    %100 = arith.addf %99, %98 : vector<1x16xf32>
    %cst_28 = arith.constant 1.000000e+00 : f32
    %101 = vector.broadcast %cst_28 : f32 to vector<1x16xf32>
    %102 = arith.divf %101, %100 : vector<1x16xf32>
    %103 = vector.broadcast %102 : vector<1x16xf32> to vector<256x16xf32>
    %104 = arith.mulf %81, %103 : vector<256x16xf32>
    %c0_29 = arith.constant 0 : index
    %c0_30 = arith.constant 0 : index
    %105 = vector.load %arg11[%c0_29, %c0_30] : memref<16x8xf32, #tpu.memory_space<vmem>>, vector<16x8xf32>
    %cst_31 = arith.constant dense<0.000000e+00> : vector<256x8xf32>
    %106 = tpu.matmul %104, %105, %cst_31 {dimension_numbers = #tpu.dot_dimension_numbers<[1], [0], [0], [1], [0, 0, 1, 1], [], []>} : vector<256x16xf32>, vector<16x8xf32>, vector<256x8xf32> -> vector<256x8xf32>
    %c0_32 = arith.constant 0 : index
    %c0_33 = arith.constant 0 : index
    %107 = vector.load %arg1[%c0_32, %c0_33] : memref<256x4xf32, #tpu.memory_space<vmem>>, vector<256x4xf32>
    %c0_34 = arith.constant 0 : index
    %c0_35 = arith.constant 0 : index
    %108 = vector.load %arg12[%c0_34, %c0_35] : memref<4x8xf32, #tpu.memory_space<vmem>>, vector<4x8xf32>
    %cst_36 = arith.constant dense<0.000000e+00> : vector<256x8xf32>
    %109 = tpu.matmul %107, %108, %cst_36 {dimension_numbers = #tpu.dot_dimension_numbers<[1], [0], [0], [1], [0, 0, 1, 1], [], []>} : vector<256x4xf32>, vector<4x8xf32>, vector<256x8xf32> -> vector<256x8xf32>
    %c0_37 = arith.constant 0 : index
    %c0_38 = arith.constant 0 : index
    %110 = vector.load %arg13[%c0_37, %c0_38] : memref<1x8xf32, #tpu.memory_space<vmem>>, vector<1x8xf32>
    %111 = vector.broadcast %110 : vector<1x8xf32> to vector<256x8xf32>
    %112 = arith.addf %106, %111 : vector<256x8xf32>
    %113 = arith.addf %112, %109 : vector<256x8xf32>
    %c0_39 = arith.constant 0 : index
    %c0_40 = arith.constant 0 : index
    %114 = vector.load %arg14[%c0_39, %c0_40] : memref<256x8xf32, #tpu.memory_space<vmem>>, vector<256x8xf32>
    tpu.vector_store %arg14[%c0_39, %c0_40], %113 {strides = array<i32>} : memref<256x8xf32, #tpu.memory_space<vmem>>, vector<256x8xf32>,
    return
  }
  func.func @transform_0(%arg0: i32) -> (i32, i32) {
    %c0_i32 = arith.constant 0 : i32
    %c0_i32_0 = arith.constant 0 : i32
    return %arg0, %c0_i32 : i32, i32
  }
  func.func @transform_1(%arg0: i32) -> (i32, i32) {
    %c0_i32 = arith.constant 0 : i32
    %c0_i32_0 = arith.constant 0 : i32
    %c0_i32_1 = arith.constant 0 : i32
    return %c0_i32, %c0_i32_0 : i32, i32
  }
  func.func @transform_2(%arg0: i32) -> (i32, i32) {
    %c0_i32 = arith.constant 0 : i32
    %c0_i32_0 = arith.constant 0 : i32
    %c0_i32_1 = arith.constant 0 : i32
    return %c0_i32, %c0_i32_0 : i32, i32
  }
  func.func @transform_3(%arg0: i32) -> (i32, i32) {
    %c0_i32 = arith.constant 0 : i32
    %c0_i32_0 = arith.constant 0 : i32
    %c0_i32_1 = arith.constant 0 : i32
    return %c0_i32, %c0_i32_0 : i32, i32
  }
  func.func @transform_4(%arg0: i32) -> (i32, i32) {
    %c0_i32 = arith.constant 0 : i32
    %c0_i32_0 = arith.constant 0 : i32
    %c0_i32_1 = arith.constant 0 : i32
    return %c0_i32, %c0_i32_0 : i32, i32
  }
  func.func @transform_5(%arg0: i32) -> (i32, i32) {
    %c0_i32 = arith.constant 0 : i32
    %c0_i32_0 = arith.constant 0 : i32
    %c0_i32_1 = arith.constant 0 : i32
    return %c0_i32, %c0_i32_0 : i32, i32
  }
  func.func @transform_6(%arg0: i32) -> (i32, i32) {
    %c0_i32 = arith.constant 0 : i32
    %c0_i32_0 = arith.constant 0 : i32
    %c0_i32_1 = arith.constant 0 : i32
    return %c0_i32, %c0_i32_0 : i32, i32
  }
  func.func @transform_7(%arg0: i32) -> (i32, i32) {
    %c0_i32 = arith.constant 0 : i32
    %c0_i32_0 = arith.constant 0 : i32
    %c0_i32_1 = arith.constant 0 : i32
    return %c0_i32, %c0_i32_0 : i32, i32
  }
  func.func @transform_8(%arg0: i32) -> (i32, i32) {
    %c0_i32 = arith.constant 0 : i32
    %c0_i32_0 = arith.constant 0 : i32
    %c0_i32_1 = arith.constant 0 : i32
    return %c0_i32, %c0_i32_0 : i32, i32
  }
  func.func @transform_9(%arg0: i32) -> (i32, i32) {
    %c0_i32 = arith.constant 0 : i32
    %c0_i32_0 = arith.constant 0 : i32
    %c0_i32_1 = arith.constant 0 : i32
    return %c0_i32, %c0_i32_0 : i32, i32
  }
  func.func @transform_10(%arg0: i32) -> (i32, i32) {
    %c0_i32 = arith.constant 0 : i32
    %c0_i32_0 = arith.constant 0 : i32
    %c0_i32_1 = arith.constant 0 : i32
    return %c0_i32, %c0_i32_0 : i32, i32
  }
  func.func @transform_11(%arg0: i32) -> (i32, i32) {
    %c0_i32 = arith.constant 0 : i32
    %c0_i32_0 = arith.constant 0 : i32
    %c0_i32_1 = arith.constant 0 : i32
    return %c0_i32, %c0_i32_0 : i32, i32
  }
  func.func @transform_12(%arg0: i32) -> (i32, i32) {
    %c0_i32 = arith.constant 0 : i32
    %c0_i32_0 = arith.constant 0 : i32
    %c0_i32_1 = arith.constant 0 : i32
    return %c0_i32, %c0_i32_0 : i32, i32
  }
  func.func @transform_13(%arg0: i32) -> (i32, i32) {
    %c0_i32 = arith.constant 0 : i32
    %c0_i32_0 = arith.constant 0 : i32
    return %arg0, %c0_i32 : i32, i32
  }
}

</mosaic_0001>

<bundles_post_ra>
// kernel: mbconv_pallas.1
= control target key start
LH: loop header
LB: loop body
LE: loop exit
PB: predicated region body
PF: predicated region fallthrough
CT: control target
= control target key end

     0   :  { %s4716_s25 = smov 0   ;;  %s8006_s0 = inlined_call_operand.vmem [shape: f32[512,4], index: 0, kind: input, shape index: {}]   ;;  %s8007_s1 = inlined_call_operand.vmem [shape: f32[4,16], index: 1, kind: input, shape index: {}]   ;;  %s8008_s2 = inlined_call_operand.vmem [shape: f32[1,16], index: 2, kind: input, shape index: {}]   ;;  %s8009_s3 = inlined_call_operand.vmem [shape: f32[9,16], index: 3, kind: input, shape index: {}]   ;;  %s8010_s4 = inlined_call_operand.vmem [shape: f32[1,16], index: 4, kind: input, shape index: {}]   ;;  %s8011_s5 = inlined_call_operand.vmem [shape: f32[256,9], index: 5, kind: input, shape index: {}]   ;;  %s8012_s6 = inlined_call_operand.vmem [shape: f32[16,4], index: 6, kind: input, shape index: {}]   ;;  %s8013_s7 = inlined_call_operand.vmem [shape: f32[1,4], index: 7, kind: input, shape index: {}]   ;;  %s8014_s8 = inlined_call_operand.vmem [shape: f32[4,16], index: 8, kind: input, shape index: {}]   ;;  %s8015_s9 = inlined_call_operand.vmem [shape: f32[1,16], index: 9, kind: input, shape index: {}]   ;;  %s8016_s10 = inlined_call_operand.vmem [shape: f32[16,8], index: 10, kind: input, shape index: {}]   ;;  %s8017_s11 = inlined_call_operand.vmem [shape: f32[4,8], index: 11, kind: input, shape index: {}]   ;;  %s8018_s12 = inlined_call_operand.vmem [shape: f32[1,8], index: 12, kind: input, shape index: {}]   ;;  %s8019_s13 = inlined_call_operand.vmem [shape: f32[512,8], index: 13, kind: output, shape index: {}]  }
   0x1 LB: > { %s3919_s26 = sadd.s32 4294967295, %s4633_s25   ;;  %p3923_p0 = scmp.ge.s32.totalorder %s4633_s25, 1  ;;  %s4633_s25 = sphi %s4716_s25, %s23_s25  }
   0x2   : > { %p388_p1 = scmp.lt.s32.totalorder %s4633_s25, 3 }
   0x4   : > { %p389_p2 = pnand %p3923_p0, %p388_p1 }
   0x6   : > { %392 = sbr.rel (%p389_p2) target bundleno = 1718 (0x6b6), region = 72 }
   0xd   : > { %v4727_v0 = vld [vmem:[%s8011_s5 + $0x10] sm:$0xff]  ;;  %v4732_v1 = vld [vmem:[%s8011_s5] sm:$0xff]  ;;  %vm581_vm0 = vcmask 1043456   ;;  %s3924_s14 = sshll.u32 %s3919_s26, 5  ;;  %v8020_v2 = vmov 0   ;;  %v4744_v4 = vld [vmem:[%s8011_s5 + $0x18] sm:$0xff] }
   0xe   : > { %4397 = vset.pattern.permute.xlu1 %v8020_v2  ;;  %4396 = vset.pattern.permute.xlu0 %v8020_v2  ;;  %v476_v3 = vld [vmem:[%s8007_s1] sm:$0xf]  ;;  %p433_p3 = scmp.lt.s32.totalorder %s3924_s14, 63  ;;  %v4749_v5 = vld [vmem:[%s8011_s5 + $0x8] sm:$0xff]  ;;  %vm484_vm1 = vcmask 31744   ;;  %v4790_v12 = vld [vmem:[%s8011_s5 + $0x38] sm:$0xff] }
   0xf   : > { %1023 = vperm.xlu1 %4397, %v4727_v0   ;;  %1013 = vperm.xlu0 %4396, %v4732_v1   ;;  %v4768_v6 = vld [vmem:[%s8011_s5 + $0x28] sm:$0xff]  ;;  %v4777_v9 = vld [vmem:[%s8011_s5 + $0x20] sm:$0xff]  ;;  %v4795_v13 = vld [vmem:[%s8011_s5 + $0x30] sm:$0xff]  ;;  %v8027_v62 = vmov 1   ;;  %vm4644_vm4 = vmmov 0   ;;  %vm2971_vm5 = vcmask 130048  }
  0x10   : > { %4140 = vmatprep.subr.msk.mxu0 %vm581_vm0, %v476_v3  ;;  %s8861_s14 = smov (!%p433_p3, %s3924_s14), 63  ;;  %v4806_v16 = vld [vmem:[%s8011_s5 + $0x48] sm:$0xff]  ;;  %v4811_v17 = vld [vmem:[%s8011_s5 + $0x40] sm:$0xff]  ;;  %v4822_v20 = vld [vmem:[%s8011_s5 + $0x58] sm:$0xff]  ;;  %vm3830_vm6 = vcmask 64512  }
  0x11   : > { %4141 = vmatpush3.msk.msra.mxu0 %vm581_vm0, %v476_v3  ;;  %s3925_s21 = sshll.u32 %s8861_s14, 3  ;;  %v4827_v21 = vld [vmem:[%s8011_s5 + $0x50] sm:$0xff]  ;;  %v4838_v24 = vld [vmem:[%s8011_s5 + $0x68] sm:$0xff]  ;;  %v4843_v25 = vld [vmem:[%s8011_s5 + $0x60] sm:$0xff] }
  0x12   : > { %s4763_s24 = scalar_lea.vmem %s8006_s0, %s3925_s21  ;;  %v4854_v28 = vld [vmem:[%s8011_s5 + $0x78] sm:$0xff]  ;;  %v4859_v29 = vld [vmem:[%s8011_s5 + $0x70] sm:$0xff]  ;;  %v4870_v32 = vld [vmem:[%s8011_s5 + $0x88] sm:$0xff]  ;;  %s7904_s29 = scalar_lea.vmem %s8019_s13, %s3925_s21 }
  0x13   : > { %1028 = vperm.xlu1 %4397, %v4744_v4   ;;  %1018 = vperm.xlu0 %4396, %v4749_v5   ;;  %v4771_v7 = vld [vmem:[%s4763_s24] sm:$0xff]  ;;  %v445_v8 = vld [vmem:[%s4763_s24 + $0x8] sm:$0xff]  ;;  %v446_v10 = vld [vmem:[%s4763_s24 + $0x10] sm:$0xff] }
  0x14   : > { %4142 = vmatprep.mubr.msk.f32.mxu0 %vm484_vm1, %v4771_v7  ;;  %v447_v11 = vld [vmem:[%s4763_s24 + $0x18] sm:$0xff]  ;;  %v448_v14 = vld [vmem:[%s4763_s24 + $0x20] sm:$0xff]  ;;  %v449_v15 = vld [vmem:[%s4763_s24 + $0x28] sm:$0xff] }
  0x15   : > { %4143 = vmatmul.mubr.msk.f32.vlgmr.msra.gmra.mrb[0].mxu0 %vm484_vm1, %v445_v8  ;;  %v450_v18 = vld [vmem:[%s4763_s24 + $0x30] sm:$0xff]  ;;  %v451_v19 = vld [vmem:[%s4763_s24 + $0x38] sm:$0xff]  ;;  %v452_v22 = vld [vmem:[%s4763_s24 + $0x40] sm:$0xff]  ;;  %v8021_v8 = vmov 7  }
  0x16   : > { %4145 = vmatprep.mubr.msk.f32.mxu0 %vm484_vm1, %v446_v10  ;;  %v453_v23 = vld [vmem:[%s4763_s24 + $0x48] sm:$0xff]  ;;  %v454_v26 = vld [vmem:[%s4763_s24 + $0x50] sm:$0xff]  ;;  %v455_v27 = vld [vmem:[%s4763_s24 + $0x58] sm:$0xff] }
  0x17   : > { %1038 = vperm.xlu1 %4397, %v4768_v6   ;;  %1033 = vperm.xlu0 %4396, %v4777_v9   ;;  %v456_v30 = vld [vmem:[%s4763_s24 + $0x60] sm:$0xff]  ;;  %v457_v31 = vld [vmem:[%s4763_s24 + $0x68] sm:$0xff]  ;;  %v458_v34 = vld [vmem:[%s4763_s24 + $0x70] sm:$0xff] }
  0x18   : > { %v4875_v33 = vld [vmem:[%s8011_s5 + $0x80] sm:$0xff]  ;;  %v459_v35 = vld [vmem:[%s4763_s24 + $0x78] sm:$0xff]  ;;  %v4891_v37 = vld [vmem:[%s8011_s5 + $0x90] sm:$0xff] }
  0x19   : > { %4146 = vmatmul.mubr.msk.f32.gmra.mrb[2].mxu0 %vm484_vm1, %v447_v11  ;;  %v4886_v36 = vld [vmem:[%s8011_s5 + $0x98] sm:$0xff]  ;;  %v460_v38 = vld [vmem:[%s4763_s24 + $0x80] sm:$0xff]  ;;  %v461_v39 = vld [vmem:[%s4763_s24 + $0x88] sm:$0xff]  ;;  %v8023_v11 = vmov 2  }
  0x1a   : > { %4148 = vmatprep.mubr.msk.f32.mxu0 %vm484_vm1, %v448_v14  ;;  %v4902_v40 = vld [vmem:[%s8011_s5 + $0xa8] sm:$0xff]  ;;  %v4907_v41 = vld [vmem:[%s8011_s5 + $0xa0] sm:$0xff]  ;;  %v462_v42 = vld [vmem:[%s4763_s24 + $0x90] sm:$0xff]  ;;  %v8025_v14 = vmov 5  }
  0x1b   : > { %1048 = vperm.xlu1 %4397, %v4790_v12   ;;  %1043 = vperm.xlu0 %4396, %v4795_v13   ;;  %v463_v43 = vld [vmem:[%s4763_s24 + $0x98] sm:$0xff]  ;;  %v4923_v45 = vld [vmem:[%s8011_s5 + $0xb0] sm:$0xff]  ;;  %v464_v46 = vld [vmem:[%s4763_s24 + $0xa0] sm:$0xff] }
  0x1c   : > { %v4918_v44 = vld [vmem:[%s8011_s5 + $0xb8] sm:$0xff]  ;;  %v465_v47 = vld [vmem:[%s4763_s24 + $0xa8] sm:$0xff]  ;;  %v4939_v49 = vld [vmem:[%s8011_s5 + $0xc0] sm:$0xff] }
  0x1d   : > { %4149 = vmatmul.mubr.msk.f32.gmra.mrb[4].mxu0 %vm484_vm1, %v449_v15  ;;  %v4934_v48 = vld [vmem:[%s8011_s5 + $0xc8] sm:$0xff]  ;;  %v466_v50 = vld [vmem:[%s4763_s24 + $0xb0] sm:$0xff]  ;;  %v467_v51 = vld [vmem:[%s4763_s24 + $0xb8] sm:$0xff]  ;;  %v8029_v15 = vmov 6  }
  0x1e   : > { %4151 = vmatprep.mubr.msk.f32.mxu0 %vm484_vm1, %v450_v18  ;;  %v4950_v52 = vld [vmem:[%s8011_s5 + $0xd8] sm:$0xff]  ;;  %v4955_v53 = vld [vmem:[%s8011_s5 + $0xd0] sm:$0xff]  ;;  %v468_v54 = vld [vmem:[%s4763_s24 + $0xc0] sm:$0xff] }
  0x1f   : > { %1058 = vperm.xlu1 %4397, %v4806_v16   ;;  %1053 = vperm.xlu0 %4396, %v4811_v17   ;;  %v469_v55 = vld [vmem:[%s4763_s24 + $0xc8] sm:$0xff]  ;;  %v4971_v57 = vld [vmem:[%s8011_s5 + $0xe0] sm:$0xff]  ;;  %v470_v58 = vld [vmem:[%s4763_s24 + $0xd0] sm:$0xff] }
  0x20   : > { %v4966_v56 = vld [vmem:[%s8011_s5 + $0xe8] sm:$0xff]  ;;  %v471_v59 = vld [vmem:[%s4763_s24 + $0xd8] sm:$0xff]  ;;  %v4982_v60 = vld [vmem:[%s8011_s5 + $0xf0] sm:$0xff] }
  0x21   : > { %4152 = vmatmul.mubr.msk.f32.gmra.mrb[6].mxu0 %vm484_vm1, %v451_v19  ;;  %8250 = vst [vmem:[#allocation2_spill] sm:$0xff] %v4982_v60  ;;  %v472_v61 = vld [vmem:[%s4763_s24 + $0xe0] sm:$0xff]  ;;  %v473_v63 = vld [vmem:[%s4763_s24 + $0xe8] sm:$0xff]  ;;  %v474_v3 = vld [vmem:[%s4763_s24 + $0xf0] sm:$0xff] }
  0x22   : > { %4154 = vmatprep.mubr.msk.f32.mxu0 %vm484_vm1, %v452_v22  ;;  %v475_v10 = vld [vmem:[%s4763_s24 + $0xf8] sm:$0xff] }
  0x23   : > { %1068 = vperm.xlu1 %4397, %v4822_v20   ;;  %1063 = vperm.xlu0 %4396, %v4827_v21  }
  0x25   : > { %4155 = vmatmul.mubr.msk.f32.gmra.mrb[8].mxu0 %vm484_vm1, %v453_v23 }
  0x26   : > { %4157 = vmatprep.mubr.msk.f32.mxu0 %vm484_vm1, %v454_v26 }
  0x27   : > { %1078 = vperm.xlu1 %4397, %v4838_v24   ;;  %1073 = vperm.xlu0 %4396, %v4843_v25  }
  0x29   : > { %4158 = vmatmul.mubr.msk.f32.gmra.mrb[10].mxu0 %vm484_vm1, %v455_v27 }
  0x2a   : > { %4160 = vmatprep.mubr.msk.f32.mxu0 %vm484_vm1, %v456_v30 }
  0x2b   : > { %1088 = vperm.xlu1 %4397, %v4854_v28   ;;  %1083 = vperm.xlu0 %4396, %v4859_v29  }
  0x2d   : > { %4161 = vmatmul.mubr.msk.f32.gmra.mrb[12].mxu0 %vm484_vm1, %v457_v31 }
  0x2e   : > { %4163 = vmatprep.mubr.msk.f32.mxu0 %vm484_vm1, %v458_v34 }
  0x2f   : > { %1098 = vperm.xlu1 %4397, %v4870_v32   ;;  %1093 = vperm.xlu0 %4396, %v4875_v33  }
  0x31   : > { %4164 = vmatmul.mubr.msk.f32.gmra.mrb[14].mxu0 %vm484_vm1, %v459_v35 }
  0x32   : > { %4166 = vmatprep.mubr.msk.f32.mxu0 %vm484_vm1, %v460_v38 }
  0x33   : > { %1108 = vperm.xlu1 %4397, %v4886_v36   ;;  %1103 = vperm.xlu0 %4396, %v4891_v37  }
  0x35   : > { %4167 = vmatmul.mubr.msk.f32.gmra.mrb[16].mxu0 %vm484_vm1, %v461_v39 }
  0x36   : > { %4169 = vmatprep.mubr.msk.f32.mxu0 %vm484_vm1, %v462_v42 }
  0x37   : > { %1118 = vperm.xlu1 %4397, %v4902_v40   ;;  %1113 = vperm.xlu0 %4396, %v4907_v41  }
  0x39   : > { %4170 = vmatmul.mubr.msk.f32.gmra.mrb[18].mxu0 %vm484_vm1, %v463_v43 }
  0x3a   : > { %4172 = vmatprep.mubr.msk.f32.mxu0 %vm484_vm1, %v464_v46 }
  0x3b   : > { %1128 = vperm.xlu1 %4397, %v4918_v44   ;;  %1123 = vperm.xlu0 %4396, %v4923_v45  }
  0x3d   : > { %4173 = vmatmul.mubr.msk.f32.gmra.mrb[20].mxu0 %vm484_vm1, %v465_v47 }
  0x3e   : > { %4175 = vmatprep.mubr.msk.f32.mxu0 %vm484_vm1, %v466_v50 }
  0x3f   : > { %1138 = vperm.xlu1 %4397, %v4934_v48   ;;  %1133 = vperm.xlu0 %4396, %v4939_v49  }
  0x41   : > { %4176 = vmatmul.mubr.msk.f32.gmra.mrb[22].mxu0 %vm484_vm1, %v467_v51 }
  0x42   : > { %4178 = vmatprep.mubr.msk.f32.mxu0 %vm484_vm1, %v468_v54 }
  0x43   : > { %1148 = vperm.xlu1 %4397, %v4950_v52   ;;  %1143 = vperm.xlu0 %4396, %v4955_v53  }
  0x45   : > { %4179 = vmatmul.mubr.msk.f32.gmra.mrb[24].mxu0 %vm484_vm1, %v469_v55 }
  0x46   : > { %4181 = vmatprep.mubr.msk.f32.mxu0 %vm484_vm1, %v470_v58 }
  0x47   : > { %1158 = vperm.xlu1 %4397, %v4966_v56   ;;  %1153 = vperm.xlu0 %4396, %v4971_v57  }
  0x49   : > { %4182 = vmatmul.mubr.msk.f32.gmra.mrb[26].mxu0 %vm484_vm1, %v471_v59 }
  0x4a   : > { %4184 = vmatprep.mubr.msk.f32.mxu0 %vm484_vm1, %v472_v61 }
  0x4b   : > { %4398 = vset.pattern.permute.xlu1 %v8027_v62  ;;  %1163 = vperm.xlu0 %4396, %v4982_v60  }
  0x4c   : > { %1272 = vperm.xlu1 %4398, %v4732_v1  }
  0x4d   : > { %4185 = vmatmul.mubr.msk.f32.gmra.mrb[28].mxu0 %vm484_vm1, %v473_v63 }
  0x4e   : > { %4187 = vmatprep.mubr.msk.f32.mxu0 %vm484_vm1, %v474_v3 }
  0x4f   : > { %4414 = vset.pattern.permute.xlu0 %v8021_v8 }
  0x50   : > { %1280 = vperm.xlu1 %4398, %v4727_v0   ;;  %2477 = vperm.xlu0 %4414, %v4732_v1  }
  0x51   : > { %4188 = vmatmul.mubr.msk.f32.gmra.mrb[30].mxu0 %vm484_vm1, %v475_v10 }
  0x52   : > { %4204 = vmatprep.mubr.msk.f32.mxu0 %vm484_vm1, %v4771_v7  ;;  %v8031_v7 = vmov 3  }
  0x54   : > { %4399 = vset.pattern.permute.xlu1 %v8023_v11  ;;  %2489 = vperm.xlu0 %4414, %v4744_v4  }
  0x55   : > { %1565 = vperm.xlu1 %4399, %v4732_v1  }
  0x58   : > { %4425 = vset.pattern.permute.xlu0 %v8023_v11 }
  0x59   : > { %4400 = vset.pattern.permute.xlu1 %v8027_v62  ;;  %1569 = vperm.xlu0 %4425, %v4749_v5  }
  0x5a   : > { %1284 = vperm.xlu1 %4400, %v4744_v4  }
  0x5d   : > { %1577 = vperm.xlu0 %4425, %v4744_v4  }
  0x5e   : > { %4401 = vset.pattern.permute.xlu1 %v8023_v11 }
  0x5f   : > { %1573 = vperm.xlu1 %4401, %v4727_v0  }
  0x61   : > { %1589 = vperm.xlu0 %4425, %v4795_v13  }
  0x63   : > { %4402 = vset.pattern.permute.xlu1 %v8031_v7 }
  0x64   : > { %1797 = vperm.xlu1 %4402, %v4749_v5  }
  0x65   : > { %1597 = vperm.xlu0 %4425, %v4811_v17  }
  0x68   : > { %4403 = vset.pattern.permute.xlu1 %v8027_v62 }
  0x69   : > { %1288 = vperm.xlu1 %4403, %v4777_v9   ;;  %1609 = vperm.xlu0 %4425, %v4822_v20  }
  0x6d   : > { %4404 = vset.pattern.permute.xlu1 %v8031_v7  ;;  %1621 = vperm.xlu0 %4425, %v4859_v29  }
  0x6e   : > { %1801 = vperm.xlu1 %4404, %v4727_v0  }
  0x71   : > { %1633 = vperm.xlu0 %4425, %v4870_v32  }
  0x72   : > { %4405 = vset.pattern.permute.xlu1 %v8025_v14 }
  0x73   : > { %2021 = vperm.xlu1 %4405, %v4732_v1  }
  0x75   : > { %1645 = vperm.xlu0 %4425, %v4907_v41  }
  0x77   : > { %4406 = vset.pattern.permute.xlu1 %v8027_v62 }
  0x78   : > { %1292 = vperm.xlu1 %4406, %v4768_v6  }
  0x79   : > { %1657 = vperm.xlu0 %4425, %v4918_v44  }
  0x7c   : > { %4407 = vset.pattern.permute.xlu1 %v8023_v11 }
  0x7d   : > { %1581 = vperm.xlu1 %4407, %v4777_v9   ;;  %1669 = vperm.xlu0 %4425, %v4955_v53   ;;  %v8033_v53 = vmov 8  }
  0x81   : > { %4408 = vset.pattern.permute.xlu1 %v8025_v14  ;;  %4512 = vset.pattern.permute.xlu0 %v8029_v15 }
  0x82   : > { %2029 = vperm.xlu1 %4408, %v4727_v0   ;;  %2253 = vperm.xlu0 %4512, %v4749_v5  }
  0x86   : > { %4409 = vset.pattern.permute.xlu1 %v8029_v15  ;;  %2261 = vperm.xlu0 %4512, %v4744_v4  }
  0x87   : > { %2249 = vperm.xlu1 %4409, %v4732_v1  }
  0x8a   : > { %2269 = vperm.xlu0 %4512, %v4768_v6  }
  0x8b   : > { %4410 = vset.pattern.permute.xlu1 %v8027_v62 }
  0x8c   : > { %1296 = vperm.xlu1 %4410, %v4795_v13  }
  0x8e   : > { %v5041_v18 = vpop.permute.xlu1 %1023  ;;  %2281 = vperm.xlu0 %4512, %v4811_v17   ;;  %v5044_v19 = vpop.permute.xlu0 %1013 }
  0x8f   : > { %8251 = vst [vmem:[#allocation3_spill] sm:$0xff] %v5041_v18  ;;  %8252 = vst [vmem:[#allocation4_spill] sm:$0xff] %v5044_v19 }
  0x90   : > { %4411 = vset.pattern.permute.xlu1 %v8023_v11 }
  0x91   : > { %1585 = vperm.xlu1 %4411, %v4768_v6  }
  0x92   : > { %v5048_v22 = vpop.permute.xlu1 %1028  ;;  %2293 = vperm.xlu0 %4512, %v4822_v20   ;;  %v5051_v23 = vpop.permute.xlu0 %1018 }
  0x93   : > { %8253 = vst [vmem:[#allocation5_spill] sm:$0xff] %v5048_v22  ;;  %8254 = vst [vmem:[#allocation6_spill] sm:$0xff] %v5051_v23 }
  0x95   : > { %4412 = vset.pattern.permute.xlu1 %v8025_v14 }
  0x96   : > { %v5054_v26 = vpop.permute.xlu1 %1038  ;;  %2033 = vperm.xlu1 %4412, %v4744_v4   ;;  %2305 = vperm.xlu0 %4512, %v4859_v29   ;;  %v5058_v27 = vpop.permute.xlu0 %1033 }
  0x9a   : > { %v5060_v30 = vpop.permute.xlu1 %1048  ;;  %4413 = vset.pattern.permute.xlu1 %v8029_v15  ;;  %2317 = vperm.xlu0 %4512, %v4870_v32   ;;  %v5064_v31 = vpop.permute.xlu0 %1043 }
  0x9b   : > { %2257 = vperm.xlu1 %4413, %v4727_v0  }
  0x9e   : > { %v5067_v34 = vpop.permute.xlu1 %1058  ;;  %2329 = vperm.xlu0 %4512, %v4907_v41   ;;  %v5070_v35 = vpop.permute.xlu0 %1053 }
  0x9f   : > { %4415 = vset.pattern.permute.xlu1 %v8021_v8 }
  0xa0   : > { %2481 = vperm.xlu1 %4415, %v4749_v5  }
  0xa2   : > { %v5074_v29 = vpop.permute.xlu1 %1068  ;;  %2341 = vperm.xlu0 %4512, %v4918_v44   ;;  %v5077_v38 = vpop.permute.xlu0 %1063 }
  0xa3   : > { %8255 = vst [vmem:[#allocation7_spill] sm:$0xff] %v5074_v29  ;;  %8256 = vst [vmem:[#allocation8_spill] sm:$0xff] %v5077_v38 }
  0xa4   : > { %4416 = vset.pattern.permute.xlu1 %v8027_v62 }
  0xa5   : > { %1300 = vperm.xlu1 %4416, %v4790_v12  }
  0xa6   : > { %v5081_v32 = vpop.permute.xlu1 %1078  ;;  %4515 = vset.pattern.permute.xlu0 %v8027_v62  ;;  %v5084_v39 = vpop.permute.xlu0 %1073 }
  0xa7   : > { %8257 = vst [vmem:[#allocation9_spill] sm:$0xff] %v5081_v32  ;;  %8258 = vst [vmem:[#allocation10_spill] sm:$0xff] %v5084_v39  ;;  %1276 = vperm.xlu0 %4515, %v4749_v5  }
  0xa9   : > { %4417 = vset.pattern.permute.xlu1 %v8031_v7 }
  0xaa   : > { %v5088_v41 = vpop.permute.xlu1 %1088  ;;  %1813 = vperm.xlu1 %4417, %v4768_v6   ;;  %v5091_v42 = vpop.permute.xlu0 %1083 }
  0xab   : > { %8259 = vst [vmem:[#allocation11_spill] sm:$0xff] %v5088_v41  ;;  %8260 = vst [vmem:[#allocation12_spill] sm:$0xff] %v5091_v42  ;;  %1312 = vperm.xlu0 %4515, %v4827_v21  }
  0xae   : > { %v5094_v43 = vpop.permute.xlu1 %1098  ;;  %4418 = vset.pattern.permute.xlu1 %v8025_v14  ;;  %v5097_v44 = vpop.permute.xlu0 %1093 }
  0xaf   : > { %8261 = vst [vmem:[#allocation13_spill] sm:$0xff] %v5094_v43  ;;  %8262 = vst [vmem:[#allocation14_spill] sm:$0xff] %v5097_v44  ;;  %2037 = vperm.xlu1 %4418, %v4777_v9   ;;  %1324 = vperm.xlu0 %4515, %v4838_v24  }
  0xb2   : > { %v5101_v46 = vpop.permute.xlu1 %1108  ;;  %v5103_v47 = vpop.permute.xlu0 %1103 }
  0xb3   : > { %8263 = vst [vmem:[#allocation15_spill] sm:$0xff] %v5101_v46  ;;  %8264 = vst [vmem:[#allocation16_spill] sm:$0xff] %v5103_v47  ;;  %4419 = vset.pattern.permute.xlu1 %v8021_v8  ;;  %1336 = vperm.xlu0 %4515, %v4875_v33   ;;  %v5193_v47 = vld [vmem:[%s8008_s2] ss:$0 sm:$0xff]  ;;  %v8293_v46 = vmov 2  }
  0xb4   : > { %2485 = vperm.xlu1 %4419, %v4727_v0  }
  0xb6   : > { %v5108_v50 = vpop.permute.xlu1 %1118  ;;  %v5110_v51 = vpop.permute.xlu0 %1113 }
  0xb7   : > { %8265 = vst [vmem:[#allocation17_spill] sm:$0xff] %v5108_v50  ;;  %8266 = vst [vmem:[#allocation18_spill] sm:$0xff] %v5110_v51  ;;  %1348 = vperm.xlu0 %4515, %v4886_v36  }
  0xb8   : > { %4420 = vset.pattern.permute.xlu1 %v8033_v53 }
  0xb9   : > { %2705 = vperm.xlu1 %4420, %v4732_v1  }
  0xba   : > { %v5115_v54 = vpop.permute.xlu1 %1128  ;;  %v5117_v55 = vpop.permute.xlu0 %1123 }
  0xbb   : > { %8267 = vst [vmem:[#allocation19_spill] sm:$0xff] %v5115_v54  ;;  %8268 = vst [vmem:[#allocation20_spill] sm:$0xff] %v5117_v55  ;;  %1360 = vperm.xlu0 %4515, %v4923_v45  }
  0xbd   : > { %4421 = vset.pattern.permute.xlu1 %v8027_v62 }
  0xbe   : > { %v5121_v58 = vpop.permute.xlu1 %1138  ;;  %1304 = vperm.xlu1 %4421, %v4811_v17   ;;  %v5124_v59 = vpop.permute.xlu0 %1133 }
  0xbf   : > { %8269 = vst [vmem:[#allocation21_spill] sm:$0xff] %v5121_v58  ;;  %8270 = vst [vmem:[#allocation22_spill] sm:$0xff] %v5124_v59  ;;  %1372 = vperm.xlu0 %4515, %v4934_v48   ;;  %v8288_v59 = vmov 7   ;;  %v908_v58 = vlaneseq }
  0xc2   : > { %v5127_v61 = vpop.permute.xlu1 %1148  ;;  %4422 = vset.pattern.permute.xlu1 %v8023_v11  ;;  %v5130_v63 = vpop.permute.xlu0 %1143 }
  0xc3   : > { %8271 = vst [vmem:[#allocation23_spill] sm:$0xff] %v5127_v61  ;;  %8272 = vst [vmem:[#allocation24_spill] sm:$0xff] %v5130_v63  ;;  %1593 = vperm.xlu1 %4422, %v4790_v12   ;;  %1384 = vperm.xlu0 %4515, %v4971_v57  }
  0xc6   : > { %v5134_v3 = vpop.permute.xlu1 %1158  ;;  %v5136_v10 = vpop.permute.xlu0 %1153 }
  0xc7   : > { %8273 = vst [vmem:[#allocation25_spill] sm:$0xff] %v5134_v3  ;;  %8274 = vst [vmem:[#allocation26_spill] sm:$0xff] %v5136_v10  ;;  %4423 = vset.pattern.permute.xlu1 %v8025_v14  ;;  %1392 = vperm.xlu0 %4515, %v4982_v60   ;;  %v8283_v3 = vmov 3  }
  0xc8   : > { %2041 = vperm.xlu1 %4423, %v4768_v6  }
  0xca   : > { %v5141_v2 = vpop.permute.xlu0 %1163 }
  0xcb   : > { %8275 = vst [vmem:[#allocation27_spill] sm:$0xff] %v5141_v2  ;;  %v5143_v8 = vpop.permute.xlu1 %1272  ;;  %4528 = vset.pattern.permute.xlu0 %v8031_v7  ;;  %v8285_v2 = vmov 5  }
  0xcc   : > { %8276 = vst [vmem:[#allocation28_spill] sm:$0xff] %v5143_v8  ;;  %4424 = vset.pattern.permute.xlu1 %v8029_v15  ;;  %1793 = vperm.xlu0 %4528, %v4732_v1   ;;  %v8280_v15 = vmov 1  }
  0xcd   : > { %2265 = vperm.xlu1 %4424, %v4777_v9  }
  0xcf   : > { %v5149_v57 = vpop.permute.xlu1 %1280  ;;  %v5151_v11 = vpop.permute.xlu0 %2477 }
  0xd0   : > { %8277 = vst [vmem:[#allocation29_spill] sm:$0xff] %v5151_v11  ;;  %1805 = vperm.xlu0 %4528, %v4744_v4  }
  0xd1   : > { %4426 = vset.pattern.permute.xlu1 %v8033_v53 }
  0xd2   : > { %2713 = vperm.xlu1 %4426, %v4727_v0  }
  0xd3   : > { %v5156_v14 = vpop.permute.xlu0 %2489 }
  0xd4   : > { %8278 = vst [vmem:[#allocation30_spill] sm:$0xff] %v5156_v14  ;;  %v5158_v62 = vpop.permute.xlu1 %1565  ;;  %1809 = vperm.xlu0 %4528, %v4777_v9  }
  0xd5   : > { %8279 = vst [vmem:[#allocation31_spill] sm:$0xff] %v5158_v62 }
  0xd6   : > { %4427 = vset.pattern.permute.xlu1 %v8280_v15 }
  0xd7   : > { %1308 = vperm.xlu1 %4427, %v4806_v16  }
  0xd8   : > { %1817 = vperm.xlu0 %4528, %v4795_v13   ;;  %v5164_v1 = vpop.permute.xlu0 %1569 }
  0xd9   : > { %8281 = vst [vmem:[#allocation32_spill] sm:$0xff] %v5164_v1  ;;  %v5166_v7 = vpop.permute.xlu1 %1284  ;;  %v8290_v1 = vmov 8  }
  0xda   : > { %8282 = vst [vmem:[#allocation33_spill] sm:$0xff] %v5166_v7 }
  0xdb   : > { %4428 = vset.pattern.permute.xlu1 %v8283_v3 }
  0xdc   : > { %1821 = vperm.xlu1 %4428, %v4790_v12   ;;  %1829 = vperm.xlu0 %4528, %v4806_v16   ;;  %v5171_v0 = vpop.permute.xlu0 %1577 }
  0xdd   : > { %8284 = vst [vmem:[#allocation34_spill] sm:$0xff] %v5171_v0 }
  0xde   : > { %v5173_v53 = vpop.permute.xlu1 %1573 }
  0xe0   : > { %4429 = vset.pattern.permute.xlu1 %v8285_v2  ;;  %1841 = vperm.xlu0 %4528, %v4843_v25   ;;  %v5177_v10 = vpop.permute.xlu0 %1589 }
  0xe1   : > { %2045 = vperm.xlu1 %4429, %v4795_v13  }
  0xe3   : > { %v5180_v55 = vpop.permute.xlu1 %1797 }
  0xe4   : > { %8286 = vst [vmem:[#allocation35_spill] sm:$0xff] %v5180_v55  ;;  %1853 = vperm.xlu0 %4528, %v4854_v28   ;;  %v5183_v63 = vpop.permute.xlu0 %1597 }
  0xe5   : > { %8287 = vst [vmem:[#allocation36_spill] sm:$0xff] %v5183_v63  ;;  %4430 = vset.pattern.permute.xlu1 %v8288_v59 }
  0xe6   : > { %2493 = vperm.xlu1 %4430, %v4777_v9  }
  0xe8   : > { %v5187_v51 = vpop.permute.xlu1 %1288  ;;  %1865 = vperm.xlu0 %4528, %v4891_v37   ;;  %v5195_v44 = vpop.permute.xlu0 %1609 }
  0xe9   : > { %8289 = vst [vmem:[#allocation37_spill] sm:$0xff] %v5195_v44  ;;  %v4144_v55 = vpop.f32.mrb[0].mxu0 }
  0xea   : > { %4431 = vset.pattern.permute.xlu1 %v8290_v1  ;;  %v5198_v28 = vpop.f32.mrb[1].mxu0  ;;  %v657_v23 = vadd.f32 %v4144_v55, %v5193_v47 }
  0xeb   : > { %2717 = vperm.xlu1 %4431, %v4744_v4  }
  0xec   : > { %1877 = vperm.xlu0 %4528, %v4902_v40   ;;  %v5203_v9 = vpop.permute.xlu0 %1621  ;;  %v4147_v14 = vpop.f32.mrb[2].mxu0  ;;  %v811_v44 = vmax.f32 %v657_v23, 0.0 }
  0xed   : > { %8291 = vst [vmem:[#allocation38_spill] sm:$0xff] %v5203_v9  ;;  %v5205_v37 = vpop.permute.xlu1 %1801  ;;  %v667_v22 = vadd.f32 %v4147_v14, %v5193_v47  ;;  %v661_v0 = vpop.f32.mrb[3].mxu0 }
  0xee   : > { %8292 = vst [vmem:[#allocation39_spill] sm:$0xff] %v5205_v37  ;;  %v662_v7 = vadd.f32 %v5193_v47, %v661_v0  ;;  %v5219_v0 = vmin.f32 %v811_v44, 6.0 }
  0xef   : > { %4432 = vset.pattern.permute.xlu1 %v8293_v46  ;;  %v813_v54 = vmax.f32 %v667_v22, 0.0  ;;  %v5223_v22 = vshrl.u32 %v908_v58, 7 }
  0xf0   : > { %1601 = vperm.xlu1 %4432, %v4806_v16   ;;  %1889 = vperm.xlu0 %4528, %v4939_v49   ;;  %v5212_v4 = vpop.permute.xlu0 %1633  ;;  %v812_v40 = vmax.f32 %v662_v7, 0.0  ;;  %v4150_v55 = vpop.f32.mrb[4].mxu0  ;;  %8297 = vst [vmem:[#allocation43_spill] sm:$0xff] %v5219_v0  ;;  %v8305_v63 = vrot.slane %v5219_v0, 7 }
  0xf1   : > { %8294 = vst [vmem:[#allocation40_spill] sm:$0xff] %v5212_v4  ;;  %v5214_v9 = vmin.f32 %v813_v54, 6.0  ;;  %v677_v14 = vadd.f32 %v4150_v55, %v5193_v47  ;;  %v671_v23 = vpop.f32.mrb[5].mxu0  ;;  %v910_v4 = vsub.s32 4, %v5223_v22  ;;  %vm1531_vm2 = vcmp.lt.s32.totalorder %v5223_v22, 7 }
  0xf2   : > { %v5217_v32 = vpop.permute.xlu1 %2021  ;;  %v5221_v43 = vmin.f32 %v812_v40, 6.0  ;;  %v672_v16 = vadd.f32 %v5193_v47, %v671_v23  ;;  %vm978_vm3 = vcmp.lt.s32.totalorder %v5223_v22, 1 }
  0xf3   : > { %8295 = vst [vmem:[#allocation41_spill] sm:$0xff] %v5214_v9  ;;  %8296 = vst [vmem:[#allocation42_spill] sm:$0xff] %v5217_v32  ;;  %v815_v49 = vmax.f32 %v677_v14, 0.0  ;;  %v8300_v62 = vrot.slane %v5214_v9, 1 }
  0xf4   : > { %8298 = vst [vmem:[#allocation44_spill] sm:$0xff] %v5221_v43  ;;  %4433 = vset.pattern.permute.xlu1 %v8283_v3  ;;  %1901 = vperm.xlu0 %4528, %v4950_v52   ;;  %v5228_v7 = vpop.permute.xlu0 %1645  ;;  %v814_v55 = vmax.f32 %v672_v16, 0.0  ;;  %v4153_v44 = vpop.f32.mrb[6].mxu0  ;;  %v8035_v40 = vrot.slane %v5221_v43, 1  ;;  %v946_v58 = vrot.slane %v5221_v43, 7 }
  0xf5   : > { %8299 = vst [vmem:[#allocation45_spill] sm:$0xff] %v5228_v7  ;;  %1825 = vperm.xlu1 %4433, %v4811_v17   ;;  %v687_v14 = vadd.f32 %v4153_v44, %v5193_v47  ;;  %v681_v23 = vpop.f32.mrb[7].mxu0  ;;  %v5253_v44 = vld [vmem:[%s8009_s3] sm:$0xff] }
  0xf6   : > { %v5238_v7 = vmin.f32 %v814_v55, 6.0  ;;  %v682_v16 = vadd.f32 %v5193_v47, %v681_v23  ;;  %v5247_v61 = vsel %vm1531_vm2, %v8035_v40, %v8300_v62  ;;  %v5255_v55 = vmin.f32 %v815_v49, 6.0 }
  0xf7   : > { %v1293_v54 = vpop.permute.xlu1 %1292  ;;  %8301 = vst [vmem:[#allocation46_spill] sm:$0xff] %v5247_v61  ;;  %v817_v42 = vmax.f32 %v687_v14, 0.0  ;;  %v8304_v40 = vmov 6   ;;  %v5264_v50 = vrot.slane %v5253_v44, %v910_v4  ;;  %v5270_v49 = vsel %vm978_vm3, %v8305_v63, %v946_v58 }
  0xf8   : > { %8302 = vst [vmem:[#allocation47_spill] sm:$0xff] %v5255_v55  ;;  %1909 = vperm.xlu0 %4528, %v4966_v56   ;;  %v5258_v23 = vpop.permute.xlu0 %1657  ;;  %v816_v62 = vmax.f32 %v682_v16, 0.0  ;;  %v4156_v19 = vpop.f32.mrb[8].mxu0  ;;  %8306 = vst [vmem:[#allocation49_spill] sm:$0xff] %v5270_v49  ;;  %v8307_v16 = vsub.s32 0, %v5223_v22  ;;  %v8309_v4 = vrot.slane %v5214_v9, 7 }
  0xf9   : > { %8303 = vst [vmem:[#allocation48_spill] sm:$0xff] %v5258_v23  ;;  %4434 = vset.pattern.permute.xlu1 %v8304_v40  ;;  %v697_v56 = vadd.f32 %v4156_v19, %v5193_v47  ;;  %v5274_v14 = vpop.f32.mrb[9].mxu0  ;;  %v916_v19 = vmul.f32 %v5264_v50, %v5238_v7  ;;  %v5293_v63 = vmin.f32 %v817_v42, 6.0  ;;  %v1433_v42 = vsub.s32 1, %v5223_v22 }
  0xfa   : > { %2273 = vperm.xlu1 %4434, %v4795_v13   ;;  %v5279_v8 = vrot.slane %v5253_v44, %v8307_v16  ;;  %v5281_v23 = vmin.f32 %v816_v62, 6.0  ;;  %v5287_v41 = vsel %vm978_vm3, %v946_v58, %v8309_v4  ;;  %v1175_v13 = vmul.f32 %v5058_v27, %v5270_v49 }
  0xfb   : > { %8310 = vst [vmem:[#allocation51_spill] sm:$0xff] %v5287_v41  ;;  %v1176_v16 = vmul.f32 %v5054_v26, %v5287_v41  ;;  %v8041_v4 = vrot.slane %v5255_v55, 7  ;;  %v819_v29 = vmax.f32 %v697_v56, 0.0  ;;  %v1404_v58 = vmul.f32 %v1293_v54, %v5214_v9 }
  0xfc   : > { %8308 = vst [vmem:[#allocation50_spill] sm:$0xff] %v5281_v23  ;;  %v5295_v38 = vpop.permute.xlu1 %1581  ;;  %1913 = vperm.xlu0 %4528, %v4982_v60   ;;  %v5298_v62 = vpop.permute.xlu0 %1669  ;;  %v1211_v27 = vmul.f32 %v5279_v8, %v1175_v13  ;;  %v8313_v13 = vrot.slane %v5238_v7, 7  ;;  %v5334_v49 = vrot.slane %v5253_v44, %v1433_v42  ;;  %v8044_v42 = vrot.slane %v5238_v7, 1 }
  0xfd   : > { %8311 = vst [vmem:[#allocation52_spill] sm:$0xff] %v5298_v62  ;;  %v5304_v39 = vpop.f32.mrb[10].mxu0  ;;  %v1212_v56 = vmul.f32 %v5279_v8, %v1176_v16  ;;  %v5326_v37 = vmin.f32 %v819_v29, 6.0  ;;  %v917_v16 = vmul.f32 %v5264_v50, %v5255_v55  ;;  %v8318_v29 = vrot.slane %v5281_v23, 7 }
  0xfe   : > { %4435 = vset.pattern.permute.xlu1 %v8288_v59  ;;  %v701_v18 = vpop.f32.mrb[11].mxu0  ;;  %v5312_v26 = vadd.f32 %v1211_v27, %v916_v19  ;;  %v5323_v41 = vsel %vm978_vm3, %v8313_v13, %v8041_v4 }
  0xff   : > { %v702_v62 = vadd.f32 %v5193_v47, %v701_v18  ;;  %2497 = vperm.xlu1 %4435, %v4768_v6   ;;  %8314 = vst [vmem:[#allocation54_spill] sm:$0xff] %v5323_v41  ;;  %v8043_v18 = vrot.slane %v5293_v63, 7  ;;  %8315 = vst [vmem:[#allocation55_spill] sm:$0xff] %v5326_v37  ;;  %v8327_v32 = vrot.slane %v5326_v37, 7 }
 0x100   : > { %8312 = vst [vmem:[#allocation53_spill] sm:$0xff] %v5312_v26  ;;  %4539 = vset.pattern.permute.xlu0 %v8285_v2  ;;  %v4162_v54 = vpop.f32.mrb[12].mxu0  ;;  %v1244_v26 = vadd.f32 %v1212_v56, %v917_v16 }
 0x101   : > { %v820_v19 = vmax.f32 %v702_v62, 0.0  ;;  %v5328_v27 = vpop.permute.xlu1 %2029  ;;  %2025 = vperm.xlu0 %4539, %v4749_v5   ;;  %v717_v59 = vadd.f32 %v4162_v54, %v5193_v47  ;;  %v5337_v13 = vpop.permute.xlu0 %2253  ;;  %v5345_v62 = vsel %vm978_vm3, %v8318_v29, %v8043_v18  ;;  %v1440_v54 = vmul.f32 %v5334_v49, %v1404_v58 }
 0x102   : > { %8316 = vst [vmem:[#allocation56_spill] sm:$0xff] %v5328_v27  ;;  %8317 = vst [vmem:[#allocation57_spill] sm:$0xff] %v5337_v13  ;;  %v711_v4 = vpop.f32.mrb[13].mxu0 }
 0x103   : > { %8319 = vst [vmem:[#allocation58_spill] sm:$0xff] %v5345_v62  ;;  %v5347_v5 = vmin.f32 %v820_v19, 6.0  ;;  %v712_v27 = vadd.f32 %v5193_v47, %v711_v4  ;;  %4436 = vset.pattern.permute.xlu1 %v8280_v15  ;;  %v823_v13 = vmax.f32 %v717_v59, 0.0  ;;  %v8321_v4 = vrot.slane %v5214_v9, 1 }
 0x104   : > { %1316 = vperm.xlu1 %4436, %v4822_v20   ;;  %v4165_v11 = vpop.f32.mrb[14].mxu0 }
 0x105   : > { %8320 = vst [vmem:[#allocation59_spill] sm:$0xff] %v5347_v5  ;;  %v822_v60 = vmax.f32 %v712_v27, 0.0  ;;  %2049 = vperm.xlu0 %4539, %v4790_v12   ;;  %v8045_v19 = vrot.slane %v5347_v5, 7  ;;  %v5363_v18 = vsel %vm1531_vm2, %v8321_v4, %v8044_v42  ;;  %v5365_v59 = vmin.f32 %v823_v13, 6.0  ;;  %v5370_v56 = vpop.permute.xlu0 %2261  ;;  %v5376_v29 = vpop.f32.mrb[15].mxu0 }
 0x106   : > { %8322 = vst [vmem:[#allocation60_spill] sm:$0xff] %v5363_v18  ;;  %v727_v20 = vadd.f32 %v4165_v11, %v5193_v47  ;;  %v5368_v58 = vpop.permute.xlu1 %2249  ;;  %8325 = vst [vmem:[#allocation63_spill] sm:$0xff] %v5370_v56  ;;  %v5372_v27 = vadd.f32 %v1440_v54, %v1244_v26  ;;  %v1178_v54 = vmul.f32 %v5060_v30, %v5323_v41  ;;  %v8333_v30 = vrot.slane %v5214_v9, 7 }
 0x107   : > { %8323 = vst [vmem:[#allocation61_spill] sm:$0xff] %v5365_v59  ;;  %8324 = vst [vmem:[#allocation62_spill] sm:$0xff] %v5368_v58  ;;  %v5374_v16 = vmin.f32 %v822_v60, 6.0  ;;  %v5384_v13 = vsel %vm978_vm3, %v8327_v32, %v8045_v19  ;;  %v1726_v19 = vsub.s32 2, %v5223_v22 }
 0x108   : > { %8328 = vst [vmem:[#allocation65_spill] sm:$0xff] %v5384_v13  ;;  %4437 = vset.pattern.permute.xlu1 %v8293_v46  ;;  %v825_v4 = vmax.f32 %v727_v20, 0.0  ;;  %v5390_v60 = vpop.f32.mrb[16].mxu0  ;;  %v8330_v20 = vrot.slane %v5365_v59, 7  ;;  %v8332_v46 = vrot.slane %v5238_v7, 7  ;;  %v1214_v9 = vmul.f32 %v5279_v8, %v1178_v54 }
 0x109   : > { %8326 = vst [vmem:[#allocation64_spill] sm:$0xff] %v5374_v16  ;;  %1605 = vperm.xlu1 %4437, %v4827_v21   ;;  %2061 = vperm.xlu0 %4539, %v4827_v21   ;;  %v8052_v26 = vrot.slane %v5374_v16, 7  ;;  %v5395_v42 = vpop.permute.xlu0 %2269  ;;  %v731_v32 = vpop.f32.mrb[17].mxu0 }
 0x10a   : > { %8329 = vst [vmem:[#allocation66_spill] sm:$0xff] %v5395_v42  ;;  %v732_v56 = vadd.f32 %v5193_v47, %v731_v32  ;;  %v5415_v42 = vsel %vm978_vm3, %v8333_v30, %v8332_v46  ;;  %v652_v32 = vadd.f32 %v5193_v47, %v5198_v28  ;;  %v5419_v13 = vmin.f32 %v825_v4, 6.0 }
 0x10b   : > { %v5399_v11 = vpop.permute.xlu1 %1296  ;;  %v5407_v5 = vsel %vm978_vm3, %v8052_v26, %v8330_v20  ;;  %8334 = vst [vmem:[#allocation68_spill] sm:$0xff] %v5415_v42  ;;  %v1177_v26 = vmul.f32 %v5064_v31, %v5415_v42  ;;  %v5433_v4 = vrot.slane %v5253_v44, %v1726_v19 }
 0x10c   : > { %8331 = vst [vmem:[#allocation67_spill] sm:$0xff] %v5407_v5  ;;  %8335 = vst [vmem:[#allocation69_spill] sm:$0xff] %v5419_v13  ;;  %v826_v59 = vmax.f32 %v732_v56, 0.0  ;;  %v4171_v20 = vpop.f32.mrb[18].mxu0  ;;  %v918_v56 = vmul.f32 %v5264_v50, %v5281_v23  ;;  %v810_v54 = vmax.f32 %v652_v32, 0.0 }
 0x10d   : > { %4438 = vset.pattern.permute.xlu1 %v8285_v2  ;;  %2073 = vperm.xlu0 %4539, %v4838_v24   ;;  %v747_v5 = vadd.f32 %v4171_v20, %v5193_v47  ;;  %v5428_v46 = vpop.permute.xlu0 %2281  ;;  %v741_v28 = vpop.f32.mrb[19].mxu0  ;;  %v1213_v31 = vmul.f32 %v5279_v8, %v1177_v26 }
 0x10e   : > { %2053 = vperm.xlu1 %4438, %v4811_v17   ;;  %8336 = vst [vmem:[#allocation70_spill] sm:$0xff] %v5428_v46  ;;  %v5435_v24 = vmin.f32 %v826_v59, 6.0  ;;  %v742_v30 = vadd.f32 %v5193_v47, %v741_v28  ;;  %v919_v17 = vmul.f32 %v5264_v50, %v5293_v63  ;;  %v1504_v46 = vrot.slane %v5255_v55, 1 }
 0x10f   : > { %v829_v42 = vmax.f32 %v747_v5, 0.0  ;;  %v2182_v59 = vsub.s32 5, %v5223_v22 }
 0x110   : > { %8337 = vst [vmem:[#allocation71_spill] sm:$0xff] %v5435_v24  ;;  %v1586_v20 = vpop.permute.xlu1 %1585  ;;  %v828_v58 = vmax.f32 %v742_v30, 0.0  ;;  %v4174_v19 = vpop.f32.mrb[20].mxu0  ;;  %v8066_v28 = vrot.slane %v5435_v24, 7  ;;  %v5454_v30 = vadd.f32 %v1213_v31, %v918_v56  ;;  %v8344_v31 = vrot.slane %v5238_v7, 1 }
 0x111   : > { %v1697_v16 = vmul.f32 %v1586_v20, %v5363_v18  ;;  %2085 = vperm.xlu0 %4539, %v4875_v33   ;;  %v5446_v41 = vmin.f32 %v829_v42, 6.0  ;;  %v757_v5 = vadd.f32 %v4174_v19, %v5193_v47  ;;  %v5450_v26 = vpop.permute.xlu0 %2293  ;;  %v5452_v32 = vpop.f32.mrb[21].mxu0  ;;  %v5456_v20 = vadd.f32 %v1214_v9, %v919_v17 }
 0x112   : > { %4439 = vset.pattern.permute.xlu1 %v8304_v40  ;;  %8339 = vst [vmem:[#allocation73_spill] sm:$0xff] %v5450_v26  ;;  %v2638_v33 = vsub.s32 7, %v5223_v22  ;;  %v5460_v18 = vmin.f32 %v828_v58, 6.0  ;;  %v5464_v19 = vmin.f32 %v810_v54, 6.0  ;;  %v8342_v26 = vrot.slane %v5419_v13, 7 }
 0x113   : > { %8338 = vst [vmem:[#allocation72_spill] sm:$0xff] %v5446_v41  ;;  %v1733_v42 = vmul.f32 %v5433_v4, %v1697_v16  ;;  %2277 = vperm.xlu1 %4439, %v4790_v12   ;;  %v5479_v58 = vsel %vm1531_vm2, %v8344_v31, %v1504_v46  ;;  %v692_v12 = vadd.f32 %v5193_v47, %v5274_v14  ;;  %v1954_v16 = vsub.s32 3, %v5223_v22 }
 0x114   : > { %8340 = vst [vmem:[#allocation74_spill] sm:$0xff] %v5460_v18  ;;  %8341 = vst [vmem:[#allocation75_spill] sm:$0xff] %v5464_v19  ;;  %v5472_v9 = vsel %vm978_vm3, %v8342_v26, %v8066_v28  ;;  %v831_v17 = vmax.f32 %v757_v5, 0.0  ;;  %v5490_v26 = vpop.f32.mrb[22].mxu0  ;;  %v2410_v28 = vsub.s32 6, %v5223_v22  ;;  %v5497_v14 = vrot.slane %v5253_v44, %v2638_v33 }
 0x115   : > { %8343 = vst [vmem:[#allocation76_spill] sm:$0xff] %v5472_v9  ;;  %8345 = vst [vmem:[#allocation77_spill] sm:$0xff] %v5479_v58  ;;  %v5485_v54 = vadd.f32 %v1733_v42, %v5372_v27  ;;  %v5487_v24 = vpop.permute.xlu1 %2033  ;;  %2097 = vperm.xlu0 %4539, %v4886_v36   ;;  %v5493_v56 = vpop.permute.xlu0 %2305  ;;  %v8071_v9 = vrot.slane %v5460_v18, 7  ;;  %v5500_v27 = vrot.slane %v5253_v44, %v2182_v59  ;;  %v8072_v59 = vrot.slane %v5281_v23, 1 }
 0x116   : > { %8346 = vst [vmem:[#allocation78_spill] sm:$0xff] %v5487_v24  ;;  %8347 = vst [vmem:[#allocation79_spill] sm:$0xff] %v5493_v56  ;;  %v761_v31 = vpop.f32.mrb[23].mxu0  ;;  %v8349_v56 = vrot.slane %v5446_v41, 7  ;;  %v818_v24 = vmax.f32 %v692_v12, 0.0  ;;  %v5519_v40 = vmin.f32 %v831_v17, 6.0  ;;  %v1401_v42 = vmul.f32 %v5149_v57, %v5464_v19 }
 0x117   : > { %8348 = vst [vmem:[#allocation80_spill] sm:$0xff] %v5497_v14  ;;  %v762_v5 = vadd.f32 %v5193_v47, %v761_v31  ;;  %4440 = vset.pattern.permute.xlu1 %v8290_v1  ;;  %v5517_v31 = vrot.slane %v5253_v44, %v1954_v16  ;;  %v5525_v41 = vrot.slane %v5253_v44, %v2410_v28 }
 0x118   : > { %2725 = vperm.xlu1 %4440, %v4768_v6   ;;  %v5513_v33 = vsel %vm978_vm3, %v8071_v9, %v8349_v56  ;;  %8351 = vst [vmem:[#allocation82_spill] sm:$0xff] %v5519_v40  ;;  %v4180_v6 = vpop.f32.mrb[24].mxu0  ;;  %v5536_v16 = vsel %vm1531_vm2, %v1504_v46, %v8072_v59  ;;  %v5545_v28 = vmul.f32 %v5264_v50, %v5464_v19  ;;  %v5559_v44 = vmin.f32 %v818_v24, 6.0 }
 0x119   : > { %8350 = vst [vmem:[#allocation81_spill] sm:$0xff] %v5513_v33  ;;  %v832_v36 = vmax.f32 %v762_v5, 0.0  ;;  %2109 = vperm.xlu0 %4539, %v4923_v45   ;;  %8352 = vst [vmem:[#allocation83_spill] sm:$0xff] %v5525_v41  ;;  %v777_v56 = vadd.f32 %v4180_v6, %v5193_v47  ;;  %v5530_v12 = vpop.permute.xlu0 %2317  ;;  %v1180_v45 = vmul.f32 %v5067_v34, %v5345_v62  ;;  %v771_v57 = vpop.f32.mrb[25].mxu0  ;;  %v8357_v5 = vrot.slane %v5219_v0, 1 }
 0x11a   : > { %v5528_v9 = vpop.permute.xlu1 %2257  ;;  %8353 = vst [vmem:[#allocation84_spill] sm:$0xff] %v5530_v12  ;;  %8354 = vst [vmem:[#allocation85_spill] sm:$0xff] %v5536_v16  ;;  %v8358_v6 = vrot.slane %v5464_v19, 1  ;;  %v1696_v34 = vmul.f32 %v5295_v38, %v5247_v61  ;;  %v772_v59 = vadd.f32 %v5193_v47, %v771_v57  ;;  %v8362_v38 = vrot.slane %v5255_v55, 7 }
 0x11b   : > { %v5540_v17 = vmin.f32 %v832_v36, 6.0  ;;  %8356 = vst [vmem:[#allocation87_spill] sm:$0xff] %v5545_v28  ;;  %v835_v36 = vmax.f32 %v777_v56, 0.0  ;;  %8360 = vst [vmem:[#allocation89_spill] sm:$0xff] %v5559_v44  ;;  %v1405_v24 = vmul.f32 %v5399_v11, %v5238_v7  ;;  %v8367_v11 = vrot.slane %v5519_v40, 7 }
 0x11c   : > { %v5553_v46 = vsel %vm1531_vm2, %v8358_v6, %v8357_v5  ;;  %4441 = vset.pattern.permute.xlu1 %v8280_v15  ;;  %v5563_v12 = vpop.f32.mrb[26].mxu0  ;;  %v8361_v6 = vrot.slane %v5281_v23, 7  ;;  %v707_v5 = vadd.f32 %v5304_v39, %v5193_v47  ;;  %v722_v15 = vadd.f32 %v5193_v47, %v5376_v29 }
 0x11d   : > { %8355 = vst [vmem:[#allocation86_spill] sm:$0xff] %v5540_v17  ;;  %8359 = vst [vmem:[#allocation88_spill] sm:$0xff] %v5553_v46  ;;  %1320 = vperm.xlu1 %4441, %v4843_v25   ;;  %2121 = vperm.xlu0 %4539, %v4934_v48   ;;  %v5577_v25 = vmin.f32 %v835_v36, 6.0  ;;  %v834_v48 = vmax.f32 %v772_v59, 0.0  ;;  %v5579_v57 = vpop.permute.xlu0 %2329  ;;  %v781_v28 = vpop.f32.mrb[27].mxu0  ;;  %v1403_v39 = vmul.f32 %v5187_v51, %v5221_v43 }
 0x11e   : > { %v5573_v56 = vsel %vm978_vm3, %v8362_v38, %v8361_v6  ;;  %8365 = vst [vmem:[#allocation92_spill] sm:$0xff] %v5579_v57  ;;  %v1216_v6 = vmul.f32 %v5279_v8, %v1180_v45  ;;  %v8366_v38 = vrot.slane %v5540_v17, 7  ;;  %v921_v29 = vmul.f32 %v5264_v50, %v5326_v37 }
 0x11f   : > { %8363 = vst [vmem:[#allocation90_spill] sm:$0xff] %v5573_v56  ;;  %8364 = vst [vmem:[#allocation91_spill] sm:$0xff] %v5577_v25  ;;  %v1179_v0 = vmul.f32 %v5070_v35, %v5573_v56  ;;  %v5596_v36 = vpop.permute.xlu1 %2481  ;;  %v5598_v57 = vmin.f32 %v834_v48, 6.0  ;;  %v920_v35 = vmul.f32 %v5264_v50, %v5559_v44  ;;  %v737_v45 = vadd.f32 %v5390_v60, %v5193_v47 }
 0x120   : > { %v5594_v59 = vsel %vm978_vm3, %v8367_v11, %v8366_v38  ;;  %8369 = vst [vmem:[#allocation94_spill] sm:$0xff] %v5596_v36  ;;  %v5611_v48 = vpop.f32.mrb[28].mxu0  ;;  %v1698_v11 = vmul.f32 %v5177_v10, %v5479_v58  ;;  %v1694_v51 = vmul.f32 %v5173_v53, %v5553_v46  ;;  %v1441_v36 = vmul.f32 %v5334_v49, %v1405_v24  ;;  %v8372_v10 = vld [vmem:[#allocation42_spill] sm:$0xff] }
 0x121   : > { %8368 = vst [vmem:[#allocation93_spill] sm:$0xff] %v5594_v59  ;;  %8370 = vst [vmem:[#allocation95_spill] sm:$0xff] %v5598_v57  ;;  %4442 = vset.pattern.permute.xlu1 %v8283_v3  ;;  %2129 = vperm.xlu0 %4539, %v4950_v52   ;;  %v1215_v59 = vmul.f32 %v5279_v8, %v1179_v0  ;;  %v5620_v60 = vpop.permute.xlu0 %2341  ;;  %v8089_v52 = vrot.slane %v5598_v57, 7  ;;  %v5623_v56 = vpop.f32.mrb[29].mxu0  ;;  %v5626_v38 = vmul.f32 %v5334_v49, %v1401_v42 }
 0x122   : > { %1833 = vperm.xlu1 %4442, %v4827_v21   ;;  %8371 = vst [vmem:[#allocation96_spill] sm:$0xff] %v5620_v60  ;;  %v2148_v58 = vmul.f32 %v8372_v10, %v5553_v46  ;;  %v1732_v0 = vmul.f32 %v5433_v4, %v1696_v34  ;;  %v821_v17 = vmax.f32 %v707_v5, 0.0  ;;  %v824_v53 = vmax.f32 %v722_v15, 0.0  ;;  %v8376_v10 = vld [vmem:[#allocation29_spill] sm:$0xff]  ;;  %v8377_v46 = vld [vmem:[#allocation2_spill] sm:$0xff] }
 0x123   : > { %v8373_v24 = vrot.slane %v5577_v25, 7  ;;  %v5639_v16 = vadd.f32 %v1215_v59, %v920_v35  ;;  %v1439_v42 = vmul.f32 %v5334_v49, %v1403_v39  ;;  %v5642_v33 = vadd.f32 %v1216_v6, %v921_v29  ;;  %v8379_v39 = vld [vmem:[#allocation53_spill] sm:$0xff] }
 0x124   : > { %v1301_v60 = vpop.permute.xlu1 %1300  ;;  %v2604_v34 = vmul.f32 %v8376_v10, %v5221_v43  ;;  %v827_v5 = vmax.f32 %v737_v45, 0.0  ;;  %v4189_v25 = vpop.f32.mrb[30].mxu0  ;;  %v1734_v3 = vmul.f32 %v5433_v4, %v1698_v11  ;;  %v1473_v45 = vadd.f32 %v1441_v36, %v5454_v30 }
 0x125   : > { %v5637_v21 = vsel %vm978_vm3, %v8089_v52, %v8373_v24  ;;  %8375 = vst [vmem:[#allocation97_spill] sm:$0xff] %v5642_v33  ;;  %v1406_v15 = vmul.f32 %v1301_v60, %v5255_v55  ;;  %2141 = vperm.xlu0 %4539, %v8377_v46   ;;  %v752_v24 = vadd.f32 %v5193_v47, %v5452_v32  ;;  %v801_v35 = vpop.f32.mrb[31].mxu0  ;;  %v5660_v46 = vmin.f32 %v821_v17, 6.0 }
 0x126   : > { %8374 = vst [vmem:[#allocation42_spill] sm:$0xff] %v5637_v21  ;;  %v807_v59 = vadd.f32 %v4189_v25, %v5193_v47  ;;  %4443 = vset.pattern.permute.xlu1 %v8285_v2  ;;  %v5653_v6 = vpop.permute.xlu0 %1276  ;;  %v1471_v29 = vadd.f32 %v1439_v42, %v8379_v39  ;;  %v5658_v60 = vmul.f32 %v5433_v4, %v1694_v51  ;;  %v5662_v11 = vmin.f32 %v824_v53, 6.0  ;;  %v5668_v25 = vld [vmem:[%s8011_s5 + $0x48] sm:$0xff] }
 0x127   : > { %8378 = vst [vmem:[#allocation29_spill] sm:$0xff] %v5653_v6  ;;  %8380 = vst [vmem:[#allocation2_spill] sm:$0xff] %v5660_v46  ;;  %v1442_v32 = vmul.f32 %v5334_v49, %v1406_v15  ;;  %2057 = vperm.xlu1 %4443, %v5668_v25   ;;  %v767_v42 = vadd.f32 %v5490_v26, %v5193_v47  ;;  %v782_v30 = vadd.f32 %v5193_v47, %v781_v28  ;;  %v8386_v28 = vld [vmem:[#allocation54_spill] sm:$0xff] }
 0x128   : > { %8381 = vst [vmem:[#allocation53_spill] sm:$0xff] %v5662_v11  ;;  %v841_v36 = vmax.f32 %v807_v59, 0.0  ;;  %v5674_v51 = vadd.f32 %v1732_v0, %v1471_v29  ;;  %v5680_v10 = vadd.f32 %v1734_v3, %v1473_v45  ;;  %v8091_v15 = vrot.slane %v5559_v44, 7 }
 0x129   : > { %v5677_v17 = vadd.f32 %v1442_v32, %v5456_v20  ;;  %v1814_v53 = vpop.permute.xlu1 %1813  ;;  %4544 = vset.pattern.permute.xlu0 %v8290_v1  ;;  %v1506_v39 = vrot.slane %v5293_v63, 1  ;;  %v5684_v52 = vmin.f32 %v827_v5, 6.0  ;;  %v830_v26 = vmax.f32 %v752_v24, 0.0  ;;  %v4559_v20 = vld [vmem:[%s8011_s5 + $0x8] sm:$0xff] }
 0x12a   : > { %8382 = vst [vmem:[#allocation98_spill] sm:$0xff] %v5674_v51  ;;  %8383 = vst [vmem:[#allocation99_spill] sm:$0xff] %v5680_v10  ;;  %v5686_v6 = vmin.f32 %v841_v36, 6.0  ;;  %v1925_v0 = vmul.f32 %v1814_v53, %v8386_v28  ;;  %2709 = vperm.xlu0 %4544, %v4559_v20   ;;  %v5692_v59 = vpop.permute.xlu0 %1312  ;;  %v787_v3 = vadd.f32 %v5563_v12, %v5193_v47  ;;  %v8387_v29 = vmov 7   ;;  %v4560_v20 = vld [vmem:[%s8011_s5 + $0x38] sm:$0xff]  ;;  %v8394_v36 = vld [vmem:[#allocation64_spill] sm:$0xff] }
 0x12b   : > { %8384 = vst [vmem:[#allocation100_spill] sm:$0xff] %v5684_v52  ;;  %4444 = vset.pattern.permute.xlu1 %v8387_v29  ;;  %v8388_v5 = vrot.slane %v5326_v37, 7  ;;  %v8390_v45 = vrot.slane %v5281_v23, 1  ;;  %v833_v53 = vmax.f32 %v767_v42, 0.0  ;;  %v836_v28 = vmax.f32 %v782_v30, 0.0 }
 0x12c   : > { %8385 = vst [vmem:[#allocation101_spill] sm:$0xff] %v5686_v6  ;;  %v1961_v12 = vmul.f32 %v5517_v31, %v1925_v0  ;;  %2505 = vperm.xlu1 %4444, %v4560_v20   ;;  %v8395_v42 = vrot.slane %v8394_v36, 7  ;;  %v8396_v0 = vrot.slane %v5660_v46, 7  ;;  %v5732_v33 = vmin.f32 %v830_v26, 6.0 }
 0x12d   : > { %v5703_v24 = vsel %vm978_vm3, %v8091_v15, %v8388_v5  ;;  %v5709_v32 = vsel %vm1531_vm2, %v8390_v45, %v1506_v39  ;;  %v5719_v15 = vmul.f32 %v5497_v14, %v2604_v34  ;;  %v5722_v45 = vmul.f32 %v5500_v27, %v2148_v58  ;;  %v4561_v58 = vld [vmem:[%s8011_s5 + $0x20] sm:$0xff] }
 0x12e   : > { %8389 = vst [vmem:[#allocation102_spill] sm:$0xff] %v5703_v24  ;;  %8391 = vst [vmem:[#allocation103_spill] sm:$0xff] %v5709_v32  ;;  %v5730_v10 = vsel %vm978_vm3, %v8396_v0, %v8395_v42  ;;  %v802_v55 = vadd.f32 %v5193_v47, %v801_v35  ;;  %v5736_v5 = vadd.f32 %v1961_v12, %v5485_v54  ;;  %v5738_v34 = vpop.permute.xlu1 %2037  ;;  %2721 = vperm.xlu0 %4544, %v4561_v58   ;;  %v5743_v30 = vpop.permute.xlu0 %1324  ;;  %v8403_v35 = vld [vmem:[#allocation49_spill] sm:$0xff]  ;;  %v8404_v54 = vld [vmem:[#allocation39_spill] sm:$0xff] }
 0x12f   : > { %8392 = vst [vmem:[#allocation104_spill] sm:$0xff] %v5719_v15  ;;  %8393 = vst [vmem:[#allocation105_spill] sm:$0xff] %v5722_v45  ;;  %v8400_v15 = vrot.slane %v5464_v19, 7  ;;  %v8401_v42 = vrot.slane %v5686_v6, 7  ;;  %v1922_v12 = vmul.f32 %v8404_v54, %v8403_v35  ;;  %v837_v0 = vmax.f32 %v787_v3, 0.0  ;;  %v8405_v45 = vld [vmem:[#allocation3_spill] sm:$0xff] }
 0x130   : > { %8397 = vst [vmem:[#allocation64_spill] sm:$0xff] %v5730_v10  ;;  %8398 = vst [vmem:[#allocation106_spill] sm:$0xff] %v5732_v33  ;;  %v914_v51 = vmul.f32 %v5264_v50, %v5221_v43  ;;  %v5759_v2 = vmin.f32 %v833_v53, 6.0  ;;  %v797_v19 = vadd.f32 %v5611_v48, %v5193_v47  ;;  %4445 = vset.pattern.permute.xlu1 %v8290_v1  ;;  %v8410_v43 = vld [vmem:[#allocation56_spill] sm:$0xff]  ;;  %v8411_v53 = vld [vmem:[#allocation62_spill] sm:$0xff]  ;;  %v8416_v1 = vrot.slane %v5684_v52, 7 }
 0x131   : > { %8399 = vst [vmem:[#allocation107_spill] sm:$0xff] %v5743_v30  ;;  %v5751_v26 = vsel %vm978_vm3, %v8401_v42, %v8400_v15  ;;  %v8407_v15 = vrot.slane %v5419_v13, 7  ;;  %v8408_v42 = vrot.slane %v5662_v11, 7  ;;  %v2376_v10 = vmul.f32 %v8411_v53, %v8403_v35  ;;  %v5782_v48 = vld [vmem:[%s8011_s5 + $0x30] sm:$0xff] }
 0x132   : > { %8402 = vst [vmem:[#allocation108_spill] sm:$0xff] %v5751_v26  ;;  %v1173_v58 = vmul.f32 %v8405_v45, %v5751_v26  ;;  %8406 = vst [vmem:[#allocation49_spill] sm:$0xff] %v5759_v2  ;;  %v2150_v45 = vmul.f32 %v8410_v43, %v5247_v61  ;;  %v5777_v30 = vmin.f32 %v836_v28, 6.0  ;;  %2729 = vperm.xlu1 %4445, %v5782_v48   ;;  %2733 = vperm.xlu0 %4544, %v4560_v20   ;;  %v5786_v54 = vpop.permute.xlu0 %1336 }
 0x133   : > { %v5770_v3 = vsel %vm978_vm3, %v8408_v42, %v8407_v15  ;;  %8413 = vst [vmem:[#allocation56_spill] sm:$0xff] %v5782_v48  ;;  %v840_v42 = vmax.f32 %v802_v55, 0.0  ;;  %8414 = vst [vmem:[#allocation62_spill] sm:$0xff] %v5786_v54  ;;  %v8415_v43 = vrot.slane %v5460_v18, 7  ;;  %v8105_v35 = vrot.slane %v5732_v33, 7  ;;  %v8418_v48 = vld [vmem:[#allocation65_spill] sm:$0xff]  ;;  %v2486_v54 = vpop.permute.xlu1 %2485 }
 0x134   : > { %8409 = vst [vmem:[#allocation39_spill] sm:$0xff] %v5770_v3  ;;  %8412 = vst [vmem:[#allocation3_spill] sm:$0xff] %v5777_v30  ;;  %v1209_v15 = vmul.f32 %v5279_v8, %v1173_v58  ;;  %v8106_v53 = vrot.slane %v5559_v44, 1  ;;  %v1958_v61 = vmul.f32 %v5517_v31, %v1922_v12  ;;  %v8419_v58 = vld [vmem:[#allocation10_spill] sm:$0xff]  ;;  %v5801_v20 = vmin.f32 %v837_v0, 6.0 }
 0x135   : > { %v5794_v28 = vsel %vm978_vm3, %v8416_v1, %v8415_v43  ;;  %v1183_v55 = vmul.f32 %v8419_v58, %v8418_v48  ;;  %v839_v18 = vmax.f32 %v797_v19, 0.0  ;;  %v8421_v13 = vrot.slane %v5519_v40, 7 }
 0x136   : > { %8417 = vst [vmem:[#allocation109_spill] sm:$0xff] %v5794_v28  ;;  %8420 = vst [vmem:[#allocation10_spill] sm:$0xff] %v5801_v20  ;;  %v1241_v3 = vadd.f32 %v1209_v15, %v914_v51  ;;  %v5815_v12 = vsel %vm1531_vm2, %v1506_v39, %v8106_v53  ;;  %v8111_v0 = vrot.slane %v5759_v2, 7  ;;  %v2186_v43 = vmul.f32 %v5500_v27, %v2150_v45  ;;  %v5831_v39 = vld [vmem:[%s8011_s5 + $0x60] sm:$0xff]  ;;  %v8436_v28 = vld [vmem:[#allocation68_spill] sm:$0xff] }
 0x137   : > { %v5809_v1 = vsel %vm978_vm3, %v8105_v35, %v8421_v13  ;;  %8423 = vst [vmem:[#allocation111_spill] sm:$0xff] %v5815_v12  ;;  %v5820_v19 = vmul.f32 %v5525_v41, %v2376_v10  ;;  %v8425_v51 = vmov 2   ;;  %v8426_v13 = vld [vmem:[#allocation7_spill] sm:$0xff]  ;;  %v5826_v35 = vmin.f32 %v840_v42, 6.0  ;;  %8428 = vst [vmem:[#allocation113_spill] sm:$0xff] %v5831_v39  ;;  %v5837_v10 = vld [vmem:[%s8011_s5 + $0x50] sm:$0xff] }
 0x138   : > { %8422 = vst [vmem:[#allocation110_spill] sm:$0xff] %v5809_v1  ;;  %4446 = vset.pattern.permute.xlu1 %v8425_v51  ;;  %v1469_v15 = vadd.f32 %v5626_v38, %v1241_v3  ;;  %v1182_v58 = vmul.f32 %v8426_v13, %v5703_v24  ;;  %8429 = vst [vmem:[#allocation114_spill] sm:$0xff] %v5837_v10  ;;  %2745 = vperm.xlu0 %4544, %v5837_v10   ;;  %v5840_v38 = vpop.permute.xlu0 %1348  ;;  %v8431_v3 = vrot.slane %v5598_v57, 7  ;;  %v8439_v10 = vld [vmem:[#allocation66_spill] sm:$0xff] }
 0x139   : > { %8424 = vst [vmem:[#allocation112_spill] sm:$0xff] %v5820_v19  ;;  %8427 = vst [vmem:[#allocation7_spill] sm:$0xff] %v5826_v35  ;;  %1613 = vperm.xlu1 %4446, %v5831_v39   ;;  %v8433_v42 = vrot.slane %v5559_v44, 7  ;;  %v8434_v13 = vrot.slane %v5293_v63, 7  ;;  %v5860_v12 = vmul.f32 %v5279_v8, %v1183_v55  ;;  %v2378_v24 = vmul.f32 %v5528_v9, %v8436_v28 }
 0x13a   : > { %8430 = vst [vmem:[#allocation115_spill] sm:$0xff] %v5840_v38  ;;  %v5848_v45 = vsel %vm978_vm3, %v8111_v0, %v8431_v3  ;;  %v792_v3 = vadd.f32 %v5193_v47, %v5623_v56  ;;  %v1762_v0 = vadd.f32 %v5658_v60, %v1469_v15  ;;  %v1409_v39 = vmul.f32 %v5692_v59, %v5559_v44  ;;  %v5884_v60 = vld [vmem:[%s8011_s5 + $0x68] sm:$0xff] }
 0x13b   : > { %8432 = vst [vmem:[#allocation116_spill] sm:$0xff] %v5848_v45  ;;  %v5856_v53 = vsel %vm978_vm3, %v8434_v13, %v8433_v42  ;;  %v5867_v45 = vmin.f32 %v839_v18, 6.0  ;;  %v5871_v42 = vpop.permute.xlu1 %2705  ;;  %v8438_v13 = vld [vmem:[#allocation8_spill] sm:$0xff]  ;;  %v8119_v55 = vrot.slane %v5801_v20, 7  ;;  %v2381_v9 = vmul.f32 %v8439_v10, %v5345_v62  ;;  %v8445_v10 = vld [vmem:[#allocation11_spill] sm:$0xff] }
 0x13c   : > { %8435 = vst [vmem:[#allocation117_spill] sm:$0xff] %v5856_v53  ;;  %v1181_v48 = vmul.f32 %v8438_v13, %v5856_v53  ;;  %v2606_v38 = vmul.f32 %v2486_v54, %v5238_v7  ;;  %v1990_v47 = vadd.f32 %v1958_v61, %v1762_v0  ;;  %v1218_v56 = vmul.f32 %v5279_v8, %v1182_v58  ;;  %v5887_v59 = vpop.permute.xlu0 %1360  ;;  %v8444_v58 = vld [vmem:[#allocation67_spill] sm:$0xff]  ;;  %v8447_v54 = vld [vmem:[#allocation36_spill] sm:$0xff] }
 0x13d   : > { %8437 = vst [vmem:[#allocation68_spill] sm:$0xff] %v5867_v45  ;;  %v8440_v18 = vmov 3   ;;  %2757 = vperm.xlu0 %4544, %v5884_v60   ;;  %8441 = vst [vmem:[#allocation8_spill] sm:$0xff] %v5887_v59  ;;  %v8442_v7 = vrot.slane %v5777_v30, 7  ;;  %v5902_v13 = vmul.f32 %v8445_v10, %v8444_v58  ;;  %v2414_v59 = vmul.f32 %v5525_v41, %v2378_v24  ;;  %v8448_v58 = vld [vmem:[#allocation59_spill] sm:$0xff] }
 0x13e   : > { %4447 = vset.pattern.permute.xlu1 %v8440_v18  ;;  %v1217_v15 = vmul.f32 %v5279_v8, %v1181_v48  ;;  %v838_v53 = vmax.f32 %v792_v3, 0.0  ;;  %v5908_v48 = vld [vmem:[%s8011_s5 + $0x58] sm:$0xff]  ;;  %v1700_v0 = vmul.f32 %v8447_v54, %v5709_v32  ;;  %v923_v10 = vmul.f32 %v5264_v50, %v5660_v46  ;;  %v5930_v54 = vld [vmem:[%s8011_s5 + $0x80] sm:$0xff] }
 0x13f   : > { %v5896_v61 = vsel %vm978_vm3, %v8442_v7, %v8119_v55  ;;  %8446 = vst [vmem:[#allocation11_spill] sm:$0xff] %v5908_v48  ;;  %1837 = vperm.xlu1 %4447, %v5908_v48   ;;  %v2218_v7 = vadd.f32 %v2186_v43, %v1990_v47  ;;  %v1445_v55 = vmul.f32 %v5334_v49, %v1409_v39  ;;  %v8450_v18 = vld [vmem:[#allocation17_spill] sm:$0xff]  ;;  %v1305_v47 = vpop.permute.xlu1 %1304  ;;  %8451 = vst [vmem:[#allocation36_spill] sm:$0xff] %v5930_v54 }
 0x140   : > { %8443 = vst [vmem:[#allocation66_spill] sm:$0xff] %v5896_v61  ;;  %v922_v24 = vmul.f32 %v5264_v50, %v8448_v58  ;;  %v5919_v3 = vmul.f32 %v5525_v41, %v2381_v9  ;;  %v8449_v61 = vld [vmem:[#allocation81_spill] sm:$0xff]  ;;  %v2642_v43 = vmul.f32 %v5497_v14, %v2606_v38  ;;  %v1407_v19 = vmul.f32 %v1305_v47, %v5281_v23  ;;  %v1373_v32 = vpop.permute.xlu0 %1372 }
 0x141   : > { %v5923_v62 = vmul.f32 %v8450_v18, %v8449_v61  ;;  %v2446_v39 = vadd.f32 %v2414_v59, %v2218_v7  ;;  %2769 = vperm.xlu0 %4544, %v5930_v54   ;;  %v8452_v9 = vrot.slane %v5826_v35, 7  ;;  %v8453_v41 = vrot.slane %v5867_v45, 7  ;;  %v8459_v45 = vld [vmem:[#allocation28_spill] sm:$0xff] }
 0x142   : > { %v5941_v38 = vadd.f32 %v1218_v56, %v923_v10  ;;  %v1249_v59 = vadd.f32 %v1217_v15, %v922_v24  ;;  %v5943_v7 = vmin.f32 %v838_v53, 6.0  ;;  %v5946_v47 = vmul.f32 %v1373_v32, %v5759_v2  ;;  %v8461_v32 = vld [vmem:[#allocation4_spill] sm:$0xff] }
 0x143   : > { %v5939_v18 = vsel %vm978_vm3, %v8453_v41, %v8452_v9  ;;  %v8458_v61 = vmov 6   ;;  %v5949_v54 = vadd.f32 %v2642_v43, %v2446_v39  ;;  %v1508_v14 = vrot.slane %v5326_v37, 1  ;;  %v8465_v9 = vld [vmem:[#allocation61_spill] sm:$0xff] }
 0x144   : > { %8454 = vst [vmem:[#allocation17_spill] sm:$0xff] %v5939_v18  ;;  %8455 = vst [vmem:[#allocation118_spill] sm:$0xff] %v5941_v38  ;;  %4448 = vset.pattern.permute.xlu1 %v8458_v61  ;;  %v5954_v23 = vmul.f32 %v8459_v45, %v5826_v35  ;;  %v1443_v41 = vmul.f32 %v5334_v49, %v1407_v19  ;;  %v1736_v53 = vmul.f32 %v5433_v4, %v1700_v0  ;;  %v1594_v19 = vpop.permute.xlu1 %1593  ;;  %v5974_v0 = vld [vmem:[%s8011_s5 + $0x98] sm:$0xff] }
 0x145   : > { %8456 = vst [vmem:[#allocation119_spill] sm:$0xff] %v5943_v7  ;;  %8457 = vst [vmem:[#allocation120_spill] sm:$0xff] %v5946_v47  ;;  %2285 = vperm.xlu1 %4448, %v5668_v25   ;;  %v5959_v56 = vadd.f32 %v1445_v55, %v1249_v59  ;;  %v1171_v15 = vmul.f32 %v8461_v32, %v5939_v18  ;;  %v8462_v10 = vrot.slane %v5559_v44, 1  ;;  %v1509_v45 = vrot.slane %v8448_v58, 1  ;;  %v1385_v55 = vpop.permute.xlu0 %1384 }
 0x146   : > { %8464 = vst [vmem:[#allocation121_spill] sm:$0xff] %v5974_v0  ;;  %2781 = vperm.xlu0 %4544, %v5974_v0   ;;  %v1475_v39 = vadd.f32 %v1443_v41, %v5639_v16  ;;  %v1512_v59 = vrot.slane %v8465_v9, 1  ;;  %v8139_v32 = vrot.slane %v5662_v11, 1  ;;  %v5983_v43 = vmul.f32 %v1385_v55, %v5777_v30  ;;  %v8477_v55 = vld [vmem:[#allocation86_spill] sm:$0xff] }
 0x147   : > { %8460 = vst [vmem:[#allocation28_spill] sm:$0xff] %v5959_v56  ;;  %v5967_v24 = vsel %vm1531_vm2, %v8462_v10, %v1508_v14  ;;  %v8466_v10 = vld [vmem:[#allocation71_spill] sm:$0xff]  ;;  %v8467_v56 = vld [vmem:[#allocation85_spill] sm:$0xff]  ;;  %v8469_v38 = vrot.slane %v5660_v46, 1  ;;  %v8144_v0 = vrot.slane %v5684_v52, 1 }
 0x148   : > { %8463 = vst [vmem:[#allocation4_spill] sm:$0xff] %v5967_v24  ;;  %v1699_v24 = vmul.f32 %v1594_v19, %v8467_v56  ;;  %8468 = vst [vmem:[#allocation122_spill] sm:$0xff] %v5983_v43  ;;  %v5993_v16 = vadd.f32 %v1736_v53, %v1475_v39  ;;  %v5999_v41 = vsel %vm1531_vm2, %v1512_v59, %v8139_v32  ;;  %v8473_v19 = vld [vmem:[#allocation72_spill] sm:$0xff]  ;;  %v8475_v39 = vrot.slane %v8466_v10, 1 }
 0x149   : > { %v5989_v37 = vsel %vm1531_vm2, %v1509_v45, %v8469_v38  ;;  %4449 = vset.pattern.permute.xlu1 %v8387_v29  ;;  %8472 = vst [vmem:[#allocation125_spill] sm:$0xff] %v5999_v41  ;;  %v6007_v38 = vld [vmem:[%s8011_s5 + $0x40] sm:$0xff]  ;;  %v1207_v53 = vmul.f32 %v5279_v8, %v1171_v15  ;;  %v1393_v41 = vpop.permute.xlu0 %1392  ;;  %v8479_v15 = vrot.slane %v8473_v19, 1 }
 0x14a   : > { %8470 = vst [vmem:[#allocation123_spill] sm:$0xff] %v5989_v37  ;;  %8471 = vst [vmem:[#allocation124_spill] sm:$0xff] %v5993_v16  ;;  %v1735_v43 = vmul.f32 %v5433_v4, %v1699_v24  ;;  %2509 = vperm.xlu1 %4449, %v6007_v38   ;;  %v6017_v32 = vsel %vm1531_vm2, %v8475_v39, %v8144_v0  ;;  %v4570_v24 = vld [vmem:[%s8011_s5 + $0xb0] sm:$0xff]  ;;  %v8478_v37 = vrot.slane %v5732_v33, 1  ;;  %v8150_v16 = vrot.slane %v5759_v2, 1  ;;  %v8481_v0 = vld [vmem:[#allocation91_spill] sm:$0xff] }
 0x14b   : > { %8474 = vst [vmem:[#allocation126_spill] sm:$0xff] %v6007_v38  ;;  %8476 = vst [vmem:[#allocation127_spill] sm:$0xff] %v6017_v32  ;;  %2793 = vperm.xlu0 %4544, %v4570_v24   ;;  %v924_v39 = vmul.f32 %v5264_v50, %v8394_v36  ;;  %v2042_v24 = vpop.permute.xlu1 %2041  ;;  %v6039_v47 = vmul.f32 %v1393_v41, %v5943_v7  ;;  %v6058_v41 = vmul.f32 %v5279_v8, %v5902_v13  ;;  %v8486_v38 = vmov 1   ;;  %v6075_v13 = vld [vmem:[%s8011_s5 + $0x70] sm:$0xff] }
 0x14c   : > { %v6029_v18 = vsel %vm1531_vm2, %v8479_v15, %v8478_v37  ;;  %v6036_v32 = vadd.f32 %v1735_v43, %v5677_v17  ;;  %v2153_v37 = vmul.f32 %v2042_v24, %v8467_v56  ;;  %v8483_v15 = vrot.slane %v8477_v55, 1  ;;  %v8487_v24 = vld [vmem:[#allocation87_spill] sm:$0xff]  ;;  %8491 = vst [vmem:[#allocation132_spill] sm:$0xff] %v6075_v13 }
 0x14d   : > { %8480 = vst [vmem:[#allocation128_spill] sm:$0xff] %v6029_v18  ;;  %8482 = vst [vmem:[#allocation129_spill] sm:$0xff] %v6039_v47  ;;  %v6053_v17 = vadd.f32 %v5860_v12, %v924_v39  ;;  %v8153_v43 = vrot.slane %v5943_v7, 1  ;;  %v1239_v33 = vadd.f32 %v1207_v53, %v8487_v24  ;;  %v8488_v47 = vrot.slane %v5777_v30, 1  ;;  %v6081_v53 = vld [vmem:[%s8011_s5 + $0xc0] sm:$0xff]  ;;  %v1794_v12 = vpop.permute.xlu0 %1793  ;;  %v8515_v56 = vld [vmem:[#allocation51_spill] sm:$0xff] }
 0x14e   : > { %v6050_v44 = vsel %vm1531_vm2, %v8483_v15, %v8150_v16  ;;  %4450 = vset.pattern.permute.xlu1 %v8486_v38  ;;  %v8489_v18 = vrot.slane %v8481_v0, 1  ;;  %v2189_v39 = vmul.f32 %v5500_v27, %v2153_v37  ;;  %v6095_v24 = vsel %vm1531_vm2, %v1508_v14, %v1509_v45  ;;  %v8498_v14 = vld [vmem:[#allocation23_spill] sm:$0xff]  ;;  %v8514_v7 = vld [vmem:[#allocation74_spill] sm:$0xff] }
 0x14f   : > { %8484 = vst [vmem:[#allocation130_spill] sm:$0xff] %v6050_v44  ;;  %8485 = vst [vmem:[#allocation131_spill] sm:$0xff] %v6053_v17  ;;  %1328 = vperm.xlu1 %4450, %v6075_v13   ;;  %2801 = vperm.xlu0 %4544, %v6081_v53   ;;  %v6099_v16 = vmul.f32 %v5279_v8, %v5923_v62  ;;  %v1435_v17 = vmul.f32 %v5334_v49, %v5954_v23  ;;  %v8495_v44 = vrot.slane %v5660_v46, 7  ;;  %v8503_v13 = vld [vmem:[#allocation31_spill] sm:$0xff] }
 0x150   : > { %v6068_v15 = vsel %vm1531_vm2, %v8489_v18, %v8488_v47  ;;  %v8492_v18 = vrot.slane %v5801_v20, 1  ;;  %8494 = vst [vmem:[#allocation134_spill] sm:$0xff] %v6095_v24  ;;  %v1198_v45 = vmul.f32 %v8498_v14, %v5637_v21  ;;  %v2221_v62 = vadd.f32 %v2189_v39, %v5736_v5  ;;  %v8506_v39 = vld [vmem:[#allocation107_spill] sm:$0xff]  ;;  %v8513_v21 = vld [vmem:[#allocation13_spill] sm:$0xff] }
 0x151   : > { %8490 = vst [vmem:[#allocation87_spill] sm:$0xff] %v6068_v15  ;;  %v1920_v37 = vmul.f32 %v1794_v12, %v5751_v26  ;;  %v8499_v23 = vrot.slane %v5686_v6, 1  ;;  %v8500_v15 = vrot.slane %v5826_v35, 1  ;;  %v8504_v5 = vrot.slane %v8394_v36, 1 }
 0x152   : > { %v6090_v47 = vsel %vm1531_vm2, %v8492_v18, %v8153_v43  ;;  %v8496_v18 = vrot.slane %v8448_v58, 7  ;;  %v8502_v58 = vld [vmem:[#allocation77_spill] sm:$0xff]  ;;  %v1412_v26 = vmul.f32 %v8506_v39, %v5660_v46  ;;  %v1806_v39 = vpop.permute.xlu0 %1805 }
 0x153   : > { %8493 = vst [vmem:[#allocation133_spill] sm:$0xff] %v6090_v47  ;;  %v2266_v47 = vpop.permute.xlu1 %2265  ;;  %v6122_v24 = vsel %vm1531_vm2, %v8500_v15, %v8499_v23  ;;  %v6132_v12 = vsel %vm1531_vm2, %v8504_v5, %v1512_v59  ;;  %4451 = vset.pattern.permute.xlu1 %v8425_v51  ;;  %v6140_v15 = vld [vmem:[%s8011_s5 + $0xd8] sm:$0xff]  ;;  %v1956_v5 = vmul.f32 %v5517_v31, %v1920_v37 }
 0x154   : > { %v6110_v43 = vsel %vm978_vm3, %v8496_v18, %v8495_v44  ;;  %8501 = vst [vmem:[#allocation23_spill] sm:$0xff] %v6122_v24  ;;  %v2152_v44 = vmul.f32 %v5738_v34, %v8502_v58  ;;  %v1467_v18 = vadd.f32 %v1435_v17, %v1239_v33  ;;  %v1692_v14 = vmul.f32 %v8503_v13, %v6122_v24  ;;  %v8508_v33 = vld [vmem:[#allocation64_spill] sm:$0xff]  ;;  %v8511_v59 = vld [vmem:[#allocation69_spill] sm:$0xff]  ;;  %v8512_v24 = vld [vmem:[#allocation39_spill] sm:$0xff] }
 0x155   : > { %8497 = vst [vmem:[#allocation135_spill] sm:$0xff] %v6110_v43  ;;  %8505 = vst [vmem:[#allocation77_spill] sm:$0xff] %v6132_v12  ;;  %2813 = vperm.xlu0 %4544, %v6140_v15   ;;  %v8509_v34 = vld [vmem:[#allocation12_spill] sm:$0xff]  ;;  %v6146_v13 = vadd.f32 %v5919_v3, %v2221_v62  ;;  %v8174_v23 = vrot.slane %v8511_v59, 1  ;;  %1617 = vperm.xlu1 %4451, %v5884_v60   ;;  %v1188_v12 = vmul.f32 %v8513_v21, %v8512_v24  ;;  %v8516_v3 = vld [vmem:[#allocation9_spill] sm:$0xff] }
 0x156   : > { %8507 = vst [vmem:[#allocation31_spill] sm:$0xff] %v6140_v15  ;;  %v1185_v17 = vmul.f32 %v8509_v34, %v8508_v33  ;;  %v1728_v51 = vmul.f32 %v5433_v4, %v1692_v14  ;;  %v6156_v35 = vmul.f32 %v1806_v39, %v8515_v56  ;;  %v1184_v62 = vmul.f32 %v8516_v3, %v6110_v43 }
 0x157   : > { %8510 = vst [vmem:[#allocation107_spill] sm:$0xff] %v6146_v13  ;;  %v8517_v34 = vrot.slane %v8466_v10, 1  ;;  %v6170_v14 = vmul.f32 %v5279_v8, %v1198_v45  ;;  %v2714_v15 = vpop.permute.xlu1 %2713  ;;  %v8519_v39 = vrot.slane %v8473_v19, 1  ;;  %v8520_v56 = vrot.slane %v8514_v7, 1 }
 0x158   : > { %v1760_v13 = vadd.f32 %v1728_v51, %v1467_v18  ;;  %v2834_v21 = vmul.f32 %v2714_v15, %v8502_v58  ;;  %v8522_v51 = vrot.slane %v8477_v55, 1  ;;  %v8523_v45 = vrot.slane %v5519_v40, 1  ;;  %v1810_v58 = vpop.permute.xlu0 %1809 }
 0x159   : > { %v6166_v37 = vsel %vm1531_vm2, %v8174_v23, %v8517_v34  ;;  %v6178_v3 = vsel %vm1531_vm2, %v8520_v56, %v8519_v39  ;;  %v2188_v34 = vmul.f32 %v5500_v27, %v2152_v44  ;;  %v1448_v23 = vmul.f32 %v5334_v49, %v1412_v26  ;;  %4547 = vset.pattern.permute.xlu0 %v8387_v29  ;;  %v6196_v56 = vld [vmem:[%s8009_s3 + $0x8] ss:$0 sm:$0xff]  ;;  %v8526_v26 = vld [vmem:[#allocation56_spill] sm:$0xff] }
 0x15a   : > { %8518 = vst [vmem:[#allocation12_spill] sm:$0xff] %v6166_v37  ;;  %8521 = vst [vmem:[#allocation13_spill] sm:$0xff] %v6178_v3  ;;  %v6191_v18 = vsel %vm1531_vm2, %v8523_v45, %v8522_v51  ;;  %v8525_v44 = vmov 5   ;;  %2501 = vperm.xlu0 %4547, %v8526_v26   ;;  %v1221_v15 = vmul.f32 %v5279_v8, %v1185_v17  ;;  %v1224_v39 = vmul.f32 %v5279_v8, %v1188_v12  ;;  %v8530_v17 = vld [vmem:[#allocation46_spill] sm:$0xff] }
 0x15b   : > { %8524 = vst [vmem:[#allocation9_spill] sm:$0xff] %v6191_v18  ;;  %4452 = vset.pattern.permute.xlu1 %v8525_v44  ;;  %v1988_v43 = vadd.f32 %v1956_v5, %v1760_v13  ;;  %v2870_v3 = vmul.f32 %v6196_v56, %v2834_v21  ;;  %v1924_v51 = vmul.f32 %v1810_v58, %v8436_v28  ;;  %v8527_v18 = vrot.slane %v8481_v0, 1  ;;  %v8531_v13 = vld [vmem:[#allocation90_spill] sm:$0xff]  ;;  %v8532_v21 = vld [vmem:[#allocation105_spill] sm:$0xff] }
 0x15c   : > { %2065 = vperm.xlu1 %4452, %v5908_v48   ;;  %v1220_v45 = vmul.f32 %v5279_v8, %v1184_v62  ;;  %v8528_v37 = vrot.slane %v5598_v57, 1  ;;  %v2832_v12 = vmul.f32 %v5871_v42, %v8530_v17  ;;  %v2380_v5 = vmul.f32 %v2266_v47, %v8531_v13  ;;  %v1309_v57 = vpop.permute.xlu1 %1308 }
 0x15d   : > { %v2216_v7 = vadd.f32 %v8532_v21, %v1988_v43  ;;  %v926_v28 = vmul.f32 %v5264_v50, %v5662_v11  ;;  %v6221_v62 = vadd.f32 %v2870_v3, %v5949_v54  ;;  %v1960_v58 = vmul.f32 %v5517_v31, %v1924_v51  ;;  %v1818_v54 = vpop.permute.xlu0 %1817  ;;  %v8537_v3 = vld [vmem:[#allocation19_spill] sm:$0xff]  ;;  %v8538_v51 = vld [vmem:[#allocation112_spill] sm:$0xff]  ;;  %v8542_v11 = vld [vmem:[#allocation114_spill] sm:$0xff] }
 0x15e   : > { %v6212_v26 = vsel %vm1531_vm2, %v8528_v37, %v8527_v18  ;;  %v8534_v48 = vrot.slane %v5801_v20, 1  ;;  %v8535_v37 = vrot.slane %v5777_v30, 1  ;;  %v925_v43 = vmul.f32 %v5264_v50, %v8465_v9  ;;  %2513 = vperm.xlu0 %4547, %v5668_v25  }
 0x15f   : > { %8529 = vst [vmem:[#allocation56_spill] sm:$0xff] %v6212_v26  ;;  %8533 = vst [vmem:[#allocation46_spill] sm:$0xff] %v6221_v62  ;;  %v1408_v47 = vmul.f32 %v1309_v57, %v5293_v63  ;;  %v1194_v18 = vmul.f32 %v8537_v3, %v5809_v1  ;;  %v2444_v17 = vadd.f32 %v8538_v51, %v2216_v7  ;;  %v8540_v62 = vld [vmem:[#allocation115_spill] sm:$0xff]  ;;  %v8543_v3 = vld [vmem:[#allocation104_spill] sm:$0xff] }
 0x160   : > { %v6230_v42 = vsel %vm1531_vm2, %v8535_v37, %v8534_v48  ;;  %v6239_v21 = vadd.f32 %v1221_v15, %v926_v28  ;;  %v1418_v26 = vmul.f32 %v8540_v62, %v5684_v52  ;;  %v8541_v48 = vld [vmem:[#allocation98_spill] sm:$0xff]  ;;  %4453 = vset.pattern.permute.xlu1 %v8458_v61  ;;  %v1252_v57 = vadd.f32 %v1220_v45, %v925_v43  ;;  %v8549_v43 = vld [vmem:[#allocation97_spill] sm:$0xff]  ;;  %v1822_v51 = vpop.permute.xlu1 %1821 }
 0x161   : > { %8536 = vst [vmem:[#allocation90_spill] sm:$0xff] %v6230_v42  ;;  %v1992_v37 = vadd.f32 %v1960_v58, %v8541_v48  ;;  %v1926_v42 = vmul.f32 %v1818_v54, %v8531_v13  ;;  %v2868_v30 = vmul.f32 %v6196_v56, %v2832_v12  ;;  %v1444_v9 = vmul.f32 %v5334_v49, %v1408_v47  ;;  %v8547_v13 = vld [vmem:[#allocation83_spill] sm:$0xff]  ;;  %v8550_v48 = vld [vmem:[#allocation113_spill] sm:$0xff] }
 0x162   : > { %8539 = vst [vmem:[#allocation105_spill] sm:$0xff] %v6239_v21  ;;  %2289 = vperm.xlu1 %4453, %v8542_v11   ;;  %v2672_v7 = vadd.f32 %v8543_v3, %v2444_v17  ;;  %v8544_v15 = vrot.slane %v8394_v36, 1  ;;  %v8545_v28 = vrot.slane %v5660_v46, 1  ;;  %v2416_v58 = vmul.f32 %v8547_v13, %v2380_v5  ;;  %v1830_v17 = vpop.permute.xlu0 %1829  ;;  %2525 = vperm.xlu0 %4547, %v8550_v48   ;;  %v8611_v21 = vld [vmem:[#allocation85_spill] sm:$0xff] }
 0x163   : > { %v2220_v54 = vadd.f32 %v2188_v34, %v1992_v37  ;;  %v1962_v45 = vmul.f32 %v5517_v31, %v1926_v42  ;;  %v6260_v12 = vadd.f32 %v1448_v23, %v1252_v57  ;;  %v6263_v47 = vadd.f32 %v1444_v9, %v8549_v43  ;;  %v8552_v34 = vld [vmem:[#allocation99_spill] sm:$0xff]  ;;  %v8553_v42 = vld [vmem:[#allocation58_spill] sm:$0xff] }
 0x164   : > { %v6256_v62 = vsel %vm1531_vm2, %v8545_v28, %v8544_v15  ;;  %v6266_v3 = vadd.f32 %v2868_v30, %v2672_v7  ;;  %v927_v15 = vmul.f32 %v5264_v50, %v8511_v59  ;;  %v929_v5 = vmul.f32 %v5264_v50, %v5684_v52  ;;  %v8554_v57 = vld [vmem:[#allocation102_spill] sm:$0xff] }
 0x165   : > { %8546 = vst [vmem:[#allocation19_spill] sm:$0xff] %v6256_v62  ;;  %8548 = vst [vmem:[#allocation112_spill] sm:$0xff] %v6260_v12  ;;  %v1994_v37 = vadd.f32 %v1962_v45, %v8552_v34  ;;  %v1927_v23 = vmul.f32 %v1822_v51, %v8553_v42  ;;  %v6275_v28 = vmul.f32 %v1830_v17, %v8554_v57  ;;  %v8555_v43 = vmov 8  }
 0x166   : > { %8551 = vst [vmem:[#allocation115_spill] sm:$0xff] %v6266_v3  ;;  %v2448_v9 = vadd.f32 %v2416_v58, %v2220_v54  ;;  %4454 = vset.pattern.permute.xlu1 %v8555_v43  ;;  %v1230_v46 = vmul.f32 %v5279_v8, %v1194_v18  ;;  %v6280_v30 = vadd.f32 %v6058_v41, %v927_v15  ;;  %v8558_v3 = vrot.slane %v5684_v52, 7  ;;  %v8561_v54 = vld [vmem:[#allocation126_spill] sm:$0xff]  ;;  %v8562_v18 = vld [vmem:[#allocation15_spill] sm:$0xff]  ;;  %v1842_v17 = vpop.permute.xlu0 %1841  ;;  %v6302_v15 = vld [vmem:[%s8011_s5 + $0x78] sm:$0xff] }
 0x167   : > { %v6282_v7 = vadd.f32 %v1224_v39, %v929_v5  ;;  %v8559_v12 = vrot.slane %v8466_v10, 7  ;;  %v1454_v51 = vmul.f32 %v5334_v49, %v1418_v26  ;;  %v1963_v58 = vmul.f32 %v5517_v31, %v1927_v23  ;;  %2737 = vperm.xlu1 %4454, %v8561_v54   ;;  %2537 = vperm.xlu0 %4547, %v6302_v15   ;;  %v2046_v54 = vpop.permute.xlu1 %2045  ;;  %v8602_v52 = vld [vmem:[#allocation78_spill] sm:$0xff] }
 0x168   : > { %8556 = vst [vmem:[#allocation98_spill] sm:$0xff] %v6280_v30  ;;  %v931_v39 = vmul.f32 %v5264_v50, %v8473_v19  ;;  %v933_v26 = vmul.f32 %v5264_v50, %v5519_v40  ;;  %v8564_v5 = vrot.slane %v8477_v55, 7  ;;  %v937_v42 = vmul.f32 %v5264_v50, %v8481_v0  ;;  %v8583_v19 = vld [vmem:[#allocation34_spill] sm:$0xff] }
 0x169   : > { %8557 = vst [vmem:[#allocation114_spill] sm:$0xff] %v6282_v7  ;;  %v6290_v45 = vsel %vm978_vm3, %v8559_v12, %v8558_v3  ;;  %v935_v12 = vmul.f32 %v5264_v50, %v5759_v2  ;;  %v8563_v3 = vrot.slane %v5759_v2, 7  ;;  %v6320_v23 = vadd.f32 %v1963_v58, %v6036_v32  ;;  %v8566_v2 = vld [vmem:[#allocation21_spill] sm:$0xff]  ;;  %v8567_v7 = vld [vmem:[#allocation103_spill] sm:$0xff]  ;;  %v8570_v58 = vld [vmem:[#allocation120_spill] sm:$0xff] }
 0x16a   : > { %8560 = vst [vmem:[#allocation104_spill] sm:$0xff] %v6290_v45  ;;  %v1190_v41 = vmul.f32 %v8562_v18, %v6290_v45  ;;  %v6323_v18 = vmul.f32 %v1842_v17, %v8508_v33  ;;  %v2154_v55 = vmul.f32 %v2046_v54, %v8567_v7  ;;  %v939_v32 = vmul.f32 %v5264_v50, %v5801_v20  ;;  %v1854_v54 = vpop.permute.xlu0 %1853  ;;  %v8579_v20 = vld [vmem:[#allocation50_spill] sm:$0xff] }
 0x16b   : > { %v6315_v34 = vsel %vm978_vm3, %v8564_v5, %v8563_v3  ;;  %v6330_v3 = vadd.f32 %v6099_v16, %v933_v26  ;;  %v6332_v5 = vadd.f32 %v1230_v46, %v935_v12  ;;  %v1460_v0 = vmul.f32 %v5334_v49, %v8570_v58  ;;  %4455 = vset.pattern.permute.xlu1 %v8486_v38  ;;  %v6345_v46 = vld [vmem:[%s8011_s5 + $0x90] sm:$0xff] }
 0x16c   : > { %8565 = vst [vmem:[#allocation83_spill] sm:$0xff] %v6315_v34  ;;  %v1226_v45 = vmul.f32 %v5279_v8, %v1190_v41  ;;  %v1196_v40 = vmul.f32 %v8566_v2, %v6315_v34  ;;  %v2190_v2 = vmul.f32 %v5500_v27, %v2154_v55  ;;  %1332 = vperm.xlu1 %4455, %v6302_v15  }
 0x16d   : > { %8568 = vst [vmem:[#allocation97_spill] sm:$0xff] %v6330_v3  ;;  %8569 = vst [vmem:[#allocation113_spill] sm:$0xff] %v6332_v5  ;;  %2549 = vperm.xlu0 %4547, %v6345_v46   ;;  %v6349_v16 = vadd.f32 %v6170_v14, %v939_v32  ;;  %v6352_v26 = vmul.f32 %v1854_v54, %v8512_v24  ;;  %v2494_v3 = vpop.permute.xlu1 %2493  ;;  %v8581_v54 = vld [vmem:[#allocation33_spill] sm:$0xff] }
 0x16e   : > { %v1258_v17 = vadd.f32 %v1226_v45, %v931_v39  ;;  %v1232_v41 = vmul.f32 %v5279_v8, %v1196_v40  ;;  %v8573_v45 = vld [vmem:[#allocation44_spill] sm:$0xff]  ;;  %v8575_v39 = vld [vmem:[#allocation43_spill] sm:$0xff]  ;;  %v6364_v5 = vadd.f32 %v2190_v2, %v1994_v37  ;;  %v2608_v14 = vmul.f32 %v2494_v3, %v8579_v20  ;;  %v1866_v24 = vpop.permute.xlu0 %1865 }
 0x16f   : > { %8571 = vst [vmem:[#allocation99_spill] sm:$0xff] %v6349_v16  ;;  %8572 = vst [vmem:[#allocation58_spill] sm:$0xff] %v6352_v26  ;;  %v8574_v40 = vrot.slane %v8573_v45, 1  ;;  %v8576_v55 = vrot.slane %v8575_v39, 1  ;;  %v1402_v16 = vmul.f32 %v8581_v54, %v8575_v39  ;;  %v8582_v45 = vmov 3  }
 0x170   : > { %v6362_v58 = vadd.f32 %v1454_v51, %v1258_v17  ;;  %v1264_v34 = vadd.f32 %v1232_v41, %v937_v42  ;;  %4456 = vset.pattern.permute.xlu1 %v8582_v45  ;;  %v6377_v51 = vld [vmem:[%s8011_s5 + $0xa8] sm:$0xff]  ;;  %v8585_v20 = vrot.slane %v8575_v39, 7  ;;  %v8589_v42 = vld [vmem:[#allocation80_spill] sm:$0xff]  ;;  %v8592_v41 = vld [vmem:[#allocation41_spill] sm:$0xff] }
 0x171   : > { %v6360_v12 = vsel %vm1531_vm2, %v8576_v55, %v8574_v40  ;;  %8584 = vst [vmem:[#allocation21_spill] sm:$0xff] %v6377_v51  ;;  %2561 = vperm.xlu0 %4547, %v6377_v51   ;;  %v2644_v3 = vmul.f32 %v8589_v42, %v2608_v14  ;;  %1845 = vperm.xlu1 %4456, %v5884_v60   ;;  %v8593_v55 = vld [vmem:[#allocation5_spill] sm:$0xff]  ;;  %v8599_v51 = vld [vmem:[#allocation54_spill] sm:$0xff] }
 0x172   : > { %8577 = vst [vmem:[#allocation102_spill] sm:$0xff] %v6360_v12  ;;  %8578 = vst [vmem:[#allocation126_spill] sm:$0xff] %v6362_v58  ;;  %v6367_v32 = vadd.f32 %v1460_v0, %v1264_v34  ;;  %v1695_v40 = vmul.f32 %v8583_v19, %v6360_v12  ;;  %v8586_v0 = vld [vmem:[#allocation75_spill] sm:$0xff]  ;;  %v8590_v19 = vld [vmem:[#allocation109_spill] sm:$0xff]  ;;  %v915_v2 = vmul.f32 %v5264_v50, %v8592_v41  ;;  %v2718_v58 = vpop.permute.xlu1 %2717 }
 0x173   : > { %v8587_v37 = vrot.slane %v8586_v0, 7  ;;  %v6391_v17 = vmul.f32 %v1866_v24, %v8590_v19  ;;  %v1438_v14 = vmul.f32 %v5334_v49, %v1402_v16  ;;  %v8601_v16 = vld [vmem:[#allocation60_spill] sm:$0xff] }
 0x174   : > { %8580 = vst [vmem:[#allocation15_spill] sm:$0xff] %v6367_v32  ;;  %v6397_v32 = vadd.f32 %v2644_v3, %v2448_v9  ;;  %v2151_v33 = vmul.f32 %v8602_v52, %v8601_v16  ;;  %v8606_v52 = vld [vmem:[#allocation6_spill] sm:$0xff] }
 0x175   : > { %v6386_v34 = vsel %vm978_vm3, %v8587_v37, %v8585_v20  ;;  %8591 = vst [vmem:[#allocation120_spill] sm:$0xff] %v6391_v17  ;;  %v1878_v20 = vpop.permute.xlu0 %1877  ;;  %2573 = vperm.xlu0 %4547, %v6081_v53   ;;  %4457 = vset.pattern.permute.xlu1 %v8525_v44  ;;  %v1731_v37 = vmul.f32 %v5433_v4, %v1695_v40  ;;  %v8595_v17 = vrot.slane %v5686_v6, 7  ;;  %v8600_v53 = vld [vmem:[#allocation63_spill] sm:$0xff] }
 0x176   : > { %8588 = vst [vmem:[#allocation103_spill] sm:$0xff] %v6386_v34  ;;  %v1174_v54 = vmul.f32 %v8593_v55, %v6386_v34  ;;  %v6404_v24 = vmul.f32 %v1878_v20, %v5809_v1  ;;  %v8596_v55 = vld [vmem:[#allocation7_spill] sm:$0xff]  ;;  %v2379_v30 = vmul.f32 %v8600_v53, %v8599_v51  ;;  %2069 = vperm.xlu1 %4457, %v8550_v48   ;;  %v1602_v62 = vpop.permute.xlu1 %1601 }
 0x177   : > { %v8597_v9 = vrot.slane %v8596_v55, 7  ;;  %v1959_v40 = vmul.f32 %v5517_v31, %v6156_v35  ;;  %v8603_v1 = vld [vmem:[#allocation47_spill] sm:$0xff] }
 0x178   : > { %v1210_v26 = vmul.f32 %v5279_v8, %v1174_v54  ;;  %8594 = vst [vmem:[#allocation44_spill] sm:$0xff] %v6404_v24  ;;  %v8604_v24 = vld [vmem:[#allocation30_spill] sm:$0xff] }
 0x179   : > { %v6413_v3 = vsel %vm978_vm3, %v8597_v9, %v8595_v17  ;;  %v2607_v55 = vmul.f32 %v8604_v24, %v8603_v1  ;;  %v1890_v19 = vpop.permute.xlu0 %1889  ;;  %v8607_v17 = vld [vmem:[#allocation111_spill] sm:$0xff]  ;;  %v8608_v9 = vld [vmem:[#allocation116_spill] sm:$0xff]  ;;  %v2415_v1 = vmul.f32 %v8547_v13, %v2379_v30  ;;  %v2187_v24 = vmul.f32 %v5500_v27, %v2151_v33 }
 0x17a   : > { %8598 = vst [vmem:[#allocation50_spill] sm:$0xff] %v6413_v3  ;;  %v1242_v54 = vadd.f32 %v1210_v26, %v915_v2  ;;  %v6427_v26 = vld [vmem:[%s8011_s5 + $0xd0] sm:$0xff]  ;;  %v1172_v51 = vmul.f32 %v8606_v52, %v6413_v3  ;;  %v1701_v2 = vmul.f32 %v1602_v62, %v8607_v17  ;;  %v6434_v35 = vmul.f32 %v1890_v19, %v8608_v9  ;;  %v8613_v3 = vld [vmem:[#allocation31_spill] sm:$0xff] }
 0x17b   : > { %8605 = vst [vmem:[#allocation33_spill] sm:$0xff] %v6427_v26  ;;  %2581 = vperm.xlu0 %4547, %v6427_v26   ;;  %4458 = vset.pattern.permute.xlu1 %v8387_v29  ;;  %v1965_v26 = vmul.f32 %v5517_v31, %v6275_v28  ;;  %v2835_v52 = vmul.f32 %v2718_v58, %v8611_v21  ;;  %v1826_v21 = vpop.permute.xlu1 %1825  ;;  %v8614_v58 = vld [vmem:[#allocation66_spill] sm:$0xff] }
 0x17c   : > { %v1470_v20 = vadd.f32 %v1438_v14, %v1242_v54  ;;  %8609 = vst [vmem:[#allocation34_spill] sm:$0xff] %v6434_v35  ;;  %v8610_v54 = vld [vmem:[#allocation29_spill] sm:$0xff]  ;;  %v1737_v62 = vmul.f32 %v5433_v4, %v1701_v2  ;;  %2517 = vperm.xlu1 %4458, %v8542_v11   ;;  %v1208_v35 = vmul.f32 %v5279_v8, %v1172_v51  ;;  %v8616_v11 = vrot.slane %v8586_v0, 1 }
 0x17d   : > { %v1400_v53 = vmul.f32 %v8610_v54, %v5686_v6  ;;  %v1902_v30 = vpop.permute.xlu0 %1901  ;;  %v913_v54 = vmul.f32 %v5264_v50, %v8575_v39  ;;  %v8620_v39 = vld [vmem:[#allocation68_spill] sm:$0xff] }
 0x17e   : > { %v1763_v14 = vadd.f32 %v1731_v37, %v1470_v20  ;;  %v2643_v37 = vmul.f32 %v8589_v42, %v2607_v55  ;;  %v8612_v20 = vld [vmem:[#allocation119_spill] sm:$0xff]  ;;  %v1769_v28 = vadd.f32 %v1737_v62, %v6263_v47  ;;  %v6454_v2 = vmul.f32 %v1902_v30, %v8614_v58  ;;  %v8651_v58 = vld [vmem:[#allocation28_spill] sm:$0xff] }
 0x17f   : > { %2585 = vperm.xlu0 %4547, %v8613_v3   ;;  %v8617_v55 = vrot.slane %v5686_v6, 1  ;;  %v8621_v9 = vrot.slane %v8620_v39, 7  ;;  %v8622_v51 = vrot.slane %v8612_v20, 7  ;;  %v1436_v62 = vmul.f32 %v5334_v49, %v1400_v53  ;;  %v8624_v53 = vld [vmem:[#allocation32_spill] sm:$0xff] }
 0x180   : > { %v1991_v19 = vadd.f32 %v1959_v40, %v1763_v14  ;;  %8615 = vst [vmem:[#allocation80_spill] sm:$0xff] %v6454_v2  ;;  %v8619_v14 = vld [vmem:[#allocation117_spill] sm:$0xff]  ;;  %v2871_v30 = vmul.f32 %v6196_v56, %v2835_v52  ;;  %4459 = vset.pattern.permute.xlu1 %v8555_v43  ;;  %v6476_v0 = vadd.f32 %v1965_v26, %v1769_v28  ;;  %v8626_v28 = vld [vmem:[#allocation124_spill] sm:$0xff] }
 0x181   : > { %v6462_v40 = vsel %vm1531_vm2, %v8617_v55, %v8616_v11  ;;  %v1928_v33 = vmul.f32 %v1826_v21, %v8619_v14  ;;  %v6471_v47 = vsel %vm978_vm3, %v8622_v51, %v8621_v9  ;;  %2741 = vperm.xlu1 %4459, %v5668_v25   ;;  %v4578_v21 = vld [vmem:[%s8011_s5 + $0xe8] sm:$0xff]  ;;  %v1240_v9 = vadd.f32 %v1208_v35, %v913_v54  ;;  %v4579_v35 = vld [vmem:[%s8011_s5 + $0xf0] sm:$0xff] }
 0x182   : > { %8618 = vst [vmem:[#allocation41_spill] sm:$0xff] %v6462_v40  ;;  %v2219_v3 = vadd.f32 %v2187_v24, %v1991_v19  ;;  %8623 = vst [vmem:[#allocation5_spill] sm:$0xff] %v6471_v47  ;;  %v1910_v19 = vpop.permute.xlu0 %1909  ;;  %v1693_v55 = vmul.f32 %v8624_v53, %v6462_v40  ;;  %v8628_v51 = vmov 2   ;;  %v8633_v53 = vld [vmem:[#allocation57_spill] sm:$0xff] }
 0x183   : > { %v1964_v24 = vmul.f32 %v5517_v31, %v1928_v33  ;;  %2593 = vperm.xlu0 %4547, %v4578_v21   ;;  %v6486_v52 = vmul.f32 %v1910_v19, %v6471_v47  ;;  %v2274_v33 = vpop.permute.xlu1 %2273  ;;  %v1468_v54 = vadd.f32 %v1436_v62, %v1240_v9  ;;  %v8632_v21 = vld [vmem:[#allocation51_spill] sm:$0xff]  ;;  %v8646_v47 = vld [vmem:[#allocation4_spill] sm:$0xff] }
 0x184   : > { %v2447_v11 = vadd.f32 %v2415_v1, %v2219_v3  ;;  %v2382_v25 = vmul.f32 %v2274_v33, %v8619_v14  ;;  %v1729_v19 = vmul.f32 %v5433_v4, %v1693_v55  ;;  %v8631_v14 = vld [vmem:[#allocation35_spill] sm:$0xff] }
 0x185   : > { %8625 = vst [vmem:[#allocation54_spill] sm:$0xff] %v6486_v52  ;;  %v6489_v1 = vadd.f32 %v1964_v24, %v8626_v28  ;;  %4460 = vset.pattern.permute.xlu1 %v8628_v51 }
 0x186   : > { %v2675_v26 = vadd.f32 %v2643_v37, %v2447_v11  ;;  %v1914_v6 = vpop.permute.xlu0 %1913  ;;  %v2418_v37 = vmul.f32 %v8547_v13, %v2382_v25  ;;  %1625 = vperm.xlu1 %4460, %v6302_v15   ;;  %v8629_v11 = vld [vmem:[#allocation17_spill] sm:$0xff]  ;;  %v1761_v9 = vadd.f32 %v1729_v19, %v1468_v54  ;;  %v8640_v19 = vld [vmem:[#allocation134_spill] sm:$0xff] }
 0x187   : > { %2597 = vperm.xlu0 %4547, %v4579_v35   ;;  %v6502_v24 = vmul.f32 %v1914_v6, %v8629_v11  ;;  %v2498_v33 = vpop.permute.xlu1 %2497  ;;  %v8634_v25 = vld [vmem:[#allocation53_spill] sm:$0xff] }
 0x188   : > { %v6492_v3 = vadd.f32 %v2871_v30, %v2675_v26  ;;  %v1921_v30 = vmul.f32 %v8631_v14, %v6386_v34  ;;  %v2377_v26 = vmul.f32 %v8633_v53, %v8632_v21  ;;  %v6509_v28 = vadd.f32 %v2418_v37, %v6364_v5  ;;  %v8636_v6 = vld [vmem:[#allocation61_spill] sm:$0xff]  ;;  %v8639_v37 = vld [vmem:[#allocation132_spill] sm:$0xff]  ;;  %v8642_v34 = vld [vmem:[#allocation94_spill] sm:$0xff] }
 0x189   : > { %8630 = vst [vmem:[#allocation60_spill] sm:$0xff] %v6502_v24  ;;  %v2609_v62 = vmul.f32 %v2498_v33, %v5293_v63  ;;  %v8635_v35 = vrot.slane %v8634_v25, 7  ;;  %v8637_v40 = vrot.slane %v8636_v6, 7  ;;  %v8641_v53 = vld [vmem:[#allocation37_spill] sm:$0xff]  ;;  %v2605_v11 = vmul.f32 %v8642_v34, %v8592_v41 }
 0x18a   : > { %8627 = vst [vmem:[#allocation63_spill] sm:$0xff] %v6492_v3  ;;  %4461 = vset.pattern.permute.xlu1 %v8582_v45  ;;  %v2026_v55 = vpop.permute.xlu0 %2025  ;;  %v1957_v63 = vmul.f32 %v5517_v31, %v1921_v30  ;;  %v2413_v54 = vmul.f32 %v8547_v13, %v2377_v26  ;;  %v1703_v33 = vmul.f32 %v8641_v53, %v8640_v19  ;;  %v8643_v3 = vld [vmem:[#allocation107_spill] sm:$0xff] }
 0x18b   : > { %v6519_v14 = vsel %vm978_vm3, %v8637_v40, %v8635_v35  ;;  %v2645_v21 = vmul.f32 %v8589_v42, %v2609_v62  ;;  %v2149_v5 = vmul.f32 %v2026_v55, %v6360_v12  ;;  %1849 = vperm.xlu1 %4461, %v8639_v37   ;;  %v1317_v62 = vpop.permute.xlu1 %1316  ;;  %v8644_v55 = vld [vmem:[#allocation55_spill] sm:$0xff]  ;;  %v2641_v41 = vmul.f32 %v8589_v42, %v2605_v11 }
 0x18c   : > { %8638 = vst [vmem:[#allocation78_spill] sm:$0xff] %v6519_v14  ;;  %v1989_v35 = vadd.f32 %v1957_v63, %v1761_v9  ;;  %v1410_v12 = vmul.f32 %v1317_v62, %v8644_v55  ;;  %v1739_v34 = vmul.f32 %v5433_v4, %v1703_v33  ;;  %v8645_v9 = vld [vmem:[#allocation118_spill] sm:$0xff] }
 0x18d   : > { %v6531_v24 = vadd.f32 %v2645_v21, %v8643_v3  ;;  %v2185_v40 = vmul.f32 %v5500_v27, %v2149_v5 }
 0x18e   : > { %v2050_v52 = vpop.permute.xlu0 %2049  ;;  %v1446_v53 = vmul.f32 %v5334_v49, %v1410_v12 }
 0x18f   : > { %v2155_v30 = vmul.f32 %v2050_v52, %v8607_v17  ;;  %4462 = vset.pattern.permute.xlu1 %v8458_v61  ;;  %v2217_v26 = vadd.f32 %v2185_v40, %v1989_v35  ;;  %v1606_v63 = vpop.permute.xlu1 %1605  ;;  %v8647_v40 = vld [vmem:[#allocation123_spill] sm:$0xff] }
 0x190   : > { %2297 = vperm.xlu1 %4462, %v8550_v48   ;;  %v1478_v5 = vadd.f32 %v1446_v53, %v8645_v9  ;;  %v1702_v39 = vmul.f32 %v1606_v63, %v8646_v47  ;;  %v8652_v63 = vld [vmem:[#allocation125_spill] sm:$0xff] }
 0x191   : > { %v2191_v3 = vmul.f32 %v5500_v27, %v2155_v30  ;;  %v2445_v21 = vadd.f32 %v2413_v54, %v2217_v26  ;;  %v8648_v30 = vld [vmem:[#allocation11_spill] sm:$0xff]  ;;  %v8649_v54 = vld [vmem:[#allocation65_spill] sm:$0xff]  ;;  %v8650_v26 = vld [vmem:[#allocation70_spill] sm:$0xff] }
 0x192   : > { %v2062_v62 = vpop.permute.xlu0 %2061  ;;  %v6549_v33 = vadd.f32 %v1739_v34, %v1478_v5  ;;  %v1738_v11 = vmul.f32 %v5433_v4, %v1702_v39  ;;  %v2384_v53 = vmul.f32 %v8650_v26, %v8649_v54  ;;  %v8655_v5 = vld [vmem:[#allocation62_spill] sm:$0xff] }
 0x193   : > { %v2223_v52 = vadd.f32 %v2191_v3, %v6320_v23  ;;  %v2158_v35 = vmul.f32 %v2062_v62, %v8647_v40  ;;  %v6546_v12 = vadd.f32 %v2641_v41, %v2445_v21  ;;  %v2054_v3 = vpop.permute.xlu1 %2053  ;;  %v8654_v21 = vld [vmem:[#allocation14_spill] sm:$0xff]  ;;  %v1415_v62 = vmul.f32 %v8655_v5, %v8634_v25 }
 0x194   : > { %4463 = vset.pattern.permute.xlu1 %v8387_v29  ;;  %v1770_v23 = vadd.f32 %v1738_v11, %v8651_v58  ;;  %v2156_v41 = vmul.f32 %v2054_v3, %v8646_v47  ;;  %v1187_v34 = vmul.f32 %v8654_v21, %v6519_v14  ;;  %v2420_v39 = vmul.f32 %v8547_v13, %v2384_v53  ;;  %v6570_v58 = vld [vmem:[%s8011_s5 + $0x88] sm:$0xff] }
 0x195   : > { %2521 = vperm.xlu1 %4463, %v8648_v30  }
 0x196   : > { %v2074_v9 = vpop.permute.xlu0 %2073  ;;  %v2192_v26 = vmul.f32 %v5500_v27, %v2156_v41  ;;  %v1223_v53 = vmul.f32 %v5279_v8, %v1187_v34  ;;  %v1451_v41 = vmul.f32 %v5334_v49, %v1415_v62  ;;  %v8661_v34 = vld [vmem:[#allocation128_spill] sm:$0xff] }
 0x197   : > { %v6557_v2 = vmul.f32 %v2074_v9, %v8652_v63  ;;  %v8656_v9 = vld [vmem:[#allocation127_spill] sm:$0xff]  ;;  %v2278_v20 = vpop.permute.xlu1 %2277 }
 0x198   : > { %v2224_v21 = vadd.f32 %v2192_v26, %v6489_v1  ;;  %v2383_v5 = vmul.f32 %v2278_v20, %v8554_v57  ;;  %v8660_v20 = vld [vmem:[#allocation36_spill] sm:$0xff] }
 0x199   : > { %8653 = vst [vmem:[#allocation47_spill] sm:$0xff] %v6557_v2  ;;  %4464 = vset.pattern.permute.xlu1 %v8486_v38  ;;  %v928_v2 = vmul.f32 %v5264_v50, %v8466_v10 }
 0x19a   : > { %1340 = vperm.xlu1 %4464, %v6570_v58   ;;  %v2086_v11 = vpop.permute.xlu0 %2085  ;;  %v6581_v63 = vadd.f32 %v2420_v39, %v2224_v21  ;;  %v2419_v57 = vmul.f32 %v8547_v13, %v2383_v5 }
 0x19b   : > { %v6574_v3 = vmul.f32 %v2086_v11, %v8656_v9  ;;  %v8658_v11 = vrot.slane %v8511_v59, 1  ;;  %v8659_v9 = vrot.slane %v8634_v25, 1  ;;  %v1255_v39 = vadd.f32 %v1223_v53, %v928_v2  ;;  %v2726_v21 = vpop.permute.xlu1 %2725  ;;  %v8663_v25 = vld [vmem:[#allocation130_spill] sm:$0xff]  ;;  %v8666_v53 = vld [vmem:[#allocation59_spill] sm:$0xff] }
 0x19c   : > { %v2451_v26 = vadd.f32 %v2419_v57, %v2223_v52 }
 0x19d   : > { %8657 = vst [vmem:[#allocation30_spill] sm:$0xff] %v6574_v3  ;;  %v6591_v1 = vsel %vm1531_vm2, %v8659_v9, %v8658_v11  ;;  %v2837_v3 = vmul.f32 %v2726_v21, %v8607_v17  ;;  %v6599_v59 = vadd.f32 %v1451_v41, %v1255_v39  ;;  %v8667_v17 = vld [vmem:[#allocation87_spill] sm:$0xff] }
 0x19e   : > { %4465 = vset.pattern.permute.xlu1 %v8628_v51  ;;  %v2098_v14 = vpop.permute.xlu0 %2097 }
 0x19f   : > { %1629 = vperm.xlu1 %4465, %v8660_v20   ;;  %v6596_v62 = vmul.f32 %v2098_v14, %v8661_v34  ;;  %v2873_v5 = vmul.f32 %v6196_v56, %v2837_v3  ;;  %v1321_v2 = vpop.permute.xlu1 %1320  ;;  %v8669_v3 = vld [vmem:[#allocation131_spill] sm:$0xff] }
 0x1a0   : > { %v1411_v11 = vmul.f32 %v1321_v2, %v8666_v53  ;;  %v2194_v2 = vmul.f32 %v5500_v27, %v2158_v35 }
 0x1a1   : > { %8662 = vst [vmem:[#allocation6_spill] sm:$0xff] %v6596_v62  ;;  %v6608_v14 = vadd.f32 %v2873_v5, %v6531_v24 }
 0x1a2   : > { %v2110_v10 = vpop.permute.xlu0 %2109  ;;  %v1447_v41 = vmul.f32 %v5334_v49, %v1411_v11 }
 0x1a3   : > { %4466 = vset.pattern.permute.xlu1 %v8525_v44  ;;  %v6603_v9 = vmul.f32 %v2110_v10, %v8663_v25  ;;  %8665 = vst [vmem:[#allocation29_spill] sm:$0xff] %v6608_v14  ;;  %v1834_v21 = vpop.permute.xlu1 %1833  ;;  %v8670_v25 = vld [vmem:[#allocation133_spill] sm:$0xff]  ;;  %v8673_v14 = vld [vmem:[#allocation76_spill] sm:$0xff] }
 0x1a4   : > { %2077 = vperm.xlu1 %4466, %v8639_v37   ;;  %v1479_v39 = vadd.f32 %v1447_v41, %v8669_v3  ;;  %v1930_v5 = vmul.f32 %v1834_v21, %v8649_v54 }
 0x1a5   : > { %8664 = vst [vmem:[#allocation111_spill] sm:$0xff] %v6603_v9 }
 0x1a6   : > { %v2122_v52 = vpop.permute.xlu0 %2121 }
 0x1a7   : > { %v6612_v57 = vmul.f32 %v2122_v52, %v8667_v17  ;;  %v1966_v52 = vmul.f32 %v5517_v31, %v1930_v5  ;;  %v8674_v17 = vld [vmem:[#allocation16_spill] sm:$0xff]  ;;  %v2058_v3 = vpop.permute.xlu1 %2057 }
 0x1a8   : > { %4467 = vset.pattern.permute.xlu1 %v8458_v61 }
 0x1a9   : > { %8668 = vst [vmem:[#allocation85_spill] sm:$0xff] %v6612_v57  ;;  %2301 = vperm.xlu1 %4467, %v5884_v60   ;;  %v1189_v57 = vmul.f32 %v8674_v17, %v8673_v14  ;;  %v1998_v41 = vadd.f32 %v1966_v52, %v1770_v23 }
 0x1aa   : > { %v2130_v10 = vpop.permute.xlu0 %2129 }
 0x1ab   : > { %v6619_v24 = vmul.f32 %v2130_v10, %v8670_v25  ;;  %v2157_v10 = vmul.f32 %v2058_v3, %v8640_v19  ;;  %v6632_v54 = vadd.f32 %v2194_v2, %v1998_v41  ;;  %v2506_v17 = vpop.permute.xlu1 %2505  ;;  %v8675_v3 = vld [vmem:[#allocation74_spill] sm:$0xff] }
 0x1ac   : > { %v2611_v52 = vmul.f32 %v2506_v17, %v8644_v55  ;;  %v930_v2 = vmul.f32 %v5264_v50, %v8675_v3 }
 0x1ad   : > { %8671 = vst [vmem:[#allocation31_spill] sm:$0xff] %v6619_v24  ;;  %4468 = vset.pattern.permute.xlu1 %v8555_v43  ;;  %v2193_v21 = vmul.f32 %v5500_v27, %v2157_v10  ;;  %v8694_v24 = vld [vmem:[#allocation112_spill] sm:$0xff] }
 0x1ae   : > { %2749 = vperm.xlu1 %4468, %v8648_v30   ;;  %v6626_v11 = vpop.permute.xlu0 %2141  ;;  %v1225_v30 = vmul.f32 %v5279_v8, %v1189_v57  ;;  %v2647_v10 = vmul.f32 %v8589_v42, %v2611_v52 }
 0x1af   : > { %8672 = vst [vmem:[#allocation117_spill] sm:$0xff] %v6626_v11  ;;  %v2225_v11 = vadd.f32 %v2193_v21, %v6476_v0 }
 0x1b0   : > { %v2679_v57 = vadd.f32 %v2647_v10, %v2451_v26 }
 0x1b1   : > { %v2730_v21 = vpop.permute.xlu1 %2729 }
 0x1b2   : > { %4469 = vset.pattern.permute.xlu1 %v8486_v38  ;;  %v2710_v35 = vpop.permute.xlu0 %2709 }
 0x1b3   : > { %1344 = vperm.xlu1 %4469, %v6345_v46   ;;  %v2833_v5 = vmul.f32 %v2710_v35, %v8601_v16  ;;  %v6647_v16 = vadd.f32 %v1225_v30, %v930_v2 }
 0x1b5   : > { %v2869_v23 = vmul.f32 %v6196_v56, %v2833_v5 }
 0x1b6   : > { %v2722_v41 = vpop.permute.xlu0 %2721 }
 0x1b7   : > { %4470 = vset.pattern.permute.xlu1 %v8582_v45  ;;  %v2836_v25 = vmul.f32 %v2722_v41, %v8567_v7  ;;  %v6650_v0 = vadd.f32 %v2869_v23, %v6546_v12  ;;  %v8680_v41 = vld [vmem:[#allocation135_spill] sm:$0xff] }
 0x1b8   : > { %1857 = vperm.xlu1 %4470, %v8660_v20   ;;  %v1614_v30 = vpop.permute.xlu1 %1613 }
 0x1b9   : > { %8676 = vst [vmem:[#allocation32_spill] sm:$0xff] %v6650_v0  ;;  %v2872_v55 = vmul.f32 %v6196_v56, %v2836_v25  ;;  %v1704_v25 = vmul.f32 %v1614_v30, %v8647_v40  ;;  %v8693_v0 = vld [vmem:[#allocation73_spill] sm:$0xff] }
 0x1ba   : > { %v2734_v35 = vpop.permute.xlu0 %2733 }
 0x1bb   : > { %v6654_v5 = vadd.f32 %v2872_v55, %v6397_v32  ;;  %v2839_v17 = vmul.f32 %v2734_v35, %v8640_v19  ;;  %v1968_v32 = vmul.f32 %v5517_v31, %v6323_v18  ;;  %v1740_v19 = vmul.f32 %v5433_v4, %v1704_v25 }
 0x1bc   : > { %4471 = vset.pattern.permute.xlu1 %v8525_v44 }
 0x1bd   : > { %8677 = vst [vmem:[#allocation124_spill] sm:$0xff] %v6654_v5  ;;  %2081 = vperm.xlu1 %4471, %v6302_v15   ;;  %v2875_v7 = vmul.f32 %v6196_v56, %v2839_v17  ;;  %v1772_v23 = vadd.f32 %v1740_v19, %v1479_v39  ;;  %v8684_v19 = vld [vmem:[#allocation77_spill] sm:$0xff] }
 0x1be   : > { %v6660_v52 = vpop.permute.xlu0 %2745  ;;  %v1838_v2 = vpop.permute.xlu1 %1837 }
 0x1bf   : > { %v6662_v12 = vadd.f32 %v2875_v7, %v2679_v57  ;;  %v1931_v10 = vmul.f32 %v1838_v2, %v8680_v41  ;;  %v6674_v57 = vadd.f32 %v1968_v32, %v1772_v23  ;;  %v8685_v23 = vld [vmem:[#allocation38_spill] sm:$0xff] }
 0x1c0   : > { %v1706_v2 = vmul.f32 %v8685_v23, %v8684_v19  ;;  %v8689_v23 = vld [vmem:[#allocation109_spill] sm:$0xff] }
 0x1c1   : > { %8678 = vst [vmem:[#allocation35_spill] sm:$0xff] %v6662_v12  ;;  %4472 = vset.pattern.permute.xlu1 %v8387_v29  ;;  %v1967_v55 = vmul.f32 %v5517_v31, %v1931_v10  ;;  %v8691_v12 = vld [vmem:[#allocation19_spill] sm:$0xff] }
 0x1c2   : > { %2529 = vperm.xlu1 %4472, %v5884_v60   ;;  %v6670_v26 = vpop.permute.xlu0 %2757 }
 0x1c3   : > { %8679 = vst [vmem:[#allocation51_spill] sm:$0xff] %v6670_v26  ;;  %v1999_v18 = vadd.f32 %v1967_v55, %v6549_v33  ;;  %v8701_v26 = vld [vmem:[#allocation100_spill] sm:$0xff] }
 0x1c4   : > { %v2286_v17 = vpop.permute.xlu1 %2285 }
 0x1c5   : > { %v2385_v60 = vmul.f32 %v2286_v17, %v8680_v41 }
 0x1c6   : > { %4473 = vset.pattern.permute.xlu1 %v8555_v43  ;;  %v6678_v35 = vpop.permute.xlu0 %2769 }
 0x1c7   : > { %2753 = vperm.xlu1 %4473, %v8550_v48   ;;  %8681 = vst [vmem:[#allocation57_spill] sm:$0xff] %v6678_v35  ;;  %v2421_v7 = vmul.f32 %v8547_v13, %v2385_v60  ;;  %v8699_v35 = vld [vmem:[#allocation64_spill] sm:$0xff] }
 0x1c9   : > { %v2453_v30 = vadd.f32 %v2421_v7, %v2225_v11  ;;  %v2510_v25 = vpop.permute.xlu1 %2509  ;;  %v8688_v7 = vld [vmem:[#allocation105_spill] sm:$0xff] }
 0x1ca   : > { %v6683_v39 = vpop.permute.xlu0 %2781  ;;  %v2612_v32 = vmul.f32 %v2510_v25, %v8666_v53  ;;  %v1742_v53 = vmul.f32 %v5433_v4, %v1706_v2 }
 0x1cb   : > { %4474 = vset.pattern.permute.xlu1 %v8628_v51  ;;  %8682 = vst [vmem:[#allocation61_spill] sm:$0xff] %v6683_v39 }
 0x1cc   : > { %1637 = vperm.xlu1 %4474, %v6345_v46   ;;  %v2648_v33 = vmul.f32 %v8589_v42, %v2612_v32 }
 0x1ce   : > { %v6688_v48 = vpop.permute.xlu0 %2793  ;;  %v2680_v41 = vadd.f32 %v2648_v33, %v6581_v63  ;;  %v1329_v10 = vpop.permute.xlu1 %1328  ;;  %v8690_v63 = vld [vmem:[#allocation18_spill] sm:$0xff] }
 0x1cf   : > { %8683 = vst [vmem:[#allocation132_spill] sm:$0xff] %v6688_v48  ;;  %v1413_v11 = vmul.f32 %v1329_v10, %v8394_v36  ;;  %v1191_v33 = vmul.f32 %v8690_v63, %v8689_v23  ;;  %v8695_v48 = vld [vmem:[#allocation89_spill] sm:$0xff] }
 0x1d0   : > { %4475 = vset.pattern.permute.xlu1 %v8582_v45 }
 0x1d1   : > { %1861 = vperm.xlu1 %4475, %v6570_v58   ;;  %v1449_v17 = vmul.f32 %v5334_v49, %v1413_v11  ;;  %v8692_v11 = vld [vmem:[#allocation67_spill] sm:$0xff] }
 0x1d2   : > { %v6696_v55 = vpop.permute.xlu0 %2801 }
 0x1d3   : > { %8686 = vst [vmem:[#allocation134_spill] sm:$0xff] %v6696_v55  ;;  %v1481_v25 = vadd.f32 %v1449_v17, %v8688_v7  ;;  %v2387_v55 = vmul.f32 %v8693_v0, %v8692_v11  ;;  %v1227_v17 = vmul.f32 %v5279_v8, %v1191_v33  ;;  %v2838_v7 = vmul.f32 %v2730_v21, %v8646_v47  ;;  %v6730_v47 = vld [vmem:[%s8011_s5 + $0xa0] sm:$0xff] }
 0x1d4   : > { %v1618_v32 = vpop.permute.xlu1 %1617 }
 0x1d5   : > { %4476 = vset.pattern.permute.xlu1 %v8458_v61  ;;  %v1705_v5 = vmul.f32 %v1618_v32, %v8691_v12  ;;  %v6710_v10 = vadd.f32 %v1742_v53, %v1481_v25  ;;  %v2423_v0 = vmul.f32 %v8547_v13, %v2387_v55  ;;  %v2874_v21 = vmul.f32 %v6196_v56, %v2838_v7 }
 0x1d6   : > { %2309 = vperm.xlu1 %4476, %v6302_v15   ;;  %v6703_v60 = vpop.permute.xlu0 %2813  ;;  %v8700_v7 = vrot.slane %v8675_v3, 1 }
 0x1d7   : > { %8687 = vst [vmem:[#allocation37_spill] sm:$0xff] %v6703_v60  ;;  %v1741_v2 = vmul.f32 %v5433_v4, %v1705_v5  ;;  %v8696_v5 = vld [vmem:[#allocation106_spill] sm:$0xff] }
 0x1d8   : > { %v932_v9 = vmul.f32 %v5264_v50, %v8696_v5 }
 0x1d9   : > { %v1773_v63 = vadd.f32 %v1741_v2, %v8694_v24 }
 0x1da   : > { %4477 = vset.pattern.permute.xlu1 %v8387_v29  ;;  %v2502_v60 = vpop.permute.xlu0 %2501  ;;  %v6736_v2 = vadd.f32 %v1227_v17, %v932_v9 }
 0x1db   : > { %2533 = vperm.xlu1 %4477, %v8639_v37   ;;  %v2610_v32 = vmul.f32 %v2502_v60, %v8695_v48  ;;  %v2066_v39 = vpop.permute.xlu1 %2065  ;;  %v8697_v48 = vld [vmem:[#allocation2_spill] sm:$0xff] }
 0x1dc   : > { %v2159_v53 = vmul.f32 %v2066_v39, %v8691_v12 }
 0x1dd   : > { %v2646_v25 = vmul.f32 %v8589_v42, %v2610_v32 }
 0x1de   : > { %v2195_v33 = vmul.f32 %v5500_v27, %v2159_v53  ;;  %v2514_v24 = vpop.permute.xlu0 %2513 }
 0x1df   : > { %4478 = vset.pattern.permute.xlu1 %v8486_v38  ;;  %v2678_v39 = vadd.f32 %v2646_v25, %v6509_v28  ;;  %v2613_v60 = vmul.f32 %v2514_v24, %v8697_v48  ;;  %v8702_v28 = vrot.slane %v8701_v26, 1  ;;  %v8703_v25 = vld [vmem:[#allocation121_spill] sm:$0xff] }
 0x1e0   : > { %1352 = vperm.xlu1 %4478, %v6730_v47   ;;  %v2227_v32 = vadd.f32 %v2195_v33, %v1999_v18 }
 0x1e1   : > { %v2290_v55 = vpop.permute.xlu1 %2289  ;;  %v6738_v34 = vadd.f32 %v2874_v21, %v2678_v39  ;;  %v2649_v53 = vmul.f32 %v8589_v42, %v2613_v60  ;;  %v6751_v9 = vsel %vm1531_vm2, %v8702_v28, %v8700_v7 }
 0x1e2   : > { %v2386_v62 = vmul.f32 %v2290_v55, %v8699_v35  ;;  %v6743_v23 = vadd.f32 %v2423_v0, %v2227_v32  ;;  %v8706_v32 = vld [vmem:[#allocation47_spill] sm:$0xff] }
 0x1e3   : > { %8698 = vst [vmem:[#allocation94_spill] sm:$0xff] %v6738_v34  ;;  %v2681_v18 = vadd.f32 %v2649_v53, %v2453_v30 }
 0x1e4   : > { %4479 = vset.pattern.permute.xlu1 %v8628_v51  ;;  %v2422_v17 = vmul.f32 %v8547_v13, %v2386_v62 }
 0x1e5   : > { %1641 = vperm.xlu1 %4479, %v8703_v25  }
 0x1e6   : > { %v2454_v33 = vadd.f32 %v2422_v17, %v6632_v54  ;;  %v2738_v35 = vpop.permute.xlu1 %2737  ;;  %v8705_v54 = vld [vmem:[#allocation98_spill] sm:$0xff] }
 0x1e7   : > { %v2840_v24 = vmul.f32 %v2738_v35, %v8647_v40  ;;  %v2842_v35 = vmul.f32 %v6660_v52, %v8684_v19 }
 0x1e9   : > { %4480 = vset.pattern.permute.xlu1 %v8525_v44  ;;  %v2876_v0 = vmul.f32 %v6196_v56, %v2840_v24 }
 0x1ea   : > { %2089 = vperm.xlu1 %4480, %v6570_v58  }
 0x1eb   : > { %v6760_v21 = vadd.f32 %v2876_v0, %v2680_v41  ;;  %v1333_v39 = vpop.permute.xlu1 %1332  ;;  %v2197_v41 = vmul.f32 %v5500_v27, %v8706_v32  ;;  %v4582_v32 = vld [vmem:[%s8011_s5 + $0x80] sm:$0xff] }
 0x1ec   : > { %v1414_v30 = vmul.f32 %v1333_v39, %v8636_v6 }
 0x1ed   : > { %8704 = vst [vmem:[#allocation107_spill] sm:$0xff] %v6760_v21  ;;  %v8736_v21 = vld [vmem:[#allocation122_spill] sm:$0xff] }
 0x1ee   : > { %4481 = vset.pattern.permute.xlu1 %v8458_v61  ;;  %v1450_v62 = vmul.f32 %v5334_v49, %v1414_v30  ;;  %v1463_v34 = vmul.f32 %v5334_v49, %v8736_v21 }
 0x1ef   : > { %2313 = vperm.xlu1 %4481, %v8660_v20  }
 0x1f0   : > { %v1482_v48 = vadd.f32 %v1450_v62, %v8705_v54  ;;  %v1846_v40 = vpop.permute.xlu1 %1845 }
 0x1f1   : > { %v1933_v60 = vmul.f32 %v1846_v40, %v8692_v11  ;;  %v8707_v11 = vld [vmem:[#allocation21_spill] sm:$0xff] }
 0x1f3   : > { %4482 = vset.pattern.permute.xlu1 %v8555_v43  ;;  %v1969_v55 = vmul.f32 %v5517_v31, %v1933_v60 }
 0x1f4   : > { %2761 = vperm.xlu1 %4482, %v8639_v37  }
 0x1f5   : > { %v2001_v53 = vadd.f32 %v1969_v55, %v1773_v63  ;;  %v2070_v7 = vpop.permute.xlu1 %2069  ;;  %v2878_v63 = vmul.f32 %v6196_v56, %v2842_v35 }
 0x1f6   : > { %v2160_v28 = vmul.f32 %v2070_v7, %v8684_v19  ;;  %v8710_v19 = vld [vmem:[#allocation125_spill] sm:$0xff] }
 0x1f7   : > { %v6775_v20 = vadd.f32 %v2197_v41, %v2001_v53  ;;  %v8713_v41 = vld [vmem:[#allocation22_spill] sm:$0xff]  ;;  %v8715_v53 = vld [vmem:[#allocation24_spill] sm:$0xff] }
 0x1f8   : > { %4483 = vset.pattern.permute.xlu1 %v8486_v38  ;;  %v2196_v17 = vmul.f32 %v5500_v27, %v2160_v28  ;;  %v2526_v28 = vpop.permute.xlu0 %2525 }
 0x1f9   : > { %1356 = vperm.xlu1 %4483, %v8707_v11  }
 0x1fa   : > { %v6782_v24 = vadd.f32 %v2196_v17, %v6674_v57  ;;  %v8716_v17 = vld [vmem:[#allocation8_spill] sm:$0xff] }
 0x1fb   : > { %v2518_v0 = vpop.permute.xlu1 %2517  ;;  %v1421_v35 = vmul.f32 %v8716_v17, %v8696_v5  ;;  %v8728_v17 = vld [vmem:[#allocation119_spill] sm:$0xff] }
 0x1fc   : > { %v2614_v37 = vmul.f32 %v2518_v0, %v8394_v36 }
 0x1fd   : > { %4484 = vset.pattern.permute.xlu1 %v8582_v45 }
 0x1fe   : > { %v2650_v39 = vmul.f32 %v8589_v42, %v2614_v37  ;;  %1869 = vperm.xlu1 %4484, %v8703_v25   ;;  %v8711_v25 = vld [vmem:[#allocation58_spill] sm:$0xff] }
 0x200   : > { %v2682_v30 = vadd.f32 %v2650_v39, %v2454_v33  ;;  %v2742_v62 = vpop.permute.xlu1 %2741  ;;  %v1971_v33 = vmul.f32 %v5517_v31, %v8711_v25  ;;  %v1457_v25 = vmul.f32 %v5334_v49, %v1421_v35 }
 0x201   : > { %v2841_v54 = vmul.f32 %v2742_v62, %v8691_v12 }
 0x202   : > { %v6790_v40 = vadd.f32 %v2878_v63, %v2682_v30  ;;  %4485 = vset.pattern.permute.xlu1 %v8525_v44  ;;  %v8717_v63 = vld [vmem:[#allocation78_spill] sm:$0xff]  ;;  %v8718_v30 = vld [vmem:[#allocation53_spill] sm:$0xff] }
 0x203   : > { %v2877_v52 = vmul.f32 %v6196_v56, %v2841_v54  ;;  %2093 = vperm.xlu1 %4485, %v6345_v46   ;;  %v8712_v56 = vld [vmem:[#allocation93_spill] sm:$0xff]  ;;  %v2616_v62 = vmul.f32 %v2526_v28, %v8718_v30  ;;  %v8725_v28 = vld [vmem:[#allocation91_spill] sm:$0xff] }
 0x204   : > { %8708 = vst [vmem:[#allocation55_spill] sm:$0xff] %v6790_v40  ;;  %v1195_v55 = vmul.f32 %v8713_v41, %v8712_v56  ;;  %v8734_v40 = vld [vmem:[#allocation26_spill] sm:$0xff] }
 0x205   : > { %v6795_v36 = vadd.f32 %v2877_v52, %v2681_v18  ;;  %v1626_v57 = vpop.permute.xlu1 %1625  ;;  %v8714_v18 = vld [vmem:[#allocation116_spill] sm:$0xff] }
 0x206   : > { %v1707_v60 = vmul.f32 %v1626_v57, %v8710_v19  ;;  %v1197_v7 = vmul.f32 %v8715_v53, %v8714_v18  ;;  %v1231_v52 = vmul.f32 %v5279_v8, %v1195_v55  ;;  %v8726_v55 = vrot.slane %v8725_v28, 7  ;;  %v8740_v18 = vld [vmem:[#allocation7_spill] sm:$0xff] }
 0x207   : > { %8709 = vst [vmem:[#allocation118_spill] sm:$0xff] %v6795_v36  ;;  %4486 = vset.pattern.permute.xlu1 %v8387_v29 }
 0x208   : > { %v1743_v12 = vmul.f32 %v5433_v4, %v1707_v60  ;;  %2541 = vperm.xlu1 %4486, %v4582_v32   ;;  %v1233_v57 = vmul.f32 %v5279_v8, %v1197_v7 }
 0x20a   : > { %v1775_v0 = vadd.f32 %v1743_v12, %v1482_v48  ;;  %v1850_v37 = vpop.permute.xlu1 %1849  ;;  %v8719_v48 = vrot.slane %v8696_v5, 7  ;;  %v8720_v12 = vld [vmem:[#allocation72_spill] sm:$0xff] }
 0x20b   : > { %v1934_v39 = vmul.f32 %v1850_v37, %v8717_v63  ;;  %v8721_v32 = vrot.slane %v8720_v12, 7 }
 0x20c   : > { %4487 = vset.pattern.permute.xlu1 %v8555_v43  ;;  %v6814_v54 = vadd.f32 %v1971_v33, %v1775_v0  ;;  %v8723_v33 = vld [vmem:[#allocation3_spill] sm:$0xff]  ;;  %v8730_v0 = vld [vmem:[#allocation10_spill] sm:$0xff] }
 0x20d   : > { %v1970_v60 = vmul.f32 %v5517_v31, %v1934_v39  ;;  %2765 = vperm.xlu1 %4487, %v6302_v15   ;;  %v6827_v41 = vsel %vm978_vm3, %v8721_v32, %v8719_v48  ;;  %v8724_v53 = vrot.slane %v8723_v33, 7  ;;  %v8729_v15 = vrot.slane %v8728_v17, 7  ;;  %v8733_v48 = vld [vmem:[#allocation20_spill] sm:$0xff] }
 0x20e   : > { %8722 = vst [vmem:[#allocation4_spill] sm:$0xff] %v6827_v41  ;;  %v8731_v35 = vrot.slane %v8730_v0, 7  ;;  %v1193_v32 = vmul.f32 %v8733_v48, %v6827_v41  ;;  %v8737_v0 = vld [vmem:[#allocation129_spill] sm:$0xff]  ;;  %v8739_v48 = vld [vmem:[#allocation95_spill] sm:$0xff]  ;;  %v938_v21 = vmul.f32 %v5264_v50, %v8723_v33 }
 0x20f   : > { %v6835_v7 = vsel %vm978_vm3, %v8726_v55, %v8724_v53  ;;  %v2002_v39 = vadd.f32 %v1970_v60, %v6710_v10  ;;  %v2298_v30 = vpop.permute.xlu1 %2297  ;;  %v8735_v53 = vld [vmem:[#allocation27_spill] sm:$0xff]  ;;  %v1465_v28 = vmul.f32 %v5334_v49, %v8737_v0  ;;  %v2652_v10 = vmul.f32 %v8589_v42, %v2616_v62 }
 0x210   : > { %8727 = vst [vmem:[#allocation123_spill] sm:$0xff] %v6835_v7  ;;  %v6843_v37 = vsel %vm978_vm3, %v8731_v35, %v8729_v15  ;;  %v1199_v36 = vmul.f32 %v8734_v40, %v6835_v7  ;;  %v2388_v15 = vmul.f32 %v2298_v30, %v8717_v63  ;;  %v1229_v60 = vmul.f32 %v5279_v8, %v1193_v32  ;;  %v8738_v35 = vld [vmem:[#allocation86_spill] sm:$0xff] }
 0x211   : > { %8732 = vst [vmem:[#allocation11_spill] sm:$0xff] %v6843_v37  ;;  %v1201_v55 = vmul.f32 %v8735_v53, %v6843_v37  ;;  %4488 = vset.pattern.permute.xlu1 %v8628_v51  ;;  %v934_v40 = vmul.f32 %v5264_v50, %v8738_v35  ;;  %v936_v53 = vmul.f32 %v5264_v50, %v8739_v48 }
 0x212   : > { %v2424_v37 = vmul.f32 %v8547_v13, %v2388_v15  ;;  %1649 = vperm.xlu1 %4488, %v8707_v11   ;;  %v1235_v63 = vmul.f32 %v5279_v8, %v1199_v36  ;;  %v940_v62 = vmul.f32 %v5264_v50, %v8728_v17  ;;  %v6874_v7 = vadd.f32 %v1233_v57, %v938_v21 }
 0x213   : > { %v1237_v0 = vmul.f32 %v5279_v8, %v1201_v55  ;;  %v1261_v30 = vadd.f32 %v1229_v60, %v934_v40  ;;  %v6872_v32 = vadd.f32 %v1231_v52, %v936_v53  ;;  %v942_v35 = vmul.f32 %v5264_v50, %v8740_v18  ;;  %v8743_v40 = vld [vmem:[#allocation69_spill] sm:$0xff]  ;;  %v8745_v53 = vld [vmem:[#allocation79_spill] sm:$0xff] }
 0x214   : > { %v2456_v33 = vadd.f32 %v2424_v37, %v6782_v24  ;;  %v2522_v15 = vpop.permute.xlu1 %2521  ;;  %v1267_v56 = vadd.f32 %v1235_v63, %v940_v62  ;;  %v8741_v24 = vld [vmem:[#allocation12_spill] sm:$0xff]  ;;  %v2390_v21 = vmul.f32 %v8745_v53, %v8673_v14 }
 0x215   : > { %v2615_v41 = vmul.f32 %v2522_v15, %v8636_v6  ;;  %v6880_v36 = vadd.f32 %v1457_v25, %v1261_v30  ;;  %v1269_v12 = vadd.f32 %v1237_v0, %v942_v35  ;;  %v8742_v37 = vld [vmem:[#allocation40_spill] sm:$0xff] }
 0x216   : > { %v6882_v17 = vadd.f32 %v2652_v10, %v2456_v33  ;;  %4489 = vset.pattern.permute.xlu1 %v8582_v45  ;;  %v6885_v52 = vadd.f32 %v1463_v34, %v1267_v56  ;;  %v1709_v60 = vmul.f32 %v8742_v37, %v8741_v24  ;;  %v8744_v56 = vld [vmem:[#allocation114_spill] sm:$0xff]  ;;  %v2426_v30 = vmul.f32 %v8547_v13, %v2390_v21  ;;  %v6944_v21 = vld [vmem:[%s8011_s5 + $0xf8] sm:$0xff] }
 0x217   : > { %v2651_v57 = vmul.f32 %v8589_v42, %v2615_v41  ;;  %1873 = vperm.xlu1 %4489, %v6730_v47   ;;  %v6889_v55 = vadd.f32 %v1465_v28, %v1269_v12  ;;  %2601 = vperm.xlu0 %4547, %v6944_v21  }
 0x218   : > { %v1745_v33 = vmul.f32 %v5433_v4, %v1709_v60 }
 0x219   : > { %v2683_v6 = vadd.f32 %v2651_v57, %v6743_v23  ;;  %v1341_v25 = vpop.permute.xlu1 %1340  ;;  %v6916_v57 = vld [vmem:[%s8011_s5 + $0xb8] sm:$0xff] }
 0x21a   : > { %v1416_v35 = vmul.f32 %v1341_v25, %v8743_v40  ;;  %v8746_v25 = vld [vmem:[#allocation39_spill] sm:$0xff] }
 0x21b   : > { %4490 = vset.pattern.permute.xlu1 %v8458_v61  ;;  %4553 = vset.pattern.permute.xlu0 %v8555_v43 }
 0x21c   : > { %v1452_v34 = vmul.f32 %v5334_v49, %v1416_v35  ;;  %2321 = vperm.xlu1 %4490, %v6345_v46   ;;  %2829 = vperm.xlu0 %4553, %v6944_v21  }
 0x21e   : > { %v1484_v41 = vadd.f32 %v1452_v34, %v8744_v56  ;;  %v1630_v12 = vpop.permute.xlu1 %1629  ;;  %v8749_v56 = vrot.slane %v8696_v5, 1 }
 0x21f   : > { %v1708_v28 = vmul.f32 %v1630_v12, %v6591_v1 }
 0x220   : > { %4491 = vset.pattern.permute.xlu1 %v8387_v29  ;;  %v6902_v10 = vadd.f32 %v1745_v33, %v1484_v41  ;;  %v8747_v33 = vld [vmem:[#allocation82_spill] sm:$0xff] }
 0x221   : > { %v1744_v23 = vmul.f32 %v5433_v4, %v1708_v28  ;;  %2545 = vperm.xlu1 %4491, %v6570_v58   ;;  %v8748_v34 = vrot.slane %v8747_v33, 1 }
 0x223   : > { %v1776_v63 = vadd.f32 %v1744_v23, %v6599_v59  ;;  %v2078_v62 = vpop.permute.xlu1 %2077  ;;  %v6929_v41 = vsel %vm1531_vm2, %v8749_v56, %v8748_v34  ;;  %v8751_v34 = vld [vmem:[#allocation30_spill] sm:$0xff] }
 0x224   : > { %v2162_v0 = vmul.f32 %v2078_v62, %v6591_v1  ;;  %v6949_v62 = vld [vmem:[%s8009_s3 + $0x8] ss:$0 sm:$0xff]  ;;  %v2200_v56 = vmul.f32 %v5500_v27, %v8751_v34 }
 0x225   : > { %4492 = vset.pattern.permute.xlu1 %v8486_v38 }
 0x226   : > { %v2198_v15 = vmul.f32 %v5500_v27, %v2162_v0  ;;  %1364 = vperm.xlu1 %4492, %v6916_v57  }
 0x228   : > { %v2230_v37 = vadd.f32 %v2198_v15, %v2002_v39  ;;  %v2302_v60 = vpop.permute.xlu1 %2301  ;;  %v6935_v39 = vld [vmem:[%s8011_s5 + $0xb0] sm:$0xff] }
 0x229   : > { %v2389_v59 = vmul.f32 %v2302_v60, %v8746_v25  ;;  %v4586_v60 = vld [vmem:[%s8011_s5 + $0x98] sm:$0xff] }
 0x22a   : > { %4493 = vset.pattern.permute.xlu1 %v8628_v51  ;;  %v6921_v35 = vadd.f32 %v2426_v30, %v2230_v37  ;;  %v8750_v30 = vld [vmem:[#allocation71_spill] sm:$0xff] }
 0x22b   : > { %v2425_v12 = vmul.f32 %v8547_v13, %v2389_v59  ;;  %1653 = vperm.xlu1 %4493, %v6935_v39  }
 0x22d   : > { %v2457_v28 = vadd.f32 %v2425_v12, %v6775_v20  ;;  %v2750_v23 = vpop.permute.xlu1 %2749 }
 0x22e   : > { %v2843_v53 = vmul.f32 %v2750_v23, %v8710_v19 }
 0x22f   : > { %4494 = vset.pattern.permute.xlu1 %v8525_v44 }
 0x230   : > { %v2879_v0 = vmul.f32 %v6949_v62, %v2843_v53  ;;  %2101 = vperm.xlu1 %4494, %v6730_v47  }
 0x232   : > { %v6954_v20 = vadd.f32 %v2879_v0, %v2683_v6  ;;  %v1345_v19 = vpop.permute.xlu1 %1344 }
 0x233   : > { %v1417_v15 = vmul.f32 %v1345_v19, %v8750_v30 }
 0x234   : > { %4495 = vset.pattern.permute.xlu1 %v8458_v61 }
 0x235   : > { %v1453_v37 = vmul.f32 %v5334_v49, %v1417_v15  ;;  %2325 = vperm.xlu1 %4495, %v4586_v60   ;;  %v8752_v15 = vld [vmem:[#allocation51_spill] sm:$0xff] }
 0x237   : > { %v1485_v25 = vadd.f32 %v1453_v37, %v6647_v16  ;;  %v1858_v6 = vpop.permute.xlu1 %1857 }
 0x238   : > { %v1936_v59 = vmul.f32 %v1858_v6, %v8673_v14  ;;  %v6979_v14 = vld [vmem:[%s8011_s5 + $0xc0] sm:$0xff] }
 0x239   : > { %4496 = vset.pattern.permute.xlu1 %v8555_v43 }
 0x23a   : > { %v1972_v12 = vmul.f32 %v5517_v31, %v1936_v59  ;;  %2773 = vperm.xlu1 %4496, %v6570_v58   ;;  %v2845_v58 = vmul.f32 %v8752_v15, %v8741_v24 }
 0x23c   : > { %v2004_v23 = vadd.f32 %v1972_v12, %v1776_v63  ;;  %v2082_v53 = vpop.permute.xlu1 %2081  ;;  %v2881_v59 = vmul.f32 %v6949_v62, %v2845_v58 }
 0x23d   : > { %v2163_v0 = vmul.f32 %v2082_v53, %v8741_v24 }
 0x23e   : > { %4497 = vset.pattern.permute.xlu1 %v8486_v38  ;;  %v6973_v19 = vadd.f32 %v2200_v56, %v2004_v23 }
 0x23f   : > { %v2199_v16 = vmul.f32 %v5500_v27, %v2163_v0  ;;  %1368 = vperm.xlu1 %4497, %v6979_v14   ;;  %v8753_v0 = vld [vmem:[#allocation127_spill] sm:$0xff] }
 0x241   : > { %v2231_v63 = vadd.f32 %v2199_v16, %v6814_v54  ;;  %v2530_v37 = vpop.permute.xlu1 %2529 }
 0x242   : > { %v2617_v6 = vmul.f32 %v2530_v37, %v8743_v40 }
 0x243   : > { %4498 = vset.pattern.permute.xlu1 %v8582_v45 }
 0x244   : > { %v2653_v34 = vmul.f32 %v8589_v42, %v2617_v6  ;;  %1881 = vperm.xlu1 %4498, %v6935_v39   ;;  %v8755_v6 = vld [vmem:[#allocation104_spill] sm:$0xff] }
 0x246   : > { %v2685_v56 = vadd.f32 %v2653_v34, %v2457_v28  ;;  %v2754_v12 = vpop.permute.xlu1 %2753  ;;  %v8754_v28 = vld [vmem:[#allocation120_spill] sm:$0xff]  ;;  %v2538_v34 = vpop.permute.xlu0 %2537 }
 0x247   : > { %v2844_v23 = vmul.f32 %v2754_v12, %v6591_v1  ;;  %v1974_v15 = vmul.f32 %v5517_v31, %v8754_v28  ;;  %v2619_v12 = vmul.f32 %v2538_v34, %v8701_v26 }
 0x248   : > { %v6991_v53 = vadd.f32 %v2881_v59, %v2685_v56  ;;  %4499 = vset.pattern.permute.xlu1 %v8525_v44 }
 0x249   : > { %v2880_v54 = vmul.f32 %v6949_v62, %v2844_v23  ;;  %2105 = vperm.xlu1 %4499, %v8707_v11  }
 0x24b   : > { %v6997_v24 = vadd.f32 %v2880_v54, %v6882_v17  ;;  %v1638_v40 = vpop.permute.xlu1 %1637 }
 0x24c   : > { %v1710_v16 = vmul.f32 %v1638_v40, %v8753_v0  ;;  %v2655_v40 = vmul.f32 %v8589_v42, %v2619_v12 }
 0x24d   : > { %4500 = vset.pattern.permute.xlu1 %v8387_v29 }
 0x24e   : > { %v1746_v1 = vmul.f32 %v5433_v4, %v1710_v16  ;;  %2553 = vperm.xlu1 %4500, %v4586_v60  }
 0x250   : > { %v1778_v58 = vadd.f32 %v1746_v1, %v1485_v25  ;;  %v1862_v37 = vpop.permute.xlu1 %1861  ;;  %v8757_v1 = vld [vmem:[#allocation45_spill] sm:$0xff] }
 0x251   : > { %v1937_v59 = vmul.f32 %v1862_v37, %v8755_v6 }
 0x252   : > { %4501 = vset.pattern.permute.xlu1 %v8555_v43  ;;  %v7006_v17 = vadd.f32 %v1974_v15, %v1778_v58 }
 0x253   : > { %v1973_v56 = vmul.f32 %v5517_v31, %v1937_v59  ;;  %2777 = vperm.xlu1 %4501, %v6345_v46  }
 0x255   : > { %v2005_v23 = vadd.f32 %v1973_v56, %v6902_v10  ;;  %v2310_v54 = vpop.permute.xlu1 %2309  ;;  %v8756_v10 = vld [vmem:[#allocation13_spill] sm:$0xff] }
 0x256   : > { %v2391_v60 = vmul.f32 %v2310_v54, %v8755_v6  ;;  %v1712_v58 = vmul.f32 %v8757_v1, %v8756_v10  ;;  %v8761_v1 = vld [vmem:[#allocation33_spill] sm:$0xff] }
 0x257   : > { %4502 = vset.pattern.permute.xlu1 %v8628_v51 }
 0x258   : > { %v2427_v25 = vmul.f32 %v8547_v13, %v2391_v60  ;;  %1661 = vperm.xlu1 %4502, %v6979_v14   ;;  %v8758_v60 = vld [vmem:[#allocation81_spill] sm:$0xff] }
 0x25a   : > { %v2459_v16 = vadd.f32 %v2427_v25, %v2231_v63  ;;  %v2534_v28 = vpop.permute.xlu1 %2533  ;;  %v8759_v25 = vld [vmem:[#allocation84_spill] sm:$0xff] }
 0x25b   : > { %v2618_v15 = vmul.f32 %v2534_v28, %v8750_v30  ;;  %v1748_v30 = vmul.f32 %v5433_v4, %v1712_v58 }
 0x25c   : > { %v7018_v46 = vadd.f32 %v2655_v40, %v2459_v16  ;;  %4503 = vset.pattern.permute.xlu1 %v8582_v45  ;;  %v2393_v40 = vmul.f32 %v8759_v25, %v8758_v60  ;;  %v8760_v16 = vld [vmem:[#allocation126_spill] sm:$0xff] }
 0x25d   : > { %v2654_v26 = vmul.f32 %v8589_v42, %v2618_v15  ;;  %1885 = vperm.xlu1 %4503, %v6916_v57  }
 0x25f   : > { %v2686_v37 = vadd.f32 %v2654_v26, %v6921_v35  ;;  %v1353_v6 = vpop.permute.xlu1 %1352 }
 0x260   : > { %v1419_v59 = vmul.f32 %v1353_v6, %v8675_v3 }
 0x261   : > { %4504 = vset.pattern.permute.xlu1 %v8458_v61 }
 0x262   : > { %v1455_v63 = vmul.f32 %v5334_v49, %v1419_v59  ;;  %2333 = vperm.xlu1 %4504, %v8707_v11   ;;  %v8762_v59 = vld [vmem:[#allocation109_spill] sm:$0xff] }
 0x264   : > { %v1487_v34 = vadd.f32 %v1455_v63, %v6736_v2  ;;  %v1642_v56 = vpop.permute.xlu1 %1641  ;;  %v2429_v2 = vmul.f32 %v8547_v13, %v2393_v40 }
 0x265   : > { %v1711_v12 = vmul.f32 %v1642_v56, %v6751_v9  ;;  %v8764_v56 = vld [vmem:[#allocation49_spill] sm:$0xff] }
 0x266   : > { %4505 = vset.pattern.permute.xlu1 %v8387_v29  ;;  %v7034_v54 = vadd.f32 %v1748_v30, %v1487_v34  ;;  %v8763_v34 = vrot.slane %v8739_v48, 1 }
 0x267   : > { %v1747_v35 = vmul.f32 %v5433_v4, %v1711_v12  ;;  %2557 = vperm.xlu1 %4505, %v6730_v47   ;;  %v8765_v12 = vrot.slane %v8764_v56, 1 }
 0x269   : > { %v1779_v28 = vadd.f32 %v1747_v35, %v8760_v16  ;;  %v2090_v15 = vpop.permute.xlu1 %2089  ;;  %v7056_v35 = vsel %vm1531_vm2, %v8765_v12, %v8763_v34  ;;  %v8768_v34 = vld [vmem:[#allocation6_spill] sm:$0xff] }
 0x26a   : > { %v2165_v11 = vmul.f32 %v2090_v15, %v6751_v9 }
 0x26b   : > { %4506 = vset.pattern.permute.xlu1 %v8486_v38 }
 0x26c   : > { %v2201_v26 = vmul.f32 %v5500_v27, %v2165_v11  ;;  %1376 = vperm.xlu1 %4506, %v8761_v1   ;;  %v8766_v1 = vld [vmem:[#allocation72_spill] sm:$0xff] }
 0x26e   : > { %v2233_v58 = vadd.f32 %v2201_v26, %v2005_v23  ;;  %v2314_v6 = vpop.permute.xlu1 %2313  ;;  %v7062_v23 = vld [vmem:[%s8011_s5 + $0xc8] sm:$0xff] }
 0x26f   : > { %v2392_v30 = vmul.f32 %v2314_v6, %v8762_v59 }
 0x270   : > { %4507 = vset.pattern.permute.xlu1 %v8628_v51  ;;  %v7048_v63 = vadd.f32 %v2429_v2, %v2233_v58 }
 0x271   : > { %v2428_v25 = vmul.f32 %v8547_v13, %v2392_v30  ;;  %1665 = vperm.xlu1 %4507, %v7062_v23  }
 0x273   : > { %v2460_v40 = vadd.f32 %v2428_v25, %v6973_v19  ;;  %v2762_v16 = vpop.permute.xlu1 %2761  ;;  %v8767_v19 = vld [vmem:[#allocation97_spill] sm:$0xff] }
 0x274   : > { %v2846_v15 = vmul.f32 %v2762_v16, %v8753_v0 }
 0x275   : > { %4508 = vset.pattern.permute.xlu1 %v8525_v44 }
 0x276   : > { %v2882_v11 = vmul.f32 %v6949_v62, %v2846_v15  ;;  %2113 = vperm.xlu1 %4508, %v6916_v57  }
 0x278   : > { %v7070_v2 = vadd.f32 %v2882_v11, %v2686_v37  ;;  %v1357_v26 = vpop.permute.xlu1 %1356  ;;  %v2203_v37 = vmul.f32 %v5500_v27, %v8768_v34 }
 0x279   : > { %v1420_v58 = vmul.f32 %v1357_v26, %v8766_v1 }
 0x27a   : > { %4509 = vset.pattern.permute.xlu1 %v8458_v61 }
 0x27b   : > { %v1456_v6 = vmul.f32 %v5334_v49, %v1420_v58  ;;  %2337 = vperm.xlu1 %4509, %v6935_v39   ;;  %v8769_v58 = vld [vmem:[#allocation57_spill] sm:$0xff] }
 0x27d   : > { %v1488_v59 = vadd.f32 %v1456_v6, %v8767_v19  ;;  %v1870_v0 = vpop.permute.xlu1 %1869 }
 0x27e   : > { %v1939_v30 = vmul.f32 %v1870_v0, %v8758_v60  ;;  %v7091_v60 = vld [vmem:[%s8011_s5 + $0xd8] sm:$0xff] }
 0x27f   : > { %4510 = vset.pattern.permute.xlu1 %v8555_v43 }
 0x280   : > { %v1975_v12 = vmul.f32 %v5517_v31, %v1939_v30  ;;  %2785 = vperm.xlu1 %4510, %v6730_v47   ;;  %v2848_v47 = vmul.f32 %v8769_v58, %v8756_v10 }
 0x282   : > { %v2007_v25 = vadd.f32 %v1975_v12, %v1779_v28  ;;  %v2094_v16 = vpop.permute.xlu1 %2093  ;;  %v2884_v0 = vmul.f32 %v6949_v62, %v2848_v47 }
 0x283   : > { %v2166_v15 = vmul.f32 %v2094_v16, %v8756_v10  ;;  %v8770_v16 = vld [vmem:[#allocation128_spill] sm:$0xff] }
 0x284   : > { %4511 = vset.pattern.permute.xlu1 %v8486_v38  ;;  %v7085_v11 = vadd.f32 %v2203_v37, %v2007_v25 }
 0x285   : > { %v2202_v26 = vmul.f32 %v5500_v27, %v2166_v15  ;;  %1380 = vperm.xlu1 %4511, %v7091_v60  }
 0x287   : > { %v2234_v28 = vadd.f32 %v2202_v26, %v7006_v17  ;;  %v2542_v6 = vpop.permute.xlu1 %2541 }
 0x288   : > { %v2620_v19 = vmul.f32 %v2542_v6, %v8675_v3  ;;  %v8772_v6 = vld [vmem:[#allocation4_spill] sm:$0xff] }
 0x289   : > { %4513 = vset.pattern.permute.xlu1 %v8582_v45 }
 0x28a   : > { %v2656_v30 = vmul.f32 %v8589_v42, %v2620_v19  ;;  %1893 = vperm.xlu1 %4513, %v7062_v23  }
 0x28c   : > { %v2688_v34 = vadd.f32 %v2656_v30, %v2460_v40  ;;  %v2766_v37 = vpop.permute.xlu1 %2765  ;;  %v8771_v40 = vld [vmem:[#allocation44_spill] sm:$0xff] }
 0x28d   : > { %v2847_v12 = vmul.f32 %v2766_v37, %v6751_v9  ;;  %v1977_v26 = vmul.f32 %v5517_v31, %v8771_v40 }
 0x28e   : > { %v7103_v25 = vadd.f32 %v2884_v0, %v2688_v34  ;;  %4514 = vset.pattern.permute.xlu1 %v8525_v44  ;;  %v2550_v0 = vpop.permute.xlu0 %2549  ;;  %v4590_v34 = vld [vmem:[%s8011_s5 + $0xa8] sm:$0xff] }
 0x28f   : > { %v2883_v17 = vmul.f32 %v6949_v62, %v2847_v12  ;;  %2117 = vperm.xlu1 %4514, %v6979_v14   ;;  %v2622_v37 = vmul.f32 %v2550_v0, %v8696_v5 }
 0x291   : > { %v7109_v3 = vadd.f32 %v2883_v17, %v7018_v46  ;;  %v1650_v10 = vpop.permute.xlu1 %1649 }
 0x292   : > { %v1713_v15 = vmul.f32 %v1650_v10, %v8770_v16  ;;  %v2658_v10 = vmul.f32 %v8589_v42, %v2622_v37 }
 0x293   : > { %4516 = vset.pattern.permute.xlu1 %v8387_v29 }
 0x294   : > { %v1749_v9 = vmul.f32 %v5433_v4, %v1713_v15  ;;  %2565 = vperm.xlu1 %4516, %v6935_v39  }
 0x296   : > { %v1781_v58 = vadd.f32 %v1749_v9, %v1488_v59  ;;  %v1874_v47 = vpop.permute.xlu1 %1873 }
 0x297   : > { %v1940_v19 = vmul.f32 %v1874_v47, %v8772_v6 }
 0x298   : > { %4517 = vset.pattern.permute.xlu1 %v8555_v43  ;;  %v7119_v46 = vadd.f32 %v1977_v26, %v1781_v58 }
 0x299   : > { %v1976_v30 = vmul.f32 %v5517_v31, %v1940_v19  ;;  %2789 = vperm.xlu1 %4517, %v4590_v34   ;;  %v8775_v34 = vld [vmem:[#allocation113_spill] sm:$0xff] }
 0x29b   : > { %v2008_v39 = vadd.f32 %v1976_v30, %v7034_v54  ;;  %v2322_v59 = vpop.permute.xlu1 %2321  ;;  %v7140_v54 = vld [vmem:[%s8011_s5 + $0xd0] sm:$0xff] }
 0x29c   : > { %v2394_v12 = vmul.f32 %v2322_v59, %v8772_v6  ;;  %v8774_v6 = vld [vmem:[#allocation48_spill] sm:$0xff] }
 0x29d   : > { %4518 = vset.pattern.permute.xlu1 %v8628_v51 }
 0x29e   : > { %v2430_v17 = vmul.f32 %v8547_v13, %v2394_v12  ;;  %1673 = vperm.xlu1 %4518, %v7091_v60  }
 0x2a0   : > { %v2462_v15 = vadd.f32 %v2430_v17, %v2234_v28  ;;  %v2546_v40 = vpop.permute.xlu1 %2545  ;;  %v8773_v28 = vld [vmem:[#allocation9_spill] sm:$0xff] }
 0x2a1   : > { %v2621_v26 = vmul.f32 %v2546_v40, %v8766_v1  ;;  %v1715_v19 = vmul.f32 %v8774_v6, %v8773_v28 }
 0x2a2   : > { %v7133_v9 = vadd.f32 %v2658_v10, %v2462_v15  ;;  %4519 = vset.pattern.permute.xlu1 %v8582_v45  ;;  %v8776_v10 = vld [vmem:[#allocation93_spill] sm:$0xff]  ;;  %v8777_v15 = vld [vmem:[#allocation92_spill] sm:$0xff] }
 0x2a3   : > { %v2657_v5 = vmul.f32 %v8589_v42, %v2621_v26  ;;  %1897 = vperm.xlu1 %4519, %v7140_v54   ;;  %v1751_v30 = vmul.f32 %v5433_v4, %v1715_v19  ;;  %v2396_v40 = vmul.f32 %v8777_v15, %v8776_v10  ;;  %v7168_v19 = vld [vmem:[%s8011_s5 + $0xe8] sm:$0xff] }
 0x2a5   : > { %v2689_v58 = vadd.f32 %v2657_v5, %v7048_v63  ;;  %v1365_v47 = vpop.permute.xlu1 %1364 }
 0x2a6   : > { %v1422_v1 = vmul.f32 %v1365_v47, %v8747_v33  ;;  %v2432_v47 = vmul.f32 %v8547_v13, %v2396_v40 }
 0x2a7   : > { %4520 = vset.pattern.permute.xlu1 %v8458_v61 }
 0x2a8   : > { %v1458_v0 = vmul.f32 %v5334_v49, %v1422_v1  ;;  %2345 = vperm.xlu1 %4520, %v6979_v14  }
 0x2aa   : > { %v1490_v37 = vadd.f32 %v1458_v0, %v8775_v34  ;;  %v1654_v59 = vpop.permute.xlu1 %1653 }
 0x2ab   : > { %v1714_v12 = vmul.f32 %v1654_v59, %v6929_v41  ;;  %v7179_v59 = vld [vmem:[%s8011_s5 + $0xe0] sm:$0xff] }
 0x2ac   : > { %4521 = vset.pattern.permute.xlu1 %v8387_v29  ;;  %v7154_v63 = vadd.f32 %v1751_v30, %v1490_v37  ;;  %v8778_v30 = vld [vmem:[#allocation110_spill] sm:$0xff] }
 0x2ad   : > { %v1750_v17 = vmul.f32 %v5433_v4, %v1714_v12  ;;  %2569 = vperm.xlu1 %4521, %v6916_v57  }
 0x2af   : > { %v1782_v14 = vadd.f32 %v1750_v17, %v6880_v36  ;;  %v2102_v26 = vpop.permute.xlu1 %2101 }
 0x2b0   : > { %v2168_v5 = vmul.f32 %v2102_v26, %v6929_v41 }
 0x2b1   : > { %4522 = vset.pattern.permute.xlu1 %v8486_v38 }
 0x2b2   : > { %v2204_v6 = vmul.f32 %v5500_v27, %v2168_v5  ;;  %1388 = vperm.xlu1 %4522, %v7168_v19   ;;  %v8779_v5 = vld [vmem:[#allocation86_spill] sm:$0xff] }
 0x2b4   : > { %v2236_v1 = vadd.f32 %v2204_v6, %v2008_v39  ;;  %v2326_v0 = vpop.permute.xlu1 %2325 }
 0x2b5   : > { %v2395_v36 = vmul.f32 %v2326_v0, %v8778_v30  ;;  %v8780_v0 = vld [vmem:[#allocation111_spill] sm:$0xff] }
 0x2b6   : > { %4523 = vset.pattern.permute.xlu1 %v8628_v51  ;;  %v7173_v34 = vadd.f32 %v2432_v47, %v2236_v1 }
 0x2b7   : > { %v2431_v37 = vmul.f32 %v8547_v13, %v2395_v36  ;;  %1677 = vperm.xlu1 %4523, %v7179_v59  }
 0x2b9   : > { %v2463_v12 = vadd.f32 %v2431_v37, %v7085_v11  ;;  %v2774_v17 = vpop.permute.xlu1 %2773 }
 0x2ba   : > { %v2849_v39 = vmul.f32 %v2774_v17, %v8770_v16 }
 0x2bb   : > { %4524 = vset.pattern.permute.xlu1 %v8525_v44 }
 0x2bc   : > { %v2885_v15 = vmul.f32 %v6949_v62, %v2849_v39  ;;  %2125 = vperm.xlu1 %4524, %v7140_v54   ;;  %v8781_v39 = vmov 0  }
 0x2be   : > { %v7187_v40 = vadd.f32 %v2885_v15, %v2689_v58  ;;  %v1369_v26 = vpop.permute.xlu1 %1368  ;;  %v2206_v58 = vmul.f32 %v5500_v27, %v8780_v0 }
 0x2bf   : > { %v1423_v47 = vmul.f32 %v1369_v26, %v8779_v5 }
 0x2c0   : > { %4525 = vset.pattern.permute.xlu1 %v8458_v61 }
 0x2c1   : > { %v1459_v6 = vmul.f32 %v5334_v49, %v1423_v47  ;;  %2349 = vperm.xlu1 %4525, %v7062_v23  }
 0x2c3   : > { %v1491_v11 = vadd.f32 %v1459_v6, %v6872_v32  ;;  %v1882_v16 = vpop.permute.xlu1 %1881 }
 0x2c4   : > { %v1942_v1 = vmul.f32 %v1882_v16, %v8776_v10  ;;  %v8782_v10 = vld [vmem:[#allocation61_spill] sm:$0xff] }
 0x2c5   : > { %4526 = vset.pattern.permute.xlu1 %v8555_v43  ;;  %v2851_v26 = vmul.f32 %v8782_v10, %v8773_v28  ;;  %v8785_v10 = vld [vmem:[#allocation83_spill] sm:$0xff] }
 0x2c6   : > { %v1978_v30 = vmul.f32 %v5517_v31, %v1942_v1  ;;  %2797 = vperm.xlu1 %4526, %v6916_v57  }
 0x2c8   : > { %v2010_v36 = vadd.f32 %v1978_v30, %v1782_v14  ;;  %v2106_v37 = vpop.permute.xlu1 %2105  ;;  %v2887_v14 = vmul.f32 %v6949_v62, %v2851_v26 }
 0x2c9   : > { %v2169_v17 = vmul.f32 %v2106_v37, %v8773_v28 }
 0x2ca   : > { %4527 = vset.pattern.permute.xlu1 %v8781_v39  ;;  %v7202_v15 = vadd.f32 %v2206_v58, %v2010_v36  ;;  %v8783_v36 = vld [vmem:[#allocation130_spill] sm:$0xff] }
 0x2cb   : > { %v2205_v32 = vmul.f32 %v5500_v27, %v2169_v17  ;;  %1168 = vperm.xlu1 %4527, %v6944_v21  }
 0x2cd   : > { %v2237_v47 = vadd.f32 %v2205_v32, %v7119_v46  ;;  %v2554_v6 = vpop.permute.xlu1 %2553 }
 0x2ce   : > { %v2623_v57 = vmul.f32 %v2554_v6, %v8747_v33  ;;  %v2562_v6 = vpop.permute.xlu0 %2561 }
 0x2cf   : > { %4529 = vset.pattern.permute.xlu1 %v8628_v51 }
 0x2d0   : > { %v2659_v16 = vmul.f32 %v8589_v42, %v2623_v57  ;;  %1681 = vperm.xlu1 %4529, %v7168_v19  }
 0x2d2   : > { %v2691_v1 = vadd.f32 %v2659_v16, %v2463_v12  ;;  %v2778_v0 = vpop.permute.xlu1 %2777  ;;  %v8784_v12 = vld [vmem:[#allocation34_spill] sm:$0xff] }
 0x2d3   : > { %v2850_v58 = vmul.f32 %v2778_v0, %v6929_v41  ;;  %v1980_v17 = vmul.f32 %v5517_v31, %v8784_v12 }
 0x2d4   : > { %v7215_v30 = vadd.f32 %v2887_v14, %v2691_v1  ;;  %4530 = vset.pattern.permute.xlu1 %v8582_v45  ;;  %v2625_v14 = vmul.f32 %v2562_v6, %v8764_v56 }
 0x2d5   : > { %v2886_v46 = vmul.f32 %v6949_v62, %v2850_v58  ;;  %1905 = vperm.xlu1 %4530, %v7179_v59  }
 0x2d6   : > { %v2661_v58 = vmul.f32 %v8589_v42, %v2625_v14 }
 0x2d7   : > { %v7221_v33 = vadd.f32 %v2886_v46, %v7133_v9  ;;  %v1662_v28 = vpop.permute.xlu1 %1661 }
 0x2d8   : > { %v1716_v37 = vmul.f32 %v1662_v28, %v8783_v36 }
 0x2d9   : > { %4531 = vset.pattern.permute.xlu1 %v8458_v61 }
 0x2da   : > { %v1752_v41 = vmul.f32 %v5433_v4, %v1716_v37  ;;  %2353 = vperm.xlu1 %4531, %v7140_v54  }
 0x2dc   : > { %v1784_v39 = vadd.f32 %v1752_v41, %v1491_v11  ;;  %v1886_v32 = vpop.permute.xlu1 %1885  ;;  %v8787_v41 = vld [vmem:[#allocation52_spill] sm:$0xff] }
 0x2dd   : > { %v1943_v26 = vmul.f32 %v1886_v32, %v8785_v10 }
 0x2de   : > { %4532 = vset.pattern.permute.xlu1 %v8387_v29  ;;  %v7231_v9 = vadd.f32 %v1980_v17, %v1784_v39 }
 0x2df   : > { %v1979_v57 = vmul.f32 %v5517_v31, %v1943_v26  ;;  %2577 = vperm.xlu1 %4532, %v7062_v23  }
 0x2e1   : > { %v2011_v16 = vadd.f32 %v1979_v57, %v7154_v63  ;;  %v2334_v1 = vpop.permute.xlu1 %2333 }
 0x2e2   : > { %v2397_v0 = vmul.f32 %v2334_v1, %v8785_v10  ;;  %v8788_v1 = vld [vmem:[#allocation15_spill] sm:$0xff] }
 0x2e3   : > { %4533 = vset.pattern.permute.xlu1 %v8486_v38  ;;  %v7250_v38 = vld [vmem:[%s8011_s5 + $0xf0] sm:$0xff] }
 0x2e4   : > { %v2433_v11 = vmul.f32 %v8547_v13, %v2397_v0  ;;  %1396 = vperm.xlu1 %4533, %v6944_v21  }
 0x2e6   : > { %v2465_v46 = vadd.f32 %v2433_v11, %v2237_v47  ;;  %v2558_v28 = vpop.permute.xlu1 %2557  ;;  %v8786_v47 = vld [vmem:[#allocation56_spill] sm:$0xff] }
 0x2e7   : > { %v2624_v37 = vmul.f32 %v2558_v28, %v8779_v5  ;;  %v1718_v39 = vmul.f32 %v8787_v41, %v8786_v47 }
 0x2e8   : > { %v7243_v12 = vadd.f32 %v2661_v58, %v2465_v46  ;;  %4534 = vset.pattern.permute.xlu1 %v8628_v51  ;;  %v8789_v58 = vld [vmem:[#allocation42_spill] sm:$0xff]  ;;  %v8790_v46 = vld [vmem:[#allocation96_spill] sm:$0xff] }
 0x2e9   : > { %v2660_v56 = vmul.f32 %v8589_v42, %v2624_v37  ;;  %1685 = vperm.xlu1 %4534, %v7250_v38   ;;  %v1754_v10 = vmul.f32 %v5433_v4, %v1718_v39  ;;  %v2399_v28 = vmul.f32 %v8790_v46, %v8789_v58  ;;  %v8791_v39 = vld [vmem:[#allocation116_spill] sm:$0xff] }
 0x2eb   : > { %v2692_v63 = vadd.f32 %v2660_v56, %v7173_v34  ;;  %v1377_v17 = vpop.permute.xlu1 %1376  ;;  %v2435_v56 = vmul.f32 %v8547_v13, %v2399_v28  ;;  %v8794_v28 = vld [vmem:[#allocation85_spill] sm:$0xff] }
 0x2ec   : > { %v1425_v5 = vmul.f32 %v1377_v17, %v8739_v48 }
 0x2ed   : > { %4535 = vset.pattern.permute.xlu1 %v8525_v44 }
 0x2ee   : > { %v1461_v32 = vmul.f32 %v5334_v49, %v1425_v5  ;;  %2133 = vperm.xlu1 %4535, %v7179_v59  }
 0x2f0   : > { %v1493_v26 = vadd.f32 %v1461_v32, %v6874_v7  ;;  %v1666_v6 = vpop.permute.xlu1 %1665 }
 0x2f1   : > { %v1717_v57 = vmul.f32 %v1666_v6, %v7056_v35 }
 0x2f2   : > { %4536 = vset.pattern.permute.xlu1 %v8458_v61  ;;  %v7264_v34 = vadd.f32 %v1754_v10, %v1493_v26 }
 0x2f3   : > { %v1753_v14 = vmul.f32 %v5433_v4, %v1717_v57  ;;  %2357 = vperm.xlu1 %4536, %v7091_v60   ;;  %v8792_v57 = vld [vmem:[#allocation91_spill] sm:$0xff] }
 0x2f5   : > { %v1785_v0 = vadd.f32 %v1753_v14, %v8788_v1  ;;  %v2114_v11 = vpop.permute.xlu1 %2113 }
 0x2f6   : > { %v2171_v37 = vmul.f32 %v2114_v11, %v7056_v35 }
 0x2f7   : > { %4537 = vset.pattern.permute.xlu1 %v8555_v43 }
 0x2f8   : > { %v2207_v7 = vmul.f32 %v5500_v27, %v2171_v37  ;;  %2805 = vperm.xlu1 %4537, %v7062_v23  }
 0x2fa   : > { %v2239_v17 = vadd.f32 %v2207_v7, %v2011_v16  ;;  %v2338_v41 = vpop.permute.xlu1 %2337 }
 0x2fb   : > { %v2398_v60 = vmul.f32 %v2338_v41, %v8791_v39 }
 0x2fc   : > { %4538 = vset.pattern.permute.xlu1 %v8628_v51  ;;  %v7278_v5 = vadd.f32 %v2435_v56, %v2239_v17 }
 0x2fd   : > { %v2434_v32 = vmul.f32 %v8547_v13, %v2398_v60  ;;  %1689 = vperm.xlu1 %4538, %v6944_v21  }
 0x2ff   : > { %v2466_v10 = vadd.f32 %v2434_v32, %v7202_v15  ;;  %v2786_v26 = vpop.permute.xlu1 %2785  ;;  %v8793_v15 = vld [vmem:[#allocation99_spill] sm:$0xff] }
 0x300   : > { %v2852_v6 = vmul.f32 %v2786_v26, %v8783_v36 }
 0x301   : > { %4540 = vset.pattern.permute.xlu1 %v8525_v44 }
 0x302   : > { %v2888_v23 = vmul.f32 %v6949_v62, %v2852_v6  ;;  %2137 = vperm.xlu1 %4540, %v7168_v19  }
 0x304   : > { %v7287_v16 = vadd.f32 %v2888_v23, %v2692_v63  ;;  %v1381_v51 = vpop.permute.xlu1 %1380  ;;  %v2209_v63 = vmul.f32 %v5500_v27, %v8794_v28 }
 0x305   : > { %v1426_v14 = vmul.f32 %v1381_v51, %v8792_v57 }
 0x306   : > { %4541 = vset.pattern.permute.xlu1 %v8458_v61 }
 0x307   : > { %v1462_v1 = vmul.f32 %v5334_v49, %v1426_v14  ;;  %2361 = vperm.xlu1 %4541, %v7179_v59  }
 0x309   : > { %v1494_v11 = vadd.f32 %v1462_v1, %v8793_v15  ;;  %v1894_v36 = vpop.permute.xlu1 %1893  ;;  %v8796_v1 = vld [vmem:[#allocation87_spill] sm:$0xff] }
 0x30a   : > { %v1945_v46 = vmul.f32 %v1894_v36, %v8789_v58  ;;  %v8795_v58 = vld [vmem:[#allocation132_spill] sm:$0xff] }
 0x30b   : > { %4542 = vset.pattern.permute.xlu1 %v8555_v43  ;;  %v2854_v60 = vmul.f32 %v8795_v58, %v8786_v47 }
 0x30c   : > { %v1981_v37 = vmul.f32 %v5517_v31, %v1945_v46  ;;  %2809 = vperm.xlu1 %4542, %v7140_v54  }
 0x30e   : > { %v2013_v7 = vadd.f32 %v1981_v37, %v1785_v0  ;;  %v2118_v56 = vpop.permute.xlu1 %2117  ;;  %v2890_v0 = vmul.f32 %v6949_v62, %v2854_v60  ;;  %v8799_v37 = vld [vmem:[#allocation123_spill] sm:$0xff] }
 0x30f   : > { %v2172_v17 = vmul.f32 %v2118_v56, %v8786_v47  ;;  %v2574_v56 = vpop.permute.xlu0 %2573 }
 0x310   : > { %4543 = vset.pattern.permute.xlu1 %v8582_v45  ;;  %v7302_v41 = vadd.f32 %v2209_v63, %v2013_v7 }
 0x311   : > { %v2208_v39 = vmul.f32 %v5500_v27, %v2172_v17  ;;  %1917 = vperm.xlu1 %4543, %v6944_v21   ;;  %v8800_v17 = vld [vmem:[#allocation3_spill] sm:$0xff] }
 0x313   : > { %v2240_v32 = vadd.f32 %v2208_v39, %v7231_v9  ;;  %v2566_v26 = vpop.permute.xlu1 %2565  ;;  %v2628_v39 = vmul.f32 %v2574_v56, %v8800_v17 }
 0x314   : > { %v2626_v54 = vmul.f32 %v2566_v26, %v8739_v48 }
 0x315   : > { %4545 = vset.pattern.permute.xlu1 %v8458_v61 }
 0x316   : > { %v2662_v45 = vmul.f32 %v8589_v42, %v2626_v54  ;;  %2365 = vperm.xlu1 %4545, %v7168_v19   ;;  %v8801_v54 = vld [vmem:[#allocation90_spill] sm:$0xff] }
 0x318   : > { %v2694_v6 = vadd.f32 %v2662_v45, %v2466_v10  ;;  %v2790_v23 = vpop.permute.xlu1 %2789 }
 0x319   : > { %v2853_v51 = vmul.f32 %v2790_v23, %v7056_v35  ;;  %v8797_v35 = vld [vmem:[#allocation80_spill] sm:$0xff] }
 0x31a   : > { %v7315_v14 = vadd.f32 %v2890_v0, %v2694_v6  ;;  %4546 = vset.pattern.permute.xlu1 %v8387_v29  ;;  %v1983_v36 = vmul.f32 %v5517_v31, %v8797_v35  ;;  %v8798_v29 = vld [vmem:[#allocation31_spill] sm:$0xff]  ;;  %v2664_v6 = vmul.f32 %v8589_v42, %v2628_v39 }
 0x31b   : > { %v2889_v9 = vmul.f32 %v6949_v62, %v2853_v51  ;;  %2589 = vperm.xlu1 %4546, %v7179_v59   ;;  %v2211_v46 = vmul.f32 %v5500_v27, %v8798_v29  ;;  %v8803_v51 = vld [vmem:[#allocation66_spill] sm:$0xff] }
 0x31d   : > { %v7321_v48 = vadd.f32 %v2889_v9, %v7243_v12  ;;  %v1674_v47 = vpop.permute.xlu1 %1673  ;;  %v8804_v9 = vld [vmem:[#allocation25_spill] sm:$0xff] }
 0x31e   : > { %v1719_v15 = vmul.f32 %v1674_v47, %v8796_v1  ;;  %v1200_v47 = vmul.f32 %v8804_v9, %v8803_v51 }
 0x31f   : > { %4548 = vset.pattern.permute.xlu1 %v8525_v44 }
 0x320   : > { %v1755_v10 = vmul.f32 %v5433_v4, %v1719_v15  ;;  %2145 = vperm.xlu1 %4548, %v6944_v21  }
 0x322   : > { %v1787_v28 = vadd.f32 %v1755_v10, %v1494_v11  ;;  %v1898_v63 = vpop.permute.xlu1 %1897  ;;  %v8802_v11 = vld [vmem:[#allocation134_spill] sm:$0xff] }
 0x323   : > { %v1946_v12 = vmul.f32 %v1898_v63, %v8799_v37  ;;  %v2856_v0 = vmul.f32 %v8802_v11, %v8801_v54 }
 0x324   : > { %v2015_v7 = vadd.f32 %v1983_v36, %v1787_v28  ;;  %4549 = vset.pattern.permute.xlu1 %v8458_v61 }
 0x325   : > { %v1982_v44 = vmul.f32 %v5517_v31, %v1946_v12  ;;  %2369 = vperm.xlu1 %4549, %v7250_v38   ;;  %v2892_v15 = vmul.f32 %v6949_v62, %v2856_v0  ;;  %v8806_v12 = vld [vmem:[#allocation10_spill] sm:$0xff] }
 0x326   : > { %v7336_v58 = vadd.f32 %v2211_v46, %v2015_v7  ;;  %v1236_v46 = vmul.f32 %v5279_v8, %v1200_v47 }
 0x327   : > { %v2014_v60 = vadd.f32 %v1982_v44, %v7264_v34  ;;  %v2346_v26 = vpop.permute.xlu1 %2345 }
 0x328   : > { %v2400_v45 = vmul.f32 %v2346_v26, %v8799_v37 }
 0x329   : > { %4550 = vset.pattern.permute.xlu1 %v8555_v43 }
 0x32a   : > { %v2436_v23 = vmul.f32 %v8547_v13, %v2400_v45  ;;  %2817 = vperm.xlu1 %4550, %v7179_v59   ;;  %v8805_v59 = vld [vmem:[#allocation68_spill] sm:$0xff] }
 0x32b   : > { %v941_v63 = vmul.f32 %v5264_v50, %v8805_v59 }
 0x32c   : > { %v2468_v34 = vadd.f32 %v2436_v23, %v2240_v32  ;;  %v2570_v10 = vpop.permute.xlu1 %2569 }
 0x32d   : > { %v2627_v35 = vmul.f32 %v2570_v10, %v8792_v57  ;;  %v1268_v57 = vadd.f32 %v1236_v46, %v941_v63  ;;  %v8807_v10 = vld [vmem:[#allocation5_spill] sm:$0xff] }
 0x32e   : > { %v2696_v36 = vadd.f32 %v2664_v6, %v2468_v34  ;;  %4551 = vset.pattern.permute.xlu1 %v8458_v61  ;;  %v3041_v6 = vld [vmem:[%s8012_s6] sm:$0xff] }
 0x32f   : > { %v2663_v29 = vmul.f32 %v8589_v42, %v2627_v35  ;;  %2373 = vperm.xlu1 %4551, %v6944_v21  }
 0x330   : > { %v7354_v28 = vadd.f32 %v2892_v15, %v2696_v36 }
 0x331   : > { %v2695_v37 = vadd.f32 %v2663_v29, %v7278_v5  ;;  %v1389_v32 = vpop.permute.xlu1 %1388  ;;  %v8808_v29 = vld [vmem:[#allocation133_spill] sm:$0xff] }
 0x332   : > { %v1428_v7 = vmul.f32 %v1389_v32, %v8806_v12 }
 0x333   : > { %4552 = vset.pattern.permute.xlu1 %v8555_v43 }
 0x334   : > { %v1464_v61 = vmul.f32 %v5334_v49, %v1428_v7  ;;  %2821 = vperm.xlu1 %4552, %v7168_v19  }
 0x336   : > { %v1496_v21 = vadd.f32 %v1464_v61, %v1268_v57  ;;  %v1678_v56 = vpop.permute.xlu1 %1677  ;;  %v8810_v57 = vld [vmem:[#allocation11_spill] sm:$0xff] }
 0x337   : > { %v1720_v44 = vmul.f32 %v1678_v56, %v8801_v54 }
 0x338   : > { %2825 = vperm.xlu1 %4552, %v7250_v38   ;;  %v3042_v38 = vld [vmem:[%s8012_s6 + $0x8] sm:$0xff] }
 0x339   : > { %v1756_v17 = vmul.f32 %v5433_v4, %v1720_v44  ;;  %v4305_v23 = vpack.c.bf16 %v3042_v38, %v3041_v6 }
 0x33b   : > { %v1788_v5 = vadd.f32 %v1756_v17, %v6885_v52  ;;  %v2126_v39 = vpop.permute.xlu1 %2125  ;;  %v4643_v52 = vmov 0.0|0.0   ;;  %v8811_v17 = vld [vmem:[#allocation119_spill] sm:$0xff] }
 0x33c   : > { %v2174_v26 = vmul.f32 %v2126_v39, %v8801_v54  ;;  %4304 = vmatprep.subr.bf16.mxu1 %v4643_v52  ;;  %v8239_v54 = vmov 0.0  }
 0x33d   : > { %4194 = vmatprep.mubr.msk.f32.mxu1 %vm4644_vm4, %v8239_v54  ;;  %4306 = vmatpush3.bf16.msra.mxu1 %v4305_v23 }
 0x33e   : > { %v2210_v43 = vmul.f32 %v5500_v27, %v2174_v26  ;;  %4197 = vmatprep.subr.mxu1 %v8239_v54 }
 0x340   : > { %v2242_v11 = vadd.f32 %v2210_v43, %v2014_v60  ;;  %v2350_v0 = vpop.permute.xlu1 %2349 }
 0x341   : > { %v2401_v45 = vmul.f32 %v2350_v0, %v8803_v51 }
 0x343   : > { %v2437_v19 = vmul.f32 %v8547_v13, %v2401_v45 }
 0x345   : > { %v2469_v60 = vadd.f32 %v2437_v19, %v7302_v41  ;;  %v2798_v51 = vpop.permute.xlu1 %2797  ;;  %v8809_v41 = vld [vmem:[#allocation54_spill] sm:$0xff] }
 0x346   : > { %v2855_v9 = vmul.f32 %v2798_v51, %v8796_v1  ;;  %v1985_v32 = vmul.f32 %v5517_v31, %v8809_v41 }
 0x348   : > { %v2891_v47 = vmul.f32 %v6949_v62, %v2855_v9 }
 0x34a   : > { %v7383_v15 = vadd.f32 %v2891_v47, %v2695_v37  ;;  %v1169_v34 = vpop.permute.xlu1 %1168  ;;  %v2582_v37 = vpop.permute.xlu0 %2581  ;;  %v7410_v47 = vld [vmem:[%s8010_s4] ss:$0 sm:$0xff] }
 0x34b   : > { %v7386_v35 = vmul.f32 %v1169_v34, %v8807_v10  ;;  %v2630_v39 = vmul.f32 %v2582_v37, %v8811_v17  ;;  %v8813_v34 = vld [vmem:[#allocation32_spill] sm:$0xff]  ;;  %v8817_v37 = vld [vmem:[#allocation46_spill] sm:$0xff] }
 0x34d   : > { %v2666_v45 = vmul.f32 %v8589_v42, %v2630_v39  ;;  %v8818_v39 = vld [vmem:[#allocation60_spill] sm:$0xff] }
 0x34f   : > { %v1682_v36 = vpop.permute.xlu1 %1681 }
 0x350   : > { %v1721_v46 = vmul.f32 %v1682_v36, %v8808_v29  ;;  %v8814_v36 = vld [vmem:[#allocation115_spill] sm:$0xff] }
 0x352   : > { %v1757_v63 = vmul.f32 %v5433_v4, %v1721_v46  ;;  %v7426_v46 = vadd.f32 %v7410_v47, %v8814_v36 }
 0x354   : > { %v1789_v1 = vadd.f32 %v1757_v63, %v1496_v21  ;;  %v1906_v7 = vpop.permute.xlu1 %1905 }
 0x355   : > { %v1948_v61 = vmul.f32 %v1906_v7, %v8810_v57  ;;  %v8816_v7 = vld [vmem:[#allocation117_spill] sm:$0xff] }
 0x356   : > { %v7393_v56 = vadd.f32 %v1985_v32, %v1789_v1  ;;  %v8815_v1 = vld [vmem:[#allocation23_spill] sm:$0xff] }
 0x357   : > { %v1984_v44 = vmul.f32 %v5517_v31, %v1948_v61 }
 0x359   : > { %v2016_v26 = vadd.f32 %v1984_v44, %v1788_v5  ;;  %v2354_v43 = vpop.permute.xlu1 %2353  ;;  %v8240_v5 = vrot.slane %v8805_v59, 1  ;;  %v7436_v44 = vadd.f32 %v7410_v47, %v8817_v37 }
 0x35a   : > { %v2402_v0 = vmul.f32 %v2354_v43, %v8810_v57  ;;  %v2178_v57 = vmul.f32 %v8816_v7, %v8815_v1  ;;  %v1986_v43 = vmul.f32 %v5517_v31, %v8818_v39 }
 0x35c   : > { %v2438_v19 = vmul.f32 %v8547_v13, %v2402_v0 }
 0x35e   : > { %v2470_v6 = vadd.f32 %v2438_v19, %v2242_v11  ;;  %v2578_v21 = vpop.permute.xlu1 %2577  ;;  %v8812_v11 = vrot.slane %v8811_v17, 1  ;;  %v2972_v17 = vsel %vm2971_vm5, %v7426_v46, 0.0 }
 0x35f   : > { %v2629_v38 = vmul.f32 %v2578_v21, %v8806_v12  ;;  %v2214_v21 = vmul.f32 %v5500_v27, %v2178_v57 }
 0x360   : > { %v7401_v52 = vadd.f32 %v2666_v45, %v2470_v6  ;;  %v7418_v12 = vsel %vm1531_vm2, %v8812_v11, %v8240_v5 }
 0x361   : > { %v2665_v23 = vmul.f32 %v8589_v42, %v2629_v38 }
 0x363   : > { %v2697_v51 = vadd.f32 %v2665_v23, %v2469_v60  ;;  %v7404_v9 = vpop.permute.xlu1 %1396  ;;  %v7422_v60 = vadd.f32 %v7410_v47, %v8813_v34  ;;  %v2975_v23 = vsel %vm2971_vm5, %v7436_v44, 0.0  ;;  %v8819_v34 = vld [vmem:[#allocation63_spill] sm:$0xff] }
 0x364   : > { %v7450_v36 = vadd.f32 %v7410_v47, %v8819_v34 }
 0x365   : > { %v2973_v32 = vsel %vm2971_vm5, %v7422_v60, 0.0 }
 0x366   : > { %v2974_v19 = vadd.f32 %v2973_v32, %v2972_v17  ;;  %v2977_v37 = vsel %vm2971_vm5, %v7450_v36, 0.0 }
 0x368   : > { %v1686_v63 = vpop.permute.xlu1 %1685 }
 0x369   : > { %v1722_v41 = vmul.f32 %v1686_v63, %v7418_v12 }
 0x36b   : > { %v1758_v61 = vmul.f32 %v5433_v4, %v1722_v41  ;;  %v2976_v41 = vadd.f32 %v2975_v23, %v2974_v19  ;;  %v8822_v19 = vld [vmem:[#allocation94_spill] sm:$0xff] }
 0x36d   : > { %v1790_v0 = vadd.f32 %v1758_v61, %v6889_v55  ;;  %v2134_v45 = vpop.permute.xlu1 %2133  ;;  %v8820_v61 = vld [vmem:[#allocation124_spill] sm:$0xff]  ;;  %v2978_v39 = vadd.f32 %v2977_v37, %v2976_v41  ;;  %v8824_v37 = vld [vmem:[#allocation107_spill] sm:$0xff] }
 0x36e   : > { %v2176_v6 = vmul.f32 %v2134_v45, %v7418_v12  ;;  %v7457_v57 = vadd.f32 %v7410_v47, %v8820_v61  ;;  %v8821_v45 = vld [vmem:[#allocation29_spill] sm:$0xff] }
 0x36f   : > { %v2018_v38 = vadd.f32 %v1986_v43, %v1790_v0 }
 0x370   : > { %v2212_v11 = vmul.f32 %v5500_v27, %v2176_v6  ;;  %v7473_v6 = vadd.f32 %v7410_v47, %v8822_v19 }
 0x371   : > { %v7452_v63 = vadd.f32 %v2214_v21, %v2018_v38 }
 0x372   : > { %v2244_v55 = vadd.f32 %v2212_v11, %v2016_v26  ;;  %v2358_v7 = vpop.permute.xlu1 %2357  ;;  %v7467_v26 = vadd.f32 %v7410_v47, %v8821_v45  ;;  %v2983_v11 = vsel %vm2971_vm5, %v7473_v6, 0.0 }
 0x373   : > { %v2403_v32 = vmul.f32 %v2358_v7, %v8807_v10  ;;  %v2979_v10 = vsel %vm2971_vm5, %v7457_v57, 0.0 }
 0x374   : > { %v2980_v38 = vadd.f32 %v2979_v10, %v2978_v39 }
 0x375   : > { %v2439_v17 = vmul.f32 %v8547_v13, %v2403_v32  ;;  %v8823_v32 = vld [vmem:[#allocation35_spill] sm:$0xff] }
 0x376   : > { %v7487_v61 = vadd.f32 %v7410_v47, %v8823_v32 }
 0x377   : > { %v7463_v43 = vadd.f32 %v2439_v17, %v7336_v58  ;;  %v2806_v0 = vpop.permute.xlu1 %2805  ;;  %v2981_v58 = vsel %vm2971_vm5, %v7467_v26, 0.0  ;;  %v8825_v17 = vld [vmem:[#allocation118_spill] sm:$0xff] }
 0x378   : > { %v2857_v21 = vmul.f32 %v2806_v0, %v8808_v29  ;;  %v2982_v7 = vadd.f32 %v2981_v58, %v2980_v38  ;;  %v7491_v29 = vadd.f32 %v7410_v47, %v8824_v37  ;;  %v7495_v39 = vadd.f32 %v7410_v47, %v8825_v17  ;;  %v8826_v38 = vld [vmem:[#allocation55_spill] sm:$0xff] }
 0x379   : > { %v7511_v58 = vadd.f32 %v7410_v47, %v6954_v20  ;;  %v7516_v17 = vadd.f32 %v7410_v47, %v6997_v24  ;;  %v7530_v24 = vadd.f32 %v7410_v47, %v6991_v53 }
 0x37a   : > { %v2893_v23 = vmul.f32 %v6949_v62, %v2857_v21  ;;  %v2984_v62 = vadd.f32 %v2983_v11, %v2982_v7  ;;  %v2987_v45 = vsel %vm2971_vm5, %v7491_v29, 0.0  ;;  %v2989_v19 = vsel %vm2971_vm5, %v7495_v39, 0.0  ;;  %v8827_v7 = vld [vmem:[#allocation17_spill] sm:$0xff] }
 0x37b   : > { %8828 = vst [vmem:[#allocation65_spill] sm:$0xff] %v7530_v24 }
 0x37c   : > { %v7481_v34 = vadd.f32 %v2893_v23, %v2697_v51  ;;  %v7483_v41 = vpop.permute.xlu1 %1689  ;;  %v2985_v51 = vsel %vm2971_vm5, %v7487_v61, 0.0  ;;  %v7507_v23 = vadd.f32 %v7410_v47, %v8826_v38 }
 0x37d   : > { %v2986_v10 = vadd.f32 %v2985_v51, %v2984_v62 }
 0x37e   : > { %v2991_v51 = vsel %vm2971_vm5, %v7507_v23, 0.0 }
 0x37f   : > { %v2988_v21 = vadd.f32 %v2987_v45, %v2986_v10  ;;  %v2993_v45 = vsel %vm2971_vm5, %v7511_v58, 0.0 }
 0x381   : > { %v7497_v0 = vpop.permute.xlu1 %2137  ;;  %v2990_v37 = vadd.f32 %v2989_v19, %v2988_v21 }
 0x383   : > { %v2992_v38 = vadd.f32 %v2991_v51, %v2990_v37 }
 0x385   : > { %v2994_v21 = vadd.f32 %v2993_v45, %v2992_v38 }
 0x386   : > { %v2362_v11 = vpop.permute.xlu1 %2361 }
 0x387   : > { %v2404_v32 = vmul.f32 %v2362_v11, %v8827_v7  ;;  %v2995_v11 = vsel %vm2971_vm5, %v7516_v17, 0.0  ;;  %v7534_v7 = vadd.f32 %v7410_v47, %v7070_v2  ;;  %v2997_v2 = vsel %vm2971_vm5, %v7530_v24, 0.0 }
 0x388   : > { %v2996_v37 = vadd.f32 %v2995_v11, %v2994_v21  ;;  %v7565_v21 = vadd.f32 %v7410_v47, %v7221_v33  ;;  %v7579_v33 = vadd.f32 %v7410_v47, %v7287_v16 }
 0x389   : > { %v2440_v62 = vmul.f32 %v8547_v13, %v2404_v32  ;;  %8829 = vst [vmem:[#allocation70_spill] sm:$0xff] %v7534_v7  ;;  %v2999_v51 = vsel %vm2971_vm5, %v7534_v7, 0.0 }
 0x38a   : > { %v2998_v45 = vadd.f32 %v2997_v2, %v2996_v37  ;;  %8833 = vst [vmem:[#allocation36_spill] sm:$0xff] %v7565_v21  ;;  %8835 = vst [vmem:[#allocation131_spill] sm:$0xff] %v7579_v33 }
 0x38b   : > { %v7523_v10 = vadd.f32 %v2440_v62, %v2244_v55  ;;  %v2810_v20 = vpop.permute.xlu1 %2809  ;;  %v7539_v55 = vld [vmem:[%s8009_s3 + $0x8] ss:$0 sm:$0xff] }
 0x38c   : > { %v2858_v19 = vmul.f32 %v2810_v20, %v7418_v12  ;;  %v7544_v12 = vadd.f32 %v7410_v47, %v7109_v3  ;;  %v3000_v11 = vadd.f32 %v2999_v51, %v2998_v45  ;;  %v7557_v3 = vadd.f32 %v7410_v47, %v7103_v25 }
 0x38d   : > { %v3007_v25 = vsel %vm2971_vm5, %v7565_v21, 0.0 }
 0x38e   : > { %v2894_v32 = vmul.f32 %v7539_v55, %v2858_v19  ;;  %8830 = vst [vmem:[#allocation28_spill] sm:$0xff] %v7544_v12  ;;  %v3001_v20 = vsel %vm2971_vm5, %v7544_v12, 0.0  ;;  %8831 = vst [vmem:[#allocation14_spill] sm:$0xff] %v7557_v3  ;;  %v3003_v37 = vsel %vm2971_vm5, %v7557_v3, 0.0  ;;  %v8839_v3 = vld [vmem:[#allocation101_spill] sm:$0xff]  ;;  %v1238_v12 = vmul.f32 %v5279_v8, %v7386_v35 }
 0x38f   : > { %v3002_v19 = vadd.f32 %v3001_v20, %v3000_v11 }
 0x390   : > { %v7547_v62 = vadd.f32 %v2894_v32, %v7401_v52  ;;  %v1918_v53 = vpop.permute.xlu1 %1917  ;;  %v7561_v52 = vadd.f32 %v7410_v47, %v7187_v40  ;;  %v2586_v32 = vpop.permute.xlu0 %2585  ;;  %v7575_v40 = vadd.f32 %v7410_v47, %v7215_v30  ;;  %v8837_v30 = vrot.slane %v8740_v18, 1 }
 0x391   : > { %v3004_v45 = vadd.f32 %v3003_v37, %v3002_v19  ;;  %v3011_v37 = vsel %vm2971_vm5, %v7579_v33, 0.0  ;;  %v943_v33 = vmul.f32 %v5264_v50, %v8839_v3  ;;  %v7615_v50 = vadd.f32 %v7410_v47, %v7383_v15 }
 0x392   : > { %8832 = vst [vmem:[#allocation62_spill] sm:$0xff] %v7561_v52  ;;  %v3005_v2 = vsel %vm2971_vm5, %v7561_v52, 0.0  ;;  %8834 = vst [vmem:[#allocation59_spill] sm:$0xff] %v7575_v40  ;;  %v7583_v52 = vadd.f32 %v7410_v47, %v7321_v48  ;;  %v3009_v19 = vsel %vm2971_vm5, %v7575_v40, 0.0 }
 0x393   : > { %v3006_v54 = vadd.f32 %v3005_v2, %v3004_v45  ;;  %v8838_v2 = vrot.slane %v8805_v59, 1 }
 0x394   : > { %v2594_v20 = vpop.permute.xlu0 %2593  ;;  %8836 = vst [vmem:[#allocation76_spill] sm:$0xff] %v7583_v52  ;;  %v3013_v48 = vsel %vm2971_vm5, %v7583_v52, 0.0 }
 0x395   : > { %v2366_v38 = vpop.permute.xlu1 %2365  ;;  %v3008_v5 = vadd.f32 %v3007_v25, %v3006_v54  ;;  %v1533_v16 = vsel %vm1531_vm2, %v8838_v2, %v8837_v30  ;;  %v1430_v54 = vmul.f32 %v7404_v9, %v8805_v59  ;;  %v8840_v2 = vld [vmem:[#allocation37_spill] sm:$0xff]  ;;  %v7608_v9 = vadd.f32 %v7410_v47, %v7315_v14 }
 0x396   : > { %v1723_v7 = vmul.f32 %v7483_v41, %v1533_v16  ;;  %v2859_v24 = vmul.f32 %v8840_v2, %v1533_v16  ;;  %v2177_v8 = vmul.f32 %v7497_v0, %v1533_v16  ;;  %v1270_v41 = vadd.f32 %v1238_v12, %v943_v33  ;;  %v8842_v14 = vld [vmem:[#allocation41_spill] sm:$0xff] }
 0x397   : > { %v3010_v45 = vadd.f32 %v3009_v19, %v3008_v5  ;;  %v2631_v5 = vmul.f32 %v2586_v32, %v8805_v59 }
 0x398   : > { %v2598_v21 = vpop.permute.xlu0 %2597  ;;  %v2895_v59 = vmul.f32 %v7539_v55, %v2859_v24 }
 0x399   : > { %v3012_v30 = vadd.f32 %v3011_v37, %v3010_v45  ;;  %v1759_v37 = vmul.f32 %v5433_v4, %v1723_v7  ;;  %v2667_v32 = vmul.f32 %v8589_v42, %v2631_v5  ;;  %v3017_v4 = vsel %vm2971_vm5, %v7615_v50, 0.0 }
 0x39a   : > { %v2590_v51 = vpop.permute.xlu1 %2589  ;;  %v2213_v7 = vmul.f32 %v5500_v27, %v2177_v8  ;;  %v8845_v8 = vld [vmem:[#allocation43_spill] sm:$0xff] }
 0x39b   : > { %v2632_v25 = vmul.f32 %v2590_v51, %v8740_v18  ;;  %v1466_v18 = vmul.f32 %v5334_v49, %v1430_v54  ;;  %v8841_v51 = vld [vmem:[#allocation50_spill] sm:$0xff]  ;;  %v3014_v52 = vadd.f32 %v3013_v48, %v3012_v30  ;;  %v3015_v49 = vsel %vm2971_vm5, %v7608_v9, 0.0  ;;  %v8843_v48 = vld [vmem:[#allocation108_spill] sm:$0xff] }
 0x39c   : > { %v1951_v19 = vmul.f32 %v1918_v53, %v8841_v51  ;;  %v2405_v53 = vmul.f32 %v2366_v38, %v8841_v51  ;;  %v2602_v0 = vpop.permute.xlu0 %2601  ;;  %v2699_v38 = vadd.f32 %v2667_v32, %v7463_v43  ;;  %v8844_v51 = vld [vmem:[#allocation103_spill] sm:$0xff] }
 0x39d   : > { %v2668_v35 = vmul.f32 %v8589_v42, %v2632_v25  ;;  %v1498_v16 = vadd.f32 %v1466_v18, %v1270_v41  ;;  %v3016_v33 = vadd.f32 %v3015_v49, %v3014_v52  ;;  %v7642_v52 = vadd.f32 %v7410_v47, %v7481_v34 }
 0x39e   : > { %v1987_v12 = vmul.f32 %v5517_v31, %v1951_v19  ;;  %v7638_v31 = vadd.f32 %v7410_v47, %v7354_v28  ;;  %v2441_v30 = vmul.f32 %v8547_v13, %v2405_v53  ;;  %v2633_v18 = vmul.f32 %v2594_v20, %v8839_v3  ;;  %v8846_v53 = vld [vmem:[#allocation75_spill] sm:$0xff] }
 0x39f   : > { %v2146_v11 = vpop.permute.xlu1 %2145  ;;  %v2700_v24 = vadd.f32 %v2668_v35, %v7523_v10  ;;  %v1791_v54 = vadd.f32 %v1759_v37, %v1498_v16  ;;  %v2245_v35 = vadd.f32 %v2213_v7, %v7393_v56  ;;  %v7651_v28 = vadd.f32 %v7410_v47, %v7547_v62  ;;  %v8847_v16 = vld [vmem:[#allocation102_spill] sm:$0xff] }
 0x3a0   : > { %v2179_v45 = vmul.f32 %v2146_v11, %v8842_v14  ;;  %v2830_v34 = vpop.permute.xlu0 %2829  ;;  %v2927_v41 = vadd.f32 %v2895_v59, %v2699_v38  ;;  %v3019_v3 = vsel %vm2971_vm5, %v7638_v31, 0.0  ;;  %v3021_v20 = vsel %vm2971_vm5, %v7642_v52, 0.0 }
 0x3a1   : > { %v2019_v43 = vadd.f32 %v1987_v12, %v1791_v54  ;;  %v2473_v49 = vadd.f32 %v2441_v30, %v2245_v35  ;;  %v2669_v56 = vmul.f32 %v8589_v42, %v2633_v18  ;;  %v2863_v12 = vmul.f32 %v2830_v34, %v8847_v16  ;;  %v4597_v16 = vld [vmem:[%s4763_s24 + $0x10] sm:$0xff] }
 0x3a3   : > { %v2701_v38 = vadd.f32 %v2669_v56, %v2473_v49  ;;  %v2899_v30 = vmul.f32 %v7539_v55, %v2863_v12  ;;  %v4598_v12 = vld [vmem:[%s4763_s24 + $0x18] sm:$0xff] }
 0x3a4   : > { %v2370_v40 = vpop.permute.xlu1 %2369 }
 0x3a5   : > { %v2406_v25 = vmul.f32 %v2370_v40, %v8843_v48  ;;  %v2635_v40 = vmul.f32 %v2602_v0, %v8845_v8 }
 0x3a7   : > { %v2671_v59 = vmul.f32 %v8589_v42, %v2635_v40 }
 0x3a9   : > { %v2818_v2 = vpop.permute.xlu1 %2817 }
 0x3aa   : > { %v2860_v15 = vmul.f32 %v2818_v2, %v8815_v1  ;;  %v2215_v1 = vmul.f32 %v5500_v27, %v2179_v45  ;;  %v3018_v27 = vadd.f32 %v3017_v4, %v3016_v33  ;;  %v2442_v45 = vmul.f32 %v8547_v13, %v2406_v25 }
 0x3ab   : > { %v7667_v4 = vadd.f32 %v7410_v47, %v2927_v41 }
 0x3ac   : > { %v2896_v11 = vmul.f32 %v7539_v55, %v2860_v15  ;;  %v2247_v37 = vadd.f32 %v2215_v1, %v2019_v43  ;;  %v2634_v15 = vmul.f32 %v2598_v21, %v8846_v53  ;;  %v3020_v0 = vadd.f32 %v3019_v3, %v3018_v27 }
 0x3ad   : > { %v2474_v7 = vadd.f32 %v2442_v45, %v7452_v63  ;;  %v3025_v63 = vsel %vm2971_vm5, %v7667_v4, 0.0 }
 0x3ae   : > { %v2928_v10 = vadd.f32 %v2896_v11, %v2700_v24  ;;  %v2374_v5 = vpop.permute.xlu1 %2373  ;;  %v3022_v24 = vadd.f32 %v3021_v20, %v3020_v0  ;;  %v2670_v1 = vmul.f32 %v8589_v42, %v2634_v15  ;;  %v3241_v0 = vld [vmem:[%s8017_s11] sm:$0xf] }
 0x3af   : > { %v2407_v19 = vmul.f32 %v2374_v5, %v8844_v51  ;;  %v8848_v5 = vld [vmem:[#allocation88_spill] sm:$0xff]  ;;  %4202 = vmatprep.subr.msk.mxu0 %vm581_vm0, %v3241_v0 }
 0x3b0   : > { %v7671_v21 = vadd.f32 %v7410_v47, %v2928_v10  ;;  %v2702_v43 = vadd.f32 %v2670_v1, %v2474_v7  ;;  %4203 = vmatpush3.msk.msra.mxu0 %vm581_vm0, %v3241_v0  ;;  %v4601_v7 = vld [vmem:[%s4763_s24 + $0x30] sm:$0xff]  ;;  %v4606_v1 = vld [vmem:[%s4763_s24 + $0x58] sm:$0xff] }
 0x3b1   : > { %v2443_v2 = vmul.f32 %v8547_v13, %v2407_v19  ;;  %v3023_v13 = vsel %vm2971_vm5, %v7651_v28, 0.0 }
 0x3b2   : > { %v3024_v48 = vadd.f32 %v3023_v13, %v3022_v24  ;;  %v3027_v10 = vsel %vm2971_vm5, %v7671_v21, 0.0  ;;  %v4599_v13 = vld [vmem:[%s4763_s24 + $0x20] sm:$0xff]  ;;  %v4602_v24 = vld [vmem:[%s4763_s24 + $0x38] sm:$0xff] }
 0x3b3   : > { %v2475_v62 = vadd.f32 %v2443_v2, %v2247_v37  ;;  %v2822_v32 = vpop.permute.xlu1 %2821 }
 0x3b4   : > { %v2861_v33 = vmul.f32 %v2822_v32, %v8842_v14  ;;  %v3026_v27 = vadd.f32 %v3025_v63, %v3024_v48  ;;  %v3119_v32 = vld [vmem:[%s8014_s8] sm:$0xf] }
 0x3b5   : > { %v2703_v11 = vadd.f32 %v2671_v59, %v2475_v62  ;;  %v8849_v62 = vmov 0.0   ;;  %v4596_v59 = vld [vmem:[%s4763_s24 + $0x8] sm:$0xff]  ;;  %v4607_v48 = vld [vmem:[%s4763_s24 + $0x60] sm:$0xff] }
 0x3b6   : > { %v2897_v54 = vmul.f32 %v7539_v55, %v2861_v33  ;;  %v3028_v35 = vadd.f32 %v3027_v10, %v3026_v27  ;;  %4205 = vmatmul.mubr.msk.f32.vlgmr.msra.gmra.mrb[32].mxu0 %vm484_vm1, %v4596_v59  ;;  %v4600_v33 = vld [vmem:[%s4763_s24 + $0x28] sm:$0xff]  ;;  %v3043_v63 = vld [vmem:[%s8013_s7] sm:$0x1] }
 0x3b7   : > { %v2826_v25 = vpop.permute.xlu1 %2825  ;;  %v2931_v51 = vadd.f32 %v2899_v30, %v2703_v11  ;;  %4207 = vmatprep.mubr.msk.f32.mxu0 %vm484_vm1, %v4597_v16  ;;  %v4603_v11 = vld [vmem:[%s4763_s24 + $0x40] sm:$0xff]  ;;  %v4609_v30 = vld [vmem:[%s4763_s24 + $0x70] sm:$0xff] }
 0x3b8   : > { %v2929_v14 = vadd.f32 %v2897_v54, %v2701_v38  ;;  %v2862_v18 = vmul.f32 %v2826_v25, %v8848_v5  ;;  %v4604_v38 = vld [vmem:[%s4763_s24 + $0x48] sm:$0xff]  ;;  %v4605_v54 = vld [vmem:[%s4763_s24 + $0x50] sm:$0xff]  ;;  %v4611_v5 = vld [vmem:[%s4763_s24 + $0x80] sm:$0xff] }
 0x3b9   : > { %v7688_v34 = vadd.f32 %v7410_v47, %v2931_v51  ;;  %v4608_v25 = vld [vmem:[%s4763_s24 + $0x68] sm:$0xff]  ;;  %v3120_v16 = vld [vmem:[%s8015_s9] sm:$0x1] }
 0x3ba   : > { %v7682_v19 = vadd.f32 %v7410_v47, %v2929_v14  ;;  %v2898_v42 = vmul.f32 %v7539_v55, %v2862_v18  ;;  %4208 = vmatmul.mubr.msk.f32.gmra.mrb[34].mxu0 %vm484_vm1, %v4598_v12  ;;  %v4610_v14 = vld [vmem:[%s4763_s24 + $0x78] sm:$0xff]  ;;  %v4612_v18 = vld [vmem:[%s4763_s24 + $0x88] sm:$0xff] }
 0x3bb   : > { %v3033_v55 = vsel %vm2971_vm5, %v7688_v34, 0.0  ;;  %4210 = vmatprep.mubr.msk.f32.mxu0 %vm484_vm1, %v4599_v13 }
 0x3bc   : > { %v3029_v8 = vsel %vm2971_vm5, %v7682_v19, 0.0  ;;  %v2930_v40 = vadd.f32 %v2898_v42, %v2702_v43 }
 0x3bd   : > { %v3030_v37 = vadd.f32 %v3029_v8, %v3028_v35  ;;  %v4613_v8 = vld [vmem:[%s4763_s24 + $0x90] sm:$0xff]  ;;  %v4615_v35 = vld [vmem:[%s4763_s24 + $0xa0] sm:$0xff] }
 0x3be   : > { %v7691_v41 = vadd.f32 %v7410_v47, %v2930_v40  ;;  %4211 = vmatmul.mubr.msk.f32.gmra.mrb[36].mxu0 %vm484_vm1, %v4600_v33  ;;  %v4614_v40 = vld [vmem:[%s4763_s24 + $0x98] sm:$0xff] }
 0x3bf   : > { %4213 = vmatprep.mubr.msk.f32.mxu0 %vm484_vm1, %v4601_v7 }
 0x3c0   : > { %v3031_v45 = vsel %vm2971_vm5, %v7691_v41, 0.0 }
 0x3c1   : > { %v3032_v2 = vadd.f32 %v3031_v45, %v3030_v37  ;;  %v4616_v37 = vld [vmem:[%s4763_s24 + $0xa8] sm:$0xff]  ;;  %v4617_v45 = vld [vmem:[%s4763_s24 + $0xb0] sm:$0xff] }
 0x3c2   : > { %4214 = vmatmul.mubr.msk.f32.gmra.mrb[38].mxu0 %vm484_vm1, %v4602_v24 }
 0x3c3   : > { %v3034_v3 = vadd.f32 %v3033_v55, %v3032_v2  ;;  %4216 = vmatprep.mubr.msk.f32.mxu0 %vm484_vm1, %v4603_v11  ;;  %v4618_v2 = vld [vmem:[%s4763_s24 + $0xb8] sm:$0xff]  ;;  %v4619_v55 = vld [vmem:[%s4763_s24 + $0xc0] sm:$0xff] }
 0x3c5   : > { %v3035_v20 = vrot.slane %v3034_v3, 4 }
 0x3c6   : > { %4217 = vmatmul.mubr.msk.f32.gmra.mrb[40].mxu0 %vm484_vm1, %v4604_v38 }
 0x3c7   : > { %v3036_v49 = vadd.f32 %v3035_v20, %v3034_v3  ;;  %4219 = vmatprep.mubr.msk.f32.mxu0 %vm484_vm1, %v4605_v54  ;;  %v4620_v3 = vld [vmem:[%s4763_s24 + $0xc8] sm:$0xff]  ;;  %v4621_v20 = vld [vmem:[%s4763_s24 + $0xd0] sm:$0xff] }
 0x3c9   : > { %v3037_v56 = vrot.slane %v3036_v49, 2 }
 0x3ca   : > { %4220 = vmatmul.mubr.msk.f32.gmra.mrb[42].mxu0 %vm484_vm1, %v4606_v1  ;;  %v8850_v1 = vsub.s32 0, %v5223_v22 }
 0x3cb   : > { %v3038_v53 = vadd.f32 %v3037_v56, %v3036_v49  ;;  %4222 = vmatprep.mubr.msk.f32.mxu0 %vm484_vm1, %v4607_v48  ;;  %v4622_v49 = vld [vmem:[%s4763_s24 + $0xd8] sm:$0xff]  ;;  %v4623_v56 = vld [vmem:[%s4763_s24 + $0xe0] sm:$0xff] }
 0x3cd   : > { %v3039_v15 = vrot.slane %v3038_v53, 1 }
 0x3ce   : > { %4223 = vmatmul.mubr.msk.f32.gmra.mrb[44].mxu0 %vm484_vm1, %v4608_v25 }
 0x3cf   : > { %v3040_v47 = vadd.f32 %v3039_v15, %v3038_v53  ;;  %4225 = vmatprep.mubr.msk.f32.mxu0 %vm484_vm1, %v4609_v30  ;;  %v4624_v53 = vld [vmem:[%s4763_s24 + $0xe8] sm:$0xff]  ;;  %v4625_v15 = vld [vmem:[%s4763_s24 + $0xf0] sm:$0xff] }
 0x3d1   : > { %4195 = vmatmul.mubr.msk.f32.vlgmr.msra.gmra.mrb[0].mxu1 %vm2971_vm5, %v3040_v47  ;;  %v4626_v47 = vld [vmem:[%s4763_s24 + $0xf8] sm:$0xff] }
 0x3d2   : > { %4199 = vmatprep.mubr.msk.f32.mxu1 %vm4644_vm4, %v8849_v62  ;;  %4198 = vmatpush3.msk.msra.mxu1 %vm581_vm0, %v3119_v32  ;;  %v3239_v62 = vld [vmem:[%s8016_s10] sm:$0xff]  ;;  %v3240_v32 = vld [vmem:[%s8016_s10 + $0x8] sm:$0xff] }
 0x3d3   : > { %4311 = vmatprep.subr.msk.mxu1 %vm581_vm0, %v3241_v0  ;;  %4226 = vmatmul.mubr.msk.f32.gmra.mrb[46].mxu0 %vm484_vm1, %v4610_v14 }
 0x3d4   : > { %4228 = vmatprep.mubr.msk.f32.mxu0 %vm484_vm1, %v4611_v5 }
 0x3d7   : > { %4229 = vmatmul.mubr.msk.f32.gmra.mrb[48].mxu0 %vm484_vm1, %v4612_v18  ;;  %v8852_v18 = vld [vmem:[#allocation70_spill] sm:$0xff] }
 0x489   : > { %v7783_v59 = vpop.f32.mrb[32].mxu0 }
 0x4a4   : > { %v3113_v43 = vpop.f32.mrb[0].mxu1 }
 0x4a5   : > { %v3114_v10 = vadd.f32 %v3113_v43, %v3043_v63  ;;  %v4196_v51 = vpop.f32.mrb[1].mxu1  ;;  %v8853_v63 = vld [vmem:[#allocation28_spill] sm:$0xff]  ;;  %v8854_v43 = vld [vmem:[#allocation14_spill] sm:$0xff] }
 0x4a7   : > { %v3117_v42 = vmax.f32 %v3114_v10, 0.0  ;;  %v8855_v10 = vld [vmem:[#allocation62_spill] sm:$0xff] }
 0x4a9   : > { %v3118_v27 = vmin.f32 %v3117_v42, 6.0  ;;  %v8856_v42 = vld [vmem:[#allocation36_spill] sm:$0xff] }
 0x4ab   : > { %4200 = vmatmul.mubr.msk.f32.vlgmr.msra.gmra.mrb[2].mxu1 %vm484_vm1, %v3118_v27 }
 0x4ac   : > { %4312 = vmatpush3.msk.msra.mxu1 %vm581_vm0, %v3241_v0  ;;  %4231 = vmatprep.mubr.msk.f32.mxu1 %vm484_vm1, %v4613_v8  ;;  %v4307_v0 = vpack.c.bf16 %v3240_v32, %v3239_v62  ;;  %v8857_v8 = vld [vmem:[#allocation59_spill] sm:$0xff] }
 0x4ae   : > { %4308 = vmatprep.subr.bf16.mxu1 %v4307_v0 }
 0x4af   : > { %4232 = vmatmul.mubr.msk.f32.vlgmr.msra.gmra.mrb[4].mxu1 %vm484_vm1, %v4614_v40 }
 0x4b0   : > { %4234 = vmatprep.mubr.msk.f32.mxu1 %vm484_vm1, %v4615_v35  ;;  %4310 = vmatpush3.bf16.msra.mxu1 %v4307_v0  ;;  %v8858_v35 = vld [vmem:[#allocation131_spill] sm:$0xff] }
 0x4b3   : > { %4235 = vmatmul.mubr.msk.f32.gmra.mrb[6].mxu1 %vm484_vm1, %v4616_v37 }
 0x4b4   : > { %4237 = vmatprep.mubr.msk.f32.mxu1 %vm484_vm1, %v4617_v45  ;;  %v8859_v45 = vld [vmem:[#allocation76_spill] sm:$0xff] }
 0x4b7   : > { %4238 = vmatmul.mubr.msk.f32.gmra.mrb[8].mxu1 %vm484_vm1, %v4618_v2 }
 0x4b8   : > { %4240 = vmatprep.mubr.msk.f32.mxu1 %vm484_vm1, %v4619_v55 }
 0x4bb   : > { %4241 = vmatmul.mubr.msk.f32.gmra.mrb[10].mxu1 %vm484_vm1, %v4620_v3 }
 0x4bc   : > { %4243 = vmatprep.mubr.msk.f32.mxu1 %vm484_vm1, %v4621_v20 }
 0x4bf   : > { %4244 = vmatmul.mubr.msk.f32.gmra.mrb[12].mxu1 %vm484_vm1, %v4622_v49 }
 0x4c0   : > { %4246 = vmatprep.mubr.msk.f32.mxu1 %vm484_vm1, %v4623_v56 }
 0x4c3   : > { %4247 = vmatmul.mubr.msk.f32.gmra.mrb[14].mxu1 %vm484_vm1, %v4624_v53 }
 0x4c4   : > { %4249 = vmatprep.mubr.msk.f32.mxu1 %vm484_vm1, %v4625_v15 }
 0x4c7   : > { %4250 = vmatmul.mubr.msk.f32.gmra.mrb[16].mxu1 %vm484_vm1, %v4626_v47 }
 0x57e   : > { %v3193_v12 = vpop.f32.mrb[2].mxu1 }
 0x57f   : > { %v3194_v13 = vadd.f32 %v3193_v12, %v3120_v16  ;;  %v4201_v33 = vpop.f32.mrb[3].mxu1 }
 0x581   : > { %v3197_v7 = vsub.f32 0.0, %v3194_v13 }
 0x583   : > { %v3198_v24 = vmul.f32 1.442695, %v3197_v7 }
 0x585   : > { %4554 = vpow2.f32 %v3198_v24 }
 0x58f   : > { %v4555_v11 = vpop.eup %4554 }
 0x590   : > { %v3200_v38 = vadd.f32 1.0, %v4555_v11  ;;  %v7895_v11 = vld [vmem:[%s8018_s12] ss:$0 sm:$0xff] }
 0x592   : > { %4556 = vrcp.f32 %v3200_v38 }
 0x59c   : > { %v4557_v54 = vpop.eup %4556 }
 0x59d   : > { %v7790_v48 = vrot.slane %v4557_v54, %v8850_v1 }
 0x59f   : > { %v3207_v25 = vmul.f32 %v7790_v48, %v7426_v46  ;;  %v3208_v30 = vmul.f32 %v7790_v48, %v7422_v60  ;;  %v3209_v14 = vmul.f32 %v7790_v48, %v7436_v44  ;;  %v3210_v22 = vmul.f32 %v7790_v48, %v7450_v36 }
 0x5a0   : > { %v3211_v5 = vmul.f32 %v7790_v48, %v7457_v57  ;;  %v3212_v60 = vmul.f32 %v7790_v48, %v7467_v26  ;;  %v3213_v46 = vmul.f32 %v7790_v48, %v7473_v6  ;;  %v3214_v44 = vmul.f32 %v7790_v48, %v7487_v61 }
 0x5a1   : > { %4256 = vmatprep.mubr.msk.f32.mxu1 %vm2971_vm5, %v3207_v25  ;;  %v3215_v36 = vmul.f32 %v7790_v48, %v7491_v29  ;;  %v3216_v57 = vmul.f32 %v7790_v48, %v7495_v39  ;;  %v3217_v26 = vmul.f32 %v7790_v48, %v7507_v23  ;;  %v3218_v6 = vmul.f32 %v7790_v48, %v7511_v58  ;;  %v8851_v29 = vld [vmem:[#allocation65_spill] sm:$0xff] }
 0x5a2   : > { %4257 = vmatmul.mubr.msk.f32.vlgmr.msra.gmra.mrb[18].mxu1 %vm2971_vm5, %v3208_v30  ;;  %v3219_v61 = vmul.f32 %v7790_v48, %v7516_v17  ;;  %v3220_v39 = vmul.f32 %v7790_v48, %v8851_v29  ;;  %v3221_v23 = vmul.f32 %v7790_v48, %v8852_v18  ;;  %v3222_v58 = vmul.f32 %v7790_v48, %v8853_v63 }
 0x5a3   : > { %4259 = vmatprep.mubr.msk.f32.mxu1 %vm2971_vm5, %v3209_v14  ;;  %v3223_v17 = vmul.f32 %v7790_v48, %v8854_v43  ;;  %v3224_v51 = vmul.f32 %v7790_v48, %v8855_v10  ;;  %v3225_v27 = vmul.f32 %v7790_v48, %v8856_v42  ;;  %v3226_v40 = vmul.f32 %v7790_v48, %v8857_v8 }
 0x5a4   : > { %v3227_v37 = vmul.f32 %v7790_v48, %v8858_v35  ;;  %v3228_v2 = vmul.f32 %v7790_v48, %v8859_v45  ;;  %v3229_v55 = vmul.f32 %v7790_v48, %v7608_v9  ;;  %v3230_v3 = vmul.f32 %v7790_v48, %v7615_v50 }
 0x5a5   : > { %v3231_v20 = vmul.f32 %v7790_v48, %v7638_v31  ;;  %v3232_v49 = vmul.f32 %v7790_v48, %v7642_v52  ;;  %v3233_v9 = vmul.f32 %v7790_v48, %v7651_v28  ;;  %v3234_v50 = vmul.f32 %v7790_v48, %v7667_v4 }
 0x5a6   : > { %4260 = vmatmul.mubr.msk.f32.gmra.mrb[20].mxu1 %vm2971_vm5, %v3210_v22  ;;  %v3235_v31 = vmul.f32 %v7790_v48, %v7671_v21  ;;  %v3236_v52 = vmul.f32 %v7790_v48, %v7682_v19  ;;  %v3237_v28 = vmul.f32 %v7790_v48, %v7691_v41  ;;  %v3238_v4 = vmul.f32 %v7790_v48, %v7688_v34  ;;  %v3311_v21 = vpop.f32.mrb[33].mxu0 }
 0x5a7   : > { %4262 = vmatprep.mubr.msk.f32.mxu1 %vm2971_vm5, %v3211_v5  ;;  %v4209_v56 = vpop.f32.mrb[34].mxu0 }
 0x5a8   : > { %v3321_v53 = vpop.f32.mrb[35].mxu0  ;;  %v4317_v48 = vadd.f32 %v4209_v56, %v7895_v11 }
 0x5a9   : > { %v4212_v15 = vpop.f32.mrb[36].mxu0  ;;  %v4319_v30 = vadd.f32 %v7895_v11, %v3321_v53 }
 0x5aa   : > { %4263 = vmatmul.mubr.msk.f32.gmra.mrb[22].mxu1 %vm2971_vm5, %v3212_v60  ;;  %v3331_v47 = vpop.f32.mrb[37].mxu0 }
 0x5ab   : > { %4265 = vmatprep.mubr.msk.f32.mxu1 %vm2971_vm5, %v3213_v46  ;;  %v4215_v62 = vpop.f32.mrb[38].mxu0  ;;  %v4321_v46 = vadd.f32 %v4212_v15, %v7895_v11 }
 0x5ac   : > { %v3341_v32 = vpop.f32.mrb[39].mxu0 }
 0x5ad   : > { %v4218_v19 = vpop.f32.mrb[40].mxu0 }
 0x5ae   : > { %4266 = vmatmul.mubr.msk.f32.gmra.mrb[24].mxu1 %vm2971_vm5, %v3214_v44  ;;  %v3351_v0 = vpop.f32.mrb[41].mxu0 }
 0x5af   : > { %4268 = vmatprep.mubr.msk.f32.mxu1 %vm2971_vm5, %v3215_v36  ;;  %v4221_v41 = vpop.f32.mrb[42].mxu0  ;;  %v4323_v36 = vadd.f32 %v7895_v11, %v3331_v47 }
 0x5b0   : > { %v3361_v16 = vpop.f32.mrb[43].mxu0 }
 0x5b1   : > { %v4224_v12 = vpop.f32.mrb[44].mxu0 }
 0x5b2   : > { %4269 = vmatmul.mubr.msk.f32.gmra.mrb[26].mxu1 %vm2971_vm5, %v3216_v57  ;;  %v3371_v13 = vpop.f32.mrb[45].mxu0 }
 0x5b3   : > { %4271 = vmatprep.mubr.msk.f32.mxu1 %vm2971_vm5, %v3217_v26  ;;  %v4227_v33 = vpop.f32.mrb[46].mxu0 }
 0x5b4   : > { %v3381_v7 = vpop.f32.mrb[47].mxu0 }
 0x5b5   : > { %v7888_v24 = vpop.f32.mrb[48].mxu0 }
 0x5b6   : > { %4272 = vmatmul.mubr.msk.f32.gmra.mrb[28].mxu1 %vm2971_vm5, %v3218_v6  ;;  %v7890_v34 = vpop.f32.mrb[49].mxu0  ;;  %v4345_v56 = vadd.f32 %v7888_v24, %v7895_v11 }
 0x5b7   : > { %4274 = vmatprep.mubr.msk.f32.mxu1 %vm2971_vm5, %v3219_v61  ;;  %v4325_v61 = vadd.f32 %v4215_v62, %v7895_v11  ;;  %v4347_v15 = vadd.f32 %v7895_v11, %v7890_v34 }
 0x5ba   : > { %4275 = vmatmul.mubr.msk.f32.gmra.mrb[30].mxu1 %vm2971_vm5, %v3220_v39  ;;  %v4327_v39 = vadd.f32 %v7895_v11, %v3341_v32 }
 0x5bb   : > { %4277 = vmatprep.mubr.msk.f32.mxu1 %vm2971_vm5, %v3221_v23 }
 0x5be   : > { %4278 = vmatmul.mubr.msk.f32.gmra.mrb[32].mxu1 %vm2971_vm5, %v3222_v58  ;;  %v4329_v58 = vadd.f32 %v4218_v19, %v7895_v11 }
 0x5bf   : > { %4280 = vmatprep.mubr.msk.f32.mxu1 %vm2971_vm5, %v3223_v17  ;;  %v4331_v17 = vadd.f32 %v7895_v11, %v3351_v0 }
 0x5c2   : > { %4281 = vmatmul.mubr.msk.f32.gmra.mrb[34].mxu1 %vm2971_vm5, %v3224_v51 }
 0x5c3   : > { %4283 = vmatprep.mubr.msk.f32.mxu1 %vm2971_vm5, %v3225_v27  ;;  %v4333_v27 = vadd.f32 %v4221_v41, %v7895_v11 }
 0x5c6   : > { %4284 = vmatmul.mubr.msk.f32.gmra.mrb[4].mxu1 %vm2971_vm5, %v3226_v40  ;;  %v4335_v40 = vadd.f32 %v7895_v11, %v3361_v16 }
 0x5c7   : > { %4286 = vmatprep.mubr.msk.f32.mxu1 %vm2971_vm5, %v3227_v37 }
 0x5ca   : > { %4287 = vmatmul.mubr.msk.f32.gmra.mrb[6].mxu1 %vm2971_vm5, %v3228_v2  ;;  %v4337_v2 = vadd.f32 %v4224_v12, %v7895_v11 }
 0x5cb   : > { %4289 = vmatprep.mubr.msk.f32.mxu1 %vm2971_vm5, %v3229_v55 }
 0x5ce   : > { %4290 = vmatmul.mubr.msk.f32.gmra.mrb[8].mxu1 %vm2971_vm5, %v3230_v3  ;;  %v4339_v3 = vadd.f32 %v7895_v11, %v3371_v13 }
 0x5cf   : > { %4292 = vmatprep.mubr.msk.f32.mxu1 %vm2971_vm5, %v3231_v20 }
 0x5d2   : > { %4293 = vmatmul.mubr.msk.f32.gmra.mrb[10].mxu1 %vm2971_vm5, %v3232_v49 }
 0x5d3   : > { %4295 = vmatprep.mubr.msk.f32.mxu1 %vm2971_vm5, %v3233_v9 }
 0x5d6   : > { %4296 = vmatmul.mubr.msk.f32.gmra.mrb[12].mxu1 %vm2971_vm5, %v3234_v50  ;;  %v4341_v50 = vadd.f32 %v4227_v33, %v7895_v11 }
 0x5d7   : > { %4298 = vmatprep.mubr.msk.f32.mxu1 %vm2971_vm5, %v3235_v31 }
 0x5da   : > { %4299 = vmatmul.mubr.msk.f32.gmra.mrb[14].mxu1 %vm2971_vm5, %v3236_v52  ;;  %v4343_v52 = vadd.f32 %v7895_v11, %v3381_v7 }
 0x5db   : > { %4301 = vmatprep.mubr.msk.f32.mxu1 %vm2971_vm5, %v3237_v28 }
 0x5de   : > { %4302 = vmatmul.mubr.msk.f32.gmra.mrb[16].mxu1 %vm2971_vm5, %v3238_v4 }
 0x675   : > { %v4258_v38 = vpop.f32.mrb[18].mxu1 }
 0x676   : > { %v4313_v54 = vadd.f32 %v4258_v38, %v7783_v59  ;;  %v3639_v1 = vpop.f32.mrb[19].mxu1 }
 0x677   : > { %v4315_v25 = vadd.f32 %v3639_v1, %v3311_v21 }
 0x678   : > { %v4314_v14 = vadd.f32 %v4313_v54, %v7895_v11 }
 0x679   : > { %v4316_v59 = vadd.f32 %v4315_v25, %v7895_v11  ;;  %v4261_v22 = vpop.f32.mrb[20].mxu1 }
 0x67a   : > { %3832 = vst.msk [vmem:[%s7904_s29 + $0x8] sm:$0xff] %vm3830_vm6, %v4314_v14  ;;  %v4318_v5 = vadd.f32 %v4317_v48, %v4261_v22  ;;  %v3649_v60 = vpop.f32.mrb[21].mxu1 }
 0x67b   : > { %3831 = vst.msk [vmem:[%s7904_s29] sm:$0xff] %vm3830_vm6, %v4316_v59  ;;  %v4320_v44 = vadd.f32 %v4319_v30, %v3649_v60 }
 0x67c   : > { %3834 = vst.msk [vmem:[%s7904_s29 + $0x18] sm:$0xff] %vm3830_vm6, %v4318_v5 }
 0x67d   : > { %3833 = vst.msk [vmem:[%s7904_s29 + $0x10] sm:$0xff] %vm3830_vm6, %v4320_v44  ;;  %v4264_v57 = vpop.f32.mrb[22].mxu1 }
 0x67e   : > { %v4322_v26 = vadd.f32 %v4321_v46, %v4264_v57  ;;  %v3659_v6 = vpop.f32.mrb[23].mxu1 }
 0x67f   : > { %v4324_v29 = vadd.f32 %v4323_v36, %v3659_v6 }
 0x680   : > { %3836 = vst.msk [vmem:[%s7904_s29 + $0x28] sm:$0xff] %vm3830_vm6, %v4322_v26 }
 0x681   : > { %3835 = vst.msk [vmem:[%s7904_s29 + $0x20] sm:$0xff] %vm3830_vm6, %v4324_v29  ;;  %v4267_v18 = vpop.f32.mrb[24].mxu1 }
 0x682   : > { %v4326_v23 = vadd.f32 %v4325_v61, %v4267_v18  ;;  %v3669_v63 = vpop.f32.mrb[25].mxu1 }
 0x683   : > { %v4328_v43 = vadd.f32 %v4327_v39, %v3669_v63 }
 0x684   : > { %3838 = vst.msk [vmem:[%s7904_s29 + $0x38] sm:$0xff] %vm3830_vm6, %v4326_v23 }
 0x685   : > { %3837 = vst.msk [vmem:[%s7904_s29 + $0x30] sm:$0xff] %vm3830_vm6, %v4328_v43  ;;  %v4270_v10 = vpop.f32.mrb[26].mxu1 }
 0x686   : > { %v4330_v51 = vadd.f32 %v4329_v58, %v4270_v10  ;;  %v3679_v42 = vpop.f32.mrb[27].mxu1 }
 0x687   : > { %v4332_v8 = vadd.f32 %v4331_v17, %v3679_v42 }
 0x688   : > { %3840 = vst.msk [vmem:[%s7904_s29 + $0x48] sm:$0xff] %vm3830_vm6, %v4330_v51 }
 0x689   : > { %3839 = vst.msk [vmem:[%s7904_s29 + $0x40] sm:$0xff] %vm3830_vm6, %v4332_v8  ;;  %v4273_v35 = vpop.f32.mrb[28].mxu1 }
 0x68a   : > { %v4334_v37 = vadd.f32 %v4333_v27, %v4273_v35  ;;  %v3689_v45 = vpop.f32.mrb[29].mxu1 }
 0x68b   : > { %v4336_v55 = vadd.f32 %v4335_v40, %v3689_v45 }
 0x68c   : > { %3842 = vst.msk [vmem:[%s7904_s29 + $0x58] sm:$0xff] %vm3830_vm6, %v4334_v37 }
 0x68d   : > { %3841 = vst.msk [vmem:[%s7904_s29 + $0x50] sm:$0xff] %vm3830_vm6, %v4336_v55  ;;  %v4276_v20 = vpop.f32.mrb[30].mxu1 }
 0x68e   : > { %v4338_v49 = vadd.f32 %v4337_v2, %v4276_v20  ;;  %v3699_v9 = vpop.f32.mrb[31].mxu1 }
 0x68f   : > { %v4340_v31 = vadd.f32 %v4339_v3, %v3699_v9 }
 0x690   : > { %3844 = vst.msk [vmem:[%s7904_s29 + $0x68] sm:$0xff] %vm3830_vm6, %v4338_v49 }
 0x691   : > { %3843 = vst.msk [vmem:[%s7904_s29 + $0x60] sm:$0xff] %vm3830_vm6, %v4340_v31  ;;  %v4279_v28 = vpop.f32.mrb[32].mxu1 }
 0x692   : > { %v4342_v4 = vadd.f32 %v4341_v50, %v4279_v28  ;;  %v3709_v21 = vpop.f32.mrb[33].mxu1 }
 0x693   : > { %v4344_v53 = vadd.f32 %v4343_v52, %v3709_v21 }
 0x694   : > { %3846 = vst.msk [vmem:[%s7904_s29 + $0x78] sm:$0xff] %vm3830_vm6, %v4342_v4 }
 0x695   : > { %3845 = vst.msk [vmem:[%s7904_s29 + $0x70] sm:$0xff] %vm3830_vm6, %v4344_v53  ;;  %v4282_v47 = vpop.f32.mrb[34].mxu1 }
 0x696   : > { %v4346_v62 = vadd.f32 %v4345_v56, %v4282_v47  ;;  %v3719_v32 = vpop.f32.mrb[35].mxu1 }
 0x697   : > { %v4348_v19 = vadd.f32 %v4347_v15, %v3719_v32 }
 0x698   : > { %3848 = vst.msk [vmem:[%s7904_s29 + $0x88] sm:$0xff] %vm3830_vm6, %v4346_v62 }
 0x699   : > { %3847 = vst.msk [vmem:[%s7904_s29 + $0x80] sm:$0xff] %vm3830_vm6, %v4348_v19  ;;  %v4285_v0 = vpop.f32.mrb[4].mxu1 }
 0x69a   : > { %v3735_v41 = vadd.f32 %v4285_v0, %v7895_v11  ;;  %v3729_v16 = vpop.f32.mrb[5].mxu1 }
 0x69b   : > { %v3730_v12 = vadd.f32 %v7895_v11, %v3729_v16 }
 0x69c   : > { %3850 = vst.msk [vmem:[%s7904_s29 + $0x98] sm:$0xff] %vm3830_vm6, %v3735_v41 }
 0x69d   : > { %3849 = vst.msk [vmem:[%s7904_s29 + $0x90] sm:$0xff] %vm3830_vm6, %v3730_v12  ;;  %v4288_v13 = vpop.f32.mrb[6].mxu1 }
 0x69e   : > { %v3745_v33 = vadd.f32 %v4288_v13, %v7895_v11  ;;  %v3739_v7 = vpop.f32.mrb[7].mxu1 }
 0x69f   : > { %v3740_v24 = vadd.f32 %v7895_v11, %v3739_v7 }
 0x6a0   : > { %3852 = vst.msk [vmem:[%s7904_s29 + $0xa8] sm:$0xff] %vm3830_vm6, %v3745_v33 }
 0x6a1   : > { %3851 = vst.msk [vmem:[%s7904_s29 + $0xa0] sm:$0xff] %vm3830_vm6, %v3740_v24  ;;  %v4291_v34 = vpop.f32.mrb[8].mxu1 }
 0x6a2   : > { %v3755_v38 = vadd.f32 %v4291_v34, %v7895_v11  ;;  %v3749_v54 = vpop.f32.mrb[9].mxu1 }
 0x6a3   : > { %v3750_v1 = vadd.f32 %v7895_v11, %v3749_v54 }
 0x6a4   : > { %3854 = vst.msk [vmem:[%s7904_s29 + $0xb8] sm:$0xff] %vm3830_vm6, %v3755_v38 }
 0x6a5   : > { %3853 = vst.msk [vmem:[%s7904_s29 + $0xb0] sm:$0xff] %vm3830_vm6, %v3750_v1  ;;  %v4294_v48 = vpop.f32.mrb[10].mxu1 }
 0x6a6   : > { %v3765_v25 = vadd.f32 %v4294_v48, %v7895_v11  ;;  %v3759_v30 = vpop.f32.mrb[11].mxu1 }
 0x6a7   : > { %v3760_v14 = vadd.f32 %v7895_v11, %v3759_v30 }
 0x6a8   : > { %3856 = vst.msk [vmem:[%s7904_s29 + $0xc8] sm:$0xff] %vm3830_vm6, %v3765_v25 }
 0x6a9   : > { %3855 = vst.msk [vmem:[%s7904_s29 + $0xc0] sm:$0xff] %vm3830_vm6, %v3760_v14  ;;  %v4297_v59 = vpop.f32.mrb[12].mxu1 }
 0x6aa   : > { %v3775_v22 = vadd.f32 %v4297_v59, %v7895_v11  ;;  %v3769_v5 = vpop.f32.mrb[13].mxu1 }
 0x6ab   : > { %v3770_v60 = vadd.f32 %v7895_v11, %v3769_v5 }
 0x6ac   : > { %3858 = vst.msk [vmem:[%s7904_s29 + $0xd8] sm:$0xff] %vm3830_vm6, %v3775_v22 }
 0x6ad   : > { %3857 = vst.msk [vmem:[%s7904_s29 + $0xd0] sm:$0xff] %vm3830_vm6, %v3770_v60  ;;  %v4300_v46 = vpop.f32.mrb[14].mxu1 }
 0x6ae   : > { %v3785_v44 = vadd.f32 %v4300_v46, %v7895_v11  ;;  %v3779_v36 = vpop.f32.mrb[15].mxu1 }
 0x6af   : > { %v3780_v57 = vadd.f32 %v7895_v11, %v3779_v36 }
 0x6b0   : > { %3860 = vst.msk [vmem:[%s7904_s29 + $0xe8] sm:$0xff] %vm3830_vm6, %v3785_v44 }
 0x6b1   : > { %3859 = vst.msk [vmem:[%s7904_s29 + $0xe0] sm:$0xff] %vm3830_vm6, %v3780_v57  ;;  %v4303_v26 = vpop.f32.mrb[16].mxu1 }
 0x6b2   : > { %v3795_v6 = vadd.f32 %v4303_v26, %v7895_v11  ;;  %v3789_v61 = vpop.f32.mrb[17].mxu1 }
 0x6b3   : > { %v3790_v29 = vadd.f32 %v7895_v11, %v3789_v61 }
 0x6b4   : > { %3862 = vst.msk [vmem:[%s7904_s29 + $0xf8] sm:$0xff] %vm3830_vm6, %v3795_v6 }
 0x6b5   : > { %3861 = vst.msk [vmem:[%s7904_s29 + $0xf0] sm:$0xff] %vm3830_vm6, %v3790_v29 }
 0x6b6 PF: > { %s23_s25 = sadd.s32 1, %s4633_s25  }
 0x6b7   : > { %p20_p4 = scmp.ge.s32.totalorder %s23_s25, 4  }
 0x6b9   :  { %22 = sbr.rel (!%p20_p4) target bundleno = 1 (0x1), region = 102 }

</bundles_post_ra>
